<compile_context>
chip_gen: v7x
topology: tpu7x:2x2x1
jax: 0.10.0
libtpu: 0.0.40
codegen_flags: <defaults>
</compile_context>

<pallas_src>
import jax
import jax.numpy as jnp
from jax import lax
from jax.experimental import pallas as pl
from jax.experimental.pallas import tpu as pltpu


# ---------------------------------------------------------------------------
# In-kernel helper (always f32)
# ---------------------------------------------------------------------------
def _layer_norm(x, gamma, beta, eps=1e-5):
    # x: (M, D), gamma/beta: (1, D)
    mean = jnp.mean(x, axis=-1, keepdims=True)
    var = jnp.mean((x - mean) ** 2, axis=-1, keepdims=True)
    return (x - mean) * lax.rsqrt(var + eps) * gamma + beta


# ---------------------------------------------------------------------------
# Fused encoder kernel: grid = (batch_blocks, num_layers)
#   - one batch block of Bt sequences (M = Bt*T rows) per outer step
#   - inner ("arbitrary") axis walks the layers; activation carried in VMEM
# ---------------------------------------------------------------------------
def _make_encoder_kernel(Bt, T, D, H, K):
    dh = D // H
    nrel = 2 * K + 1
    M = Bt * T
    scale = 1.0 / float(dh) ** 0.5

    def kernel(x_ref, bias_ref,
               g1_ref, be1_ref,
               wq_ref, bq_ref, wk_ref, bk_ref, wv_ref, bv_ref,
               wo_ref, bo_ref, rpe_ref,
               g2_ref, be2_ref, w1_ref, bf1_ref, w2_ref, bf2_ref,
               gf_ref, bef_ref,
               o_ref,
               act_ref, ctx_ref):
        f32 = jnp.float32
        cdt = ctx_ref.dtype                       # MXU compute dtype (bf16)
        l = pl.program_id(1)
        n_layers = pl.num_programs(1)

        # Load the residual stream into the carried VMEM scratch at the first layer.
        @pl.when(l == 0)
        def _():
            act_ref[...] = x_ref[...].reshape(M, D)

        x = act_ref[...]                          # (M, D) f32 residual stream
        bias = bias_ref[...]                      # (Bt, 1, T) additive key mask (0 / -1e30)

        # ---------------- attention block:  x + MHA(LN(x)) ----------------
        hn = _layer_norm(x, g1_ref[0], be1_ref[0])
        hc = hn.astype(cdt)                       # (M, D) compute dtype

        # Relative-position band machinery, shared across heads (hoisted out of loop).
        col = lax.broadcasted_iota(jnp.int32, (T, T), 1)
        row = lax.broadcasted_iota(jnp.int32, (T, T), 0)
        rel = jnp.clip(col - row, -K, K) + K      # (T, T) in [0, 2K]
        band = [(rel == ri).astype(f32)[None, :, :] for ri in range(nrel)]  # (1,T,T) each
        rpe_t = rpe_ref[0]                        # (2K+1, dh), compute dtype

        # Static head loop; per-head intermediates die at the ctx_ref store.
        for hi in range(H):
            # Head-major weights: K = D contraction, no column slicing of q/k/v.
            qh = jnp.dot(hc, wq_ref[0, hi], preferred_element_type=f32) + bq_ref[0, hi]
            kh = jnp.dot(hc, wk_ref[0, hi], preferred_element_type=f32) + bk_ref[0, hi]
            vh = jnp.dot(hc, wv_ref[0, hi], preferred_element_type=f32) + bv_ref[0, hi]
            qh = (qh * scale).astype(cdt)         # fold 1/sqrt(dh) into q once
            kh = kh.astype(cdt)
            vh = vh.astype(cdt)

            q3 = qh.reshape(Bt, T, dh)            # free (major-dim) reshapes
            k3 = kh.reshape(Bt, T, dh)
            v3 = vh.reshape(Bt, T, dh)

            # Content scores, batched over the Bt sequences of this block.
            s = jnp.einsum('btd,bsd->bts', q3, k3,
                           preferred_element_type=f32)          # (Bt, T, T)

            # Relative-position scores on the MXU: (M, dh) @ (dh, 2K+1)
            r = lax.dot_general(qh, rpe_t, (((1,), (1,)), ((), ())),
                                preferred_element_type=f32)     # (M, 2K+1)
            r3 = r.reshape(Bt, T, nrel)
            # Banded expansion: tree-reduced sum of independent mask * column terms.
            terms = [band[ri] * r3[:, :, ri:ri + 1] for ri in range(nrel)]
            while len(terms) > 1:
                nxt = [terms[i] + terms[i + 1] for i in range(0, len(terms) - 1, 2)]
                if len(terms) % 2:
                    nxt.append(terms[-1])
                terms = nxt

            s = s + terms[0] + bias               # additive key-padding mask

            # Softmax over keys (f32 stats, exact denominator).
            s = s - jnp.max(s, axis=-1, keepdims=True)
            p = jnp.exp(s)
            p = p * pl.reciprocal(jnp.sum(p, axis=-1, keepdims=True), approx=False)

            ctx = jnp.einsum('bts,bsd->btd', p.astype(cdt), v3,
                             preferred_element_type=f32)        # (Bt, T, dh)
            ctx_ref[:, hi * dh:(hi + 1) * dh] = ctx.reshape(M, dh).astype(cdt)

        # Single K=D output projection over all heads.
        attn = jnp.dot(ctx_ref[...], wo_ref[0], preferred_element_type=f32) + bo_ref[0]
        x = x + attn                              # residual

        # ---------------- FFN block:  x + W2(relu(W1(LN(x)))) ----------------
        h2 = _layer_norm(x, g2_ref[0], be2_ref[0]).astype(cdt)
        f = jnp.dot(h2, w1_ref[0], preferred_element_type=f32) + bf1_ref[0]
        f = jnp.maximum(f, 0.0).astype(cdt)
        f = jnp.dot(f, w2_ref[0], preferred_element_type=f32) + bf2_ref[0]
        y = x + f                                 # residual

        act_ref[...] = y                          # carry to the next layer

        @pl.when(l == n_layers - 1)               # encoder's final LayerNorm, fused
        def _():
            o_ref[...] = _layer_norm(y, gf_ref[...], bef_ref[...]).reshape(Bt, T, D)

    return kernel


# ---------------------------------------------------------------------------
# Wrapper: stack per-layer weights on a leading L axis (head-major QKV, compute
# dtype for matmul weights), run one fused pallas_call.
# ---------------------------------------------------------------------------
def _stack_layers(layers, H, cdt):
    D = layers[0]["wq"].shape[0]
    dh = D // H
    f32 = jnp.float32

    def st(name, dt=f32):
        return jnp.stack([lp[name] for lp in layers], axis=0).astype(dt)

    def st_w_hm(name):  # (D, D) -> (H, D, dh), stacked over layers
        return jnp.stack([lp[name].reshape(D, H, dh).transpose(1, 0, 2)
                          for lp in layers], axis=0).astype(cdt)

    def st_b_hm(name):  # (1, D) -> (H, 1, dh), stacked over layers
        return jnp.stack([lp[name].reshape(1, H, dh).transpose(1, 0, 2)
                          for lp in layers], axis=0).astype(f32)

    return [
        st("g1"), st("be1"),
        st_w_hm("wq"), st_b_hm("bq"),
        st_w_hm("wk"), st_b_hm("bk"),
        st_w_hm("wv"), st_b_hm("bv"),
        st("wo", cdt), st("bo"),
        st("rpe", cdt),
        st("g2"), st("be2"),
        st("w1", cdt), st("bf1"),
        st("w2", cdt), st("bf2"),
    ]


def _run_encoder(x, bias, stacked, gf, bef, heads, rpe_k, Bt, compute_dtype):
    B2, T, D = x.shape
    L = stacked[0].shape[0]
    M = Bt * T
    kernel = _make_encoder_kernel(Bt, T, D, heads, rpe_k)

    def layer_spec(arr):          # block index follows the layer grid axis
        rest = arr.shape[1:]
        nd = len(rest)
        return pl.BlockSpec((1,) + rest, lambda b, l, _nd=nd: (l,) + (0,) * _nd)

    def const_spec(arr):          # constant across the whole grid
        nd = arr.ndim
        return pl.BlockSpec(arr.shape, lambda b, l, _nd=nd: (0,) * _nd)

    in_specs = ([pl.BlockSpec((Bt, T, D), lambda b, l: (b, 0, 0)),
                 pl.BlockSpec((Bt, 1, T), lambda b, l: (b, 0, 0))]
                + [layer_spec(w) for w in stacked]
                + [const_spec(gf), const_spec(bef)])

    return pl.pallas_call(
        kernel,
        out_shape=jax.ShapeDtypeStruct((B2, T, D), jnp.float32),
        grid=(B2 // Bt, L),
        in_specs=in_specs,
        out_specs=pl.BlockSpec((Bt, T, D), lambda b, l: (b, 0, 0)),
        scratch_shapes=[pltpu.VMEM((M, D), jnp.float32),      # activation carry
                        pltpu.VMEM((M, D), compute_dtype)],   # concatenated head contexts
        compiler_params=pltpu.CompilerParams(
            dimension_semantics=("parallel", "arbitrary"),
            vmem_limit_bytes=64 * 1024 * 1024),
    )(x, bias, *stacked, gf, bef)


# ---------------------------------------------------------------------------
# Parameter initialization (deterministic, synthetic) -- stored in f32
# ---------------------------------------------------------------------------
def init_params(key, dim, heads, num_layers, rpe_k):
    dh = dim // heads

    def dense(k, din, dout):
        return jax.random.normal(k, (din, dout), jnp.float32) * 0.02

    layers = []
    keys = jax.random.split(key, num_layers)
    for i in range(num_layers):
        ks = jax.random.split(keys[i], 8)
        layers.append(dict(
            g1=jnp.ones((1, dim), jnp.float32), be1=jnp.zeros((1, dim), jnp.float32),
            wq=dense(ks[0], dim, dim), bq=jnp.zeros((1, dim), jnp.float32),
            wk=dense(ks[1], dim, dim), bk=jnp.zeros((1, dim), jnp.float32),
            wv=dense(ks[2], dim, dim), bv=jnp.zeros((1, dim), jnp.float32),
            wo=dense(ks[3], dim, dim), bo=jnp.zeros((1, dim), jnp.float32),
            rpe=jax.random.normal(ks[4], (2 * rpe_k + 1, dh), jnp.float32) * 0.02,
            g2=jnp.ones((1, dim), jnp.float32), be2=jnp.zeros((1, dim), jnp.float32),
            w1=dense(ks[5], dim, 4 * dim), bf1=jnp.zeros((1, 4 * dim), jnp.float32),
            w2=dense(ks[6], 4 * dim, dim), bf2=jnp.zeros((1, dim), jnp.float32),
        ))
    return dict(layers=layers,
                g=jnp.ones((1, dim), jnp.float32),
                b=jnp.zeros((1, dim), jnp.float32))


# ---------------------------------------------------------------------------
# Full TransformerEncoder forward (pad -> fused layers -> unpad)
# ---------------------------------------------------------------------------
def transformer_encoder(x1_list, x2_list, params, heads, rpe_k,
                        compute_dtype=jnp.bfloat16):
    xl = [int(x.shape[0]) for x in x1_list]
    B, D = len(xl), int(x1_list[0].shape[1])
    T = ((max(xl) + 7) // 8) * 8                      # sublane-pad the sequence length

    def pad_stack(xs):
        return jnp.stack([jnp.pad(x, ((0, T - x.shape[0]), (0, 0))) for x in xs])

    # Fuse x1 and x2 along the batch axis (same layer weights, same mask).
    x = jnp.concatenate([pad_stack(x1_list), pad_stack(x2_list)],
                        axis=0).astype(jnp.float32)   # (2B, T, D)
    B2 = 2 * B

    # key_padding_mask (True at padded positions) as an additive bias (0 / -1e30).
    pad = (jnp.arange(T)[None, :] >= jnp.asarray(xl)[:, None]).astype(jnp.float32)
    bias = (pad * jnp.float32(-1e30))[:, None, :]     # (B, 1, T)
    bias = jnp.concatenate([bias, bias], axis=0)      # (2B, 1, T)

    # Batch-block size: aim for >= ~256 rows per grid step, must divide 2B.
    Bt = min(B2, max(1, 256 // T))
    while B2 % Bt:
        Bt -= 1

    stacked = _stack_layers(params["layers"], heads, compute_dtype)
    out = _run_encoder(x, bias, stacked, params["g"], params["b"],
                       heads, rpe_k, Bt, compute_dtype)

    x1, x2 = out[:B], out[B:]
    out1 = [x1[i, :xl[i]] for i in range(B)]          # unpad_padded
    out2 = [x2[i, :xl[i]] for i in range(B)]
    return out1, out2


# ---------------------------------------------------------------------------
if __name__ == "__main__":
    dim, heads, num_layers, rpe_k = 32, 4, 2, 4
    lengths = [8, 6]

    key = jax.random.PRNGKey(0)
    kp, k1, k2 = jax.random.split(key, 3)
    params = init_params(kp, dim, heads, num_layers, rpe_k)

    x1_list = [jax.random.normal(jax.random.fold_in(k1, i), (l, dim), jnp.float32)
               for i, l in enumerate(lengths)]
    x2_list = [jax.random.normal(jax.random.fold_in(k2, i), (l, dim), jnp.float32)
               for i, l in enumerate(lengths)]

    out1, out2 = transformer_encoder(x1_list, x2_list, params, heads, rpe_k)
    for o in out1 + out2:
        jax.block_until_ready(o)

    # TODO(synk): exact MultiHeadAttention source not provided; Shaw-style shared key-RPE
    #             table with 1/sqrt(d_head) scaling after adding RPE is assumed.
    # TODO(synk): for long sequences (T >> ~1k on v7x, ~2k on v5e/v6e) add a flash-style
    #             query/key tile grid axis so the (Bt,T,T) score tiles stay bounded.
    # TODO(synk): for real configs pad D/dh to multiples of 128 for lane-dense stores and
    #             full-width MXU; that needs a masked LayerNorm (stats over the original
    #             D only), so it is left out of this demo-sized version.
    print("KERNEL_OK")
</pallas_src>

<mosaic_0001>
module attributes {stable_mosaic.version = 11 : i64} {
  func.func @kernel(%arg0: i32, %arg1: i32, %arg2: memref<4x8x32xf32, #tpu.memory_space<vmem>>, %arg3: memref<4x1x8xf32, #tpu.memory_space<vmem>>, %arg4: memref<1x1x32xf32, #tpu.memory_space<vmem>>, %arg5: memref<1x1x32xf32, #tpu.memory_space<vmem>>, %arg6: memref<1x4x32x8xbf16, #tpu.memory_space<vmem>>, %arg7: memref<1x4x1x8xf32, #tpu.memory_space<vmem>>, %arg8: memref<1x4x32x8xbf16, #tpu.memory_space<vmem>>, %arg9: memref<1x4x1x8xf32, #tpu.memory_space<vmem>>, %arg10: memref<1x4x32x8xbf16, #tpu.memory_space<vmem>>, %arg11: memref<1x4x1x8xf32, #tpu.memory_space<vmem>>, %arg12: memref<1x32x32xbf16, #tpu.memory_space<vmem>>, %arg13: memref<1x1x32xf32, #tpu.memory_space<vmem>>, %arg14: memref<1x9x8xbf16, #tpu.memory_space<vmem>>, %arg15: memref<1x1x32xf32, #tpu.memory_space<vmem>>, %arg16: memref<1x1x32xf32, #tpu.memory_space<vmem>>, %arg17: memref<1x32x128xbf16, #tpu.memory_space<vmem>>, %arg18: memref<1x1x128xf32, #tpu.memory_space<vmem>>, %arg19: memref<1x128x32xbf16, #tpu.memory_space<vmem>>, %arg20: memref<1x1x32xf32, #tpu.memory_space<vmem>>, %arg21: memref<1x32xf32, #tpu.memory_space<vmem>>, %arg22: memref<1x32xf32, #tpu.memory_space<vmem>>, %arg23: memref<4x8x32xf32, #tpu.memory_space<vmem>>, %arg24: memref<32x32xf32, #tpu.memory_space<vmem>>, %arg25: memref<32x32xbf16, #tpu.memory_space<vmem>>) attributes {dimension_semantics = [#tpu.dimension_semantics<parallel>, #tpu.dimension_semantics<arbitrary>], iteration_bounds = array<i64: 1, 2>, scalar_prefetch = 0 : i64, scratch_operands = 2 : i64, tpu.core_type = #tpu.core_type<tc>, window_params = [{transform_indices = @transform_0, window_bounds = array<i64: 4, 8, 32>}, {transform_indices = @transform_1, window_bounds = array<i64: 4, 1, 8>}, {transform_indices = @transform_2, window_bounds = array<i64: 1, 1, 32>}, {transform_indices = @transform_3, window_bounds = array<i64: 1, 1, 32>}, {transform_indices = @transform_4, window_bounds = array<i64: 1, 4, 32, 8>}, {transform_indices = @transform_5, window_bounds = array<i64: 1, 4, 1, 8>}, {transform_indices = @transform_6, window_bounds = array<i64: 1, 4, 32, 8>}, {transform_indices = @transform_7, window_bounds = array<i64: 1, 4, 1, 8>}, {transform_indices = @transform_8, window_bounds = array<i64: 1, 4, 32, 8>}, {transform_indices = @transform_9, window_bounds = array<i64: 1, 4, 1, 8>}, {transform_indices = @transform_10, window_bounds = array<i64: 1, 32, 32>}, {transform_indices = @transform_11, window_bounds = array<i64: 1, 1, 32>}, {transform_indices = @transform_12, window_bounds = array<i64: 1, 9, 8>}, {transform_indices = @transform_13, window_bounds = array<i64: 1, 1, 32>}, {transform_indices = @transform_14, window_bounds = array<i64: 1, 1, 32>}, {transform_indices = @transform_15, window_bounds = array<i64: 1, 32, 128>}, {transform_indices = @transform_16, window_bounds = array<i64: 1, 1, 128>}, {transform_indices = @transform_17, window_bounds = array<i64: 1, 128, 32>}, {transform_indices = @transform_18, window_bounds = array<i64: 1, 1, 32>}, {pipeline_mode = #tpu.pipeline_mode<synchronous>, transform_indices = @transform_19, window_bounds = array<i64: 1, 32>}, {pipeline_mode = #tpu.pipeline_mode<synchronous>, transform_indices = @transform_20, window_bounds = array<i64: 1, 32>}, {transform_indices = @transform_21, window_bounds = array<i64: 4, 8, 32>}]} {
    %c0_i32 = arith.constant 0 : i32
    %0 = arith.cmpi eq, %arg1, %c0_i32 : i32
    %1 = arith.extui %0 : i1 to i32
    %c0_i32_0 = arith.constant 0 : i32
    %2 = arith.cmpi ne, %1, %c0_i32_0 : i32
    scf.if %2 {
      %c0_194 = arith.constant 0 : index
      %c0_195 = arith.constant 0 : index
      %c0_196 = arith.constant 0 : index
      %522 = vector.load %arg2[%c0_194, %c0_195, %c0_196] : memref<4x8x32xf32, #tpu.memory_space<vmem>>, vector<4x8x32xf32>
      %523 = vector.shape_cast %522 : vector<4x8x32xf32> to vector<32x32xf32>
      %c0_197 = arith.constant 0 : index
      %c0_198 = arith.constant 0 : index
      %524 = vector.load %arg24[%c0_197, %c0_198] : memref<32x32xf32, #tpu.memory_space<vmem>>, vector<32x32xf32>
      tpu.vector_store %arg24[%c0_197, %c0_198], %523 {strides = array<i32>} : memref<32x32xf32, #tpu.memory_space<vmem>>, vector<32x32xf32>,
    } else {
    }
    %c0 = arith.constant 0 : index
    %c0_1 = arith.constant 0 : index
    %3 = vector.load %arg24[%c0, %c0_1] : memref<32x32xf32, #tpu.memory_space<vmem>>, vector<32x32xf32>
    %c0_2 = arith.constant 0 : index
    %c0_3 = arith.constant 0 : index
    %c0_4 = arith.constant 0 : index
    %4 = vector.load %arg3[%c0_2, %c0_3, %c0_4] : memref<4x1x8xf32, #tpu.memory_space<vmem>>, vector<4x1x8xf32>
    %c0_5 = arith.constant 0 : index
    %c0_6 = arith.constant 0 : index
    %c0_7 = arith.constant 0 : index
    %5 = vector.load %arg4[%c0_5, %c0_6, %c0_7] : memref<1x1x32xf32, #tpu.memory_space<vmem>>, vector<1x1x32xf32>
    %6 = vector.shape_cast %5 : vector<1x1x32xf32> to vector<1x32xf32>
    %c0_8 = arith.constant 0 : index
    %c0_9 = arith.constant 0 : index
    %c0_10 = arith.constant 0 : index
    %7 = vector.load %arg5[%c0_8, %c0_9, %c0_10] : memref<1x1x32xf32, #tpu.memory_space<vmem>>, vector<1x1x32xf32>
    %8 = vector.shape_cast %7 : vector<1x1x32xf32> to vector<1x32xf32>
    %cst = arith.constant dense<0.000000e+00> : vector<32xf32>
    %9 = vector.multi_reduction <add>, %3, %cst [1] : vector<32x32xf32> to vector<32xf32>
    %10 = vector.shape_cast %9 : vector<32xf32> to vector<32x1xf32>
    %cst_11 = arith.constant 3.200000e+01 : f32
    %11 = vector.broadcast %cst_11 : f32 to vector<32x1xf32>
    %12 = arith.divf %10, %11 : vector<32x1xf32>
    %13 = vector.broadcast %12 : vector<32x1xf32> to vector<32x32xf32>
    %14 = arith.subf %3, %13 : vector<32x32xf32>
    %15 = arith.mulf %14, %14 : vector<32x32xf32>
    %cst_12 = arith.constant dense<0.000000e+00> : vector<32xf32>
    %16 = vector.multi_reduction <add>, %15, %cst_12 [1] : vector<32x32xf32> to vector<32xf32>
    %17 = vector.shape_cast %16 : vector<32xf32> to vector<32x1xf32>
    %cst_13 = arith.constant 3.200000e+01 : f32
    %18 = vector.broadcast %cst_13 : f32 to vector<32x1xf32>
    %19 = arith.divf %17, %18 : vector<32x1xf32>
    %20 = vector.broadcast %12 : vector<32x1xf32> to vector<32x32xf32>
    %21 = arith.subf %3, %20 : vector<32x32xf32>
    %cst_14 = arith.constant 9.99999974E-6 : f32
    %22 = vector.broadcast %cst_14 : f32 to vector<32x1xf32>
    %23 = arith.addf %19, %22 : vector<32x1xf32>
    %24 = math.rsqrt %23 : vector<32x1xf32>
    %25 = vector.broadcast %24 : vector<32x1xf32> to vector<32x32xf32>
    %26 = arith.mulf %21, %25 : vector<32x32xf32>
    %27 = vector.broadcast %6 : vector<1x32xf32> to vector<32x32xf32>
    %28 = arith.mulf %26, %27 : vector<32x32xf32>
    %29 = vector.broadcast %8 : vector<1x32xf32> to vector<32x32xf32>
    %30 = arith.addf %28, %29 : vector<32x32xf32>
    %31 = arith.truncf %30 : vector<32x32xf32> to vector<32x32xbf16>
    %32 = tpu.iota {dimensions = array<i32: 1>} : vector<8x8xi32>
    %33 = tpu.iota {dimensions = array<i32: 0>} : vector<8x8xi32>
    %34 = arith.subi %32, %33 : vector<8x8xi32>
    %c-4_i32 = arith.constant -4 : i32
    %c4_i32 = arith.constant 4 : i32
    %35 = vector.broadcast %c-4_i32 : i32 to vector<8x8xi32>
    %36 = arith.maxsi %35, %34 : vector<8x8xi32>
    %37 = vector.broadcast %c4_i32 : i32 to vector<8x8xi32>
    %38 = arith.minsi %37, %36 : vector<8x8xi32>
    %c4_i32_15 = arith.constant 4 : i32
    %39 = vector.broadcast %c4_i32_15 : i32 to vector<8x8xi32>
    %40 = arith.addi %38, %39 : vector<8x8xi32>
    %c0_i32_16 = arith.constant 0 : i32
    %41 = vector.broadcast %c0_i32_16 : i32 to vector<8x8xi32>
    %42 = arith.cmpi eq, %40, %41 : vector<8x8xi32>
    %43 = arith.extui %42 : vector<8x8xi1> to vector<8x8xi32>
    %44 = arith.sitofp %43 : vector<8x8xi32> to vector<8x8xf32>
    %45 = vector.shape_cast %44 : vector<8x8xf32> to vector<1x8x8xf32>
    %c1_i32 = arith.constant 1 : i32
    %46 = vector.broadcast %c1_i32 : i32 to vector<8x8xi32>
    %47 = arith.cmpi eq, %40, %46 : vector<8x8xi32>
    %48 = arith.extui %47 : vector<8x8xi1> to vector<8x8xi32>
    %49 = arith.sitofp %48 : vector<8x8xi32> to vector<8x8xf32>
    %50 = vector.shape_cast %49 : vector<8x8xf32> to vector<1x8x8xf32>
    %c2_i32 = arith.constant 2 : i32
    %51 = vector.broadcast %c2_i32 : i32 to vector<8x8xi32>
    %52 = arith.cmpi eq, %40, %51 : vector<8x8xi32>
    %53 = arith.extui %52 : vector<8x8xi1> to vector<8x8xi32>
    %54 = arith.sitofp %53 : vector<8x8xi32> to vector<8x8xf32>
    %55 = vector.shape_cast %54 : vector<8x8xf32> to vector<1x8x8xf32>
    %c3_i32 = arith.constant 3 : i32
    %56 = vector.broadcast %c3_i32 : i32 to vector<8x8xi32>
    %57 = arith.cmpi eq, %40, %56 : vector<8x8xi32>
    %58 = arith.extui %57 : vector<8x8xi1> to vector<8x8xi32>
    %59 = arith.sitofp %58 : vector<8x8xi32> to vector<8x8xf32>
    %60 = vector.shape_cast %59 : vector<8x8xf32> to vector<1x8x8xf32>
    %c4_i32_17 = arith.constant 4 : i32
    %61 = vector.broadcast %c4_i32_17 : i32 to vector<8x8xi32>
    %62 = arith.cmpi eq, %40, %61 : vector<8x8xi32>
    %63 = arith.extui %62 : vector<8x8xi1> to vector<8x8xi32>
    %64 = arith.sitofp %63 : vector<8x8xi32> to vector<8x8xf32>
    %65 = vector.shape_cast %64 : vector<8x8xf32> to vector<1x8x8xf32>
    %c5_i32 = arith.constant 5 : i32
    %66 = vector.broadcast %c5_i32 : i32 to vector<8x8xi32>
    %67 = arith.cmpi eq, %40, %66 : vector<8x8xi32>
    %68 = arith.extui %67 : vector<8x8xi1> to vector<8x8xi32>
    %69 = arith.sitofp %68 : vector<8x8xi32> to vector<8x8xf32>
    %70 = vector.shape_cast %69 : vector<8x8xf32> to vector<1x8x8xf32>
    %c6_i32 = arith.constant 6 : i32
    %71 = vector.broadcast %c6_i32 : i32 to vector<8x8xi32>
    %72 = arith.cmpi eq, %40, %71 : vector<8x8xi32>
    %73 = arith.extui %72 : vector<8x8xi1> to vector<8x8xi32>
    %74 = arith.sitofp %73 : vector<8x8xi32> to vector<8x8xf32>
    %75 = vector.shape_cast %74 : vector<8x8xf32> to vector<1x8x8xf32>
    %c7_i32 = arith.constant 7 : i32
    %76 = vector.broadcast %c7_i32 : i32 to vector<8x8xi32>
    %77 = arith.cmpi eq, %40, %76 : vector<8x8xi32>
    %78 = arith.extui %77 : vector<8x8xi1> to vector<8x8xi32>
    %79 = arith.sitofp %78 : vector<8x8xi32> to vector<8x8xf32>
    %80 = vector.shape_cast %79 : vector<8x8xf32> to vector<1x8x8xf32>
    %c8_i32 = arith.constant 8 : i32
    %81 = vector.broadcast %c8_i32 : i32 to vector<8x8xi32>
    %82 = arith.cmpi eq, %40, %81 : vector<8x8xi32>
    %83 = arith.extui %82 : vector<8x8xi1> to vector<8x8xi32>
    %84 = arith.sitofp %83 : vector<8x8xi32> to vector<8x8xf32>
    %85 = vector.shape_cast %84 : vector<8x8xf32> to vector<1x8x8xf32>
    %c0_18 = arith.constant 0 : index
    %c0_19 = arith.constant 0 : index
    %c0_20 = arith.constant 0 : index
    %86 = vector.load %arg14[%c0_18, %c0_19, %c0_20] : memref<1x9x8xbf16, #tpu.memory_space<vmem>>, vector<1x9x8xbf16>
    %87 = vector.shape_cast %86 : vector<1x9x8xbf16> to vector<9x8xbf16>
    %c0_21 = arith.constant 0 : index
    %c0_22 = arith.constant 0 : index
    %c0_23 = arith.constant 0 : index
    %c0_24 = arith.constant 0 : index
    %88 = vector.load %arg6[%c0_21, %c0_22, %c0_23, %c0_24] : memref<1x4x32x8xbf16, #tpu.memory_space<vmem>>, vector<1x1x32x8xbf16>
    %89 = vector.shape_cast %88 : vector<1x1x32x8xbf16> to vector<32x8xbf16>
    %cst_25 = arith.constant dense<0.000000e+00> : vector<32x8xf32>
    %90 = tpu.matmul %31, %89, %cst_25 {dimension_numbers = #tpu.dot_dimension_numbers<[1], [0], [0], [1], [0, 0, 1, 1], [], []>} : vector<32x32xbf16>, vector<32x8xbf16>, vector<32x8xf32> -> vector<32x8xf32>
    %c0_26 = arith.constant 0 : index
    %c0_27 = arith.constant 0 : index
    %c0_28 = arith.constant 0 : index
    %c0_29 = arith.constant 0 : index
    %91 = vector.load %arg7[%c0_26, %c0_27, %c0_28, %c0_29] : memref<1x4x1x8xf32, #tpu.memory_space<vmem>>, vector<1x1x1x8xf32>
    %92 = vector.shape_cast %91 : vector<1x1x1x8xf32> to vector<1x8xf32>
    %93 = vector.broadcast %92 : vector<1x8xf32> to vector<32x8xf32>
    %94 = arith.addf %90, %93 : vector<32x8xf32>
    %c0_30 = arith.constant 0 : index
    %c0_31 = arith.constant 0 : index
    %c0_32 = arith.constant 0 : index
    %c0_33 = arith.constant 0 : index
    %95 = vector.load %arg8[%c0_30, %c0_31, %c0_32, %c0_33] : memref<1x4x32x8xbf16, #tpu.memory_space<vmem>>, vector<1x1x32x8xbf16>
    %96 = vector.shape_cast %95 : vector<1x1x32x8xbf16> to vector<32x8xbf16>
    %cst_34 = arith.constant dense<0.000000e+00> : vector<32x8xf32>
    %97 = tpu.matmul %31, %96, %cst_34 {dimension_numbers = #tpu.dot_dimension_numbers<[1], [0], [0], [1], [0, 0, 1, 1], [], []>} : vector<32x32xbf16>, vector<32x8xbf16>, vector<32x8xf32> -> vector<32x8xf32>
    %c0_35 = arith.constant 0 : index
    %c0_36 = arith.constant 0 : index
    %c0_37 = arith.constant 0 : index
    %c0_38 = arith.constant 0 : index
    %98 = vector.load %arg9[%c0_35, %c0_36, %c0_37, %c0_38] : memref<1x4x1x8xf32, #tpu.memory_space<vmem>>, vector<1x1x1x8xf32>
    %99 = vector.shape_cast %98 : vector<1x1x1x8xf32> to vector<1x8xf32>
    %100 = vector.broadcast %99 : vector<1x8xf32> to vector<32x8xf32>
    %101 = arith.addf %97, %100 : vector<32x8xf32>
    %c0_39 = arith.constant 0 : index
    %c0_40 = arith.constant 0 : index
    %c0_41 = arith.constant 0 : index
    %c0_42 = arith.constant 0 : index
    %102 = vector.load %arg10[%c0_39, %c0_40, %c0_41, %c0_42] : memref<1x4x32x8xbf16, #tpu.memory_space<vmem>>, vector<1x1x32x8xbf16>
    %103 = vector.shape_cast %102 : vector<1x1x32x8xbf16> to vector<32x8xbf16>
    %cst_43 = arith.constant dense<0.000000e+00> : vector<32x8xf32>
    %104 = tpu.matmul %31, %103, %cst_43 {dimension_numbers = #tpu.dot_dimension_numbers<[1], [0], [0], [1], [0, 0, 1, 1], [], []>} : vector<32x32xbf16>, vector<32x8xbf16>, vector<32x8xf32> -> vector<32x8xf32>
    %c0_44 = arith.constant 0 : index
    %c0_45 = arith.constant 0 : index
    %c0_46 = arith.constant 0 : index
    %c0_47 = arith.constant 0 : index
    %105 = vector.load %arg11[%c0_44, %c0_45, %c0_46, %c0_47] : memref<1x4x1x8xf32, #tpu.memory_space<vmem>>, vector<1x1x1x8xf32>
    %106 = vector.shape_cast %105 : vector<1x1x1x8xf32> to vector<1x8xf32>
    %107 = vector.broadcast %106 : vector<1x8xf32> to vector<32x8xf32>
    %108 = arith.addf %104, %107 : vector<32x8xf32>
    %cst_48 = arith.constant 0.353553385 : f32
    %109 = vector.broadcast %cst_48 : f32 to vector<32x8xf32>
    %110 = arith.mulf %94, %109 : vector<32x8xf32>
    %111 = arith.truncf %110 : vector<32x8xf32> to vector<32x8xbf16>
    %112 = arith.truncf %101 : vector<32x8xf32> to vector<32x8xbf16>
    %113 = arith.truncf %108 : vector<32x8xf32> to vector<32x8xbf16>
    %114 = vector.shape_cast %111 : vector<32x8xbf16> to vector<4x8x8xbf16>
    %115 = vector.shape_cast %112 : vector<32x8xbf16> to vector<4x8x8xbf16>
    %116 = vector.shape_cast %113 : vector<32x8xbf16> to vector<4x8x8xbf16>
    "tpu.trace_start"() <{level = 10 : i32, message = "btd,bsd->bts"}> : () -> ()
    %cst_49 = arith.constant dense<0.000000e+00> : vector<4x8x8xf32>
    %117 = tpu.matmul %114, %115, %cst_49 {dimension_numbers = #tpu.dot_dimension_numbers<[2], [2], [1], [1], [0, 0, 0, 1, 1, 1], [0], [0]>} : vector<4x8x8xbf16>, vector<4x8x8xbf16>, vector<4x8x8xf32> -> vector<4x8x8xf32>
    "tpu.trace_stop"() : () -> ()
    %cst_50 = arith.constant dense<0.000000e+00> : vector<32x9xf32>
    %118 = tpu.matmul %111, %87, %cst_50 {dimension_numbers = #tpu.dot_dimension_numbers<[1], [1], [0], [0], [0, 0, 1, 0], [], []>} : vector<32x8xbf16>, vector<9x8xbf16>, vector<32x9xf32> -> vector<32x9xf32>
    %119 = vector.shape_cast %118 : vector<32x9xf32> to vector<4x8x9xf32>
    %120 = vector.extract_strided_slice %119 {offsets = [0, 0, 0], sizes = [4, 8, 1], strides = [1, 1, 1]} : vector<4x8x9xf32> to vector<4x8x1xf32>
    %121 = vector.broadcast %45 : vector<1x8x8xf32> to vector<4x8x8xf32>
    %122 = vector.broadcast %120 : vector<4x8x1xf32> to vector<4x8x8xf32>
    %123 = arith.mulf %121, %122 : vector<4x8x8xf32>
    %124 = vector.extract_strided_slice %119 {offsets = [0, 0, 1], sizes = [4, 8, 1], strides = [1, 1, 1]} : vector<4x8x9xf32> to vector<4x8x1xf32>
    %125 = vector.broadcast %50 : vector<1x8x8xf32> to vector<4x8x8xf32>
    %126 = vector.broadcast %124 : vector<4x8x1xf32> to vector<4x8x8xf32>
    %127 = arith.mulf %125, %126 : vector<4x8x8xf32>
    %128 = vector.extract_strided_slice %119 {offsets = [0, 0, 2], sizes = [4, 8, 1], strides = [1, 1, 1]} : vector<4x8x9xf32> to vector<4x8x1xf32>
    %129 = vector.broadcast %55 : vector<1x8x8xf32> to vector<4x8x8xf32>
    %130 = vector.broadcast %128 : vector<4x8x1xf32> to vector<4x8x8xf32>
    %131 = arith.mulf %129, %130 : vector<4x8x8xf32>
    %132 = vector.extract_strided_slice %119 {offsets = [0, 0, 3], sizes = [4, 8, 1], strides = [1, 1, 1]} : vector<4x8x9xf32> to vector<4x8x1xf32>
    %133 = vector.broadcast %60 : vector<1x8x8xf32> to vector<4x8x8xf32>
    %134 = vector.broadcast %132 : vector<4x8x1xf32> to vector<4x8x8xf32>
    %135 = arith.mulf %133, %134 : vector<4x8x8xf32>
    %136 = vector.extract_strided_slice %119 {offsets = [0, 0, 4], sizes = [4, 8, 1], strides = [1, 1, 1]} : vector<4x8x9xf32> to vector<4x8x1xf32>
    %137 = vector.broadcast %65 : vector<1x8x8xf32> to vector<4x8x8xf32>
    %138 = vector.broadcast %136 : vector<4x8x1xf32> to vector<4x8x8xf32>
    %139 = arith.mulf %137, %138 : vector<4x8x8xf32>
    %140 = vector.extract_strided_slice %119 {offsets = [0, 0, 5], sizes = [4, 8, 1], strides = [1, 1, 1]} : vector<4x8x9xf32> to vector<4x8x1xf32>
    %141 = vector.broadcast %70 : vector<1x8x8xf32> to vector<4x8x8xf32>
    %142 = vector.broadcast %140 : vector<4x8x1xf32> to vector<4x8x8xf32>
    %143 = arith.mulf %141, %142 : vector<4x8x8xf32>
    %144 = vector.extract_strided_slice %119 {offsets = [0, 0, 6], sizes = [4, 8, 1], strides = [1, 1, 1]} : vector<4x8x9xf32> to vector<4x8x1xf32>
    %145 = vector.broadcast %75 : vector<1x8x8xf32> to vector<4x8x8xf32>
    %146 = vector.broadcast %144 : vector<4x8x1xf32> to vector<4x8x8xf32>
    %147 = arith.mulf %145, %146 : vector<4x8x8xf32>
    %148 = vector.extract_strided_slice %119 {offsets = [0, 0, 7], sizes = [4, 8, 1], strides = [1, 1, 1]} : vector<4x8x9xf32> to vector<4x8x1xf32>
    %149 = vector.broadcast %80 : vector<1x8x8xf32> to vector<4x8x8xf32>
    %150 = vector.broadcast %148 : vector<4x8x1xf32> to vector<4x8x8xf32>
    %151 = arith.mulf %149, %150 : vector<4x8x8xf32>
    %152 = vector.extract_strided_slice %119 {offsets = [0, 0, 8], sizes = [4, 8, 1], strides = [1, 1, 1]} : vector<4x8x9xf32> to vector<4x8x1xf32>
    %153 = vector.broadcast %85 : vector<1x8x8xf32> to vector<4x8x8xf32>
    %154 = vector.broadcast %152 : vector<4x8x1xf32> to vector<4x8x8xf32>
    %155 = arith.mulf %153, %154 : vector<4x8x8xf32>
    %156 = arith.addf %123, %127 : vector<4x8x8xf32>
    %157 = arith.addf %131, %135 : vector<4x8x8xf32>
    %158 = arith.addf %139, %143 : vector<4x8x8xf32>
    %159 = arith.addf %147, %151 : vector<4x8x8xf32>
    %160 = arith.addf %156, %157 : vector<4x8x8xf32>
    %161 = arith.addf %158, %159 : vector<4x8x8xf32>
    %162 = arith.addf %160, %161 : vector<4x8x8xf32>
    %163 = arith.addf %162, %155 : vector<4x8x8xf32>
    %164 = arith.addf %117, %163 : vector<4x8x8xf32>
    %165 = vector.broadcast %4 : vector<4x1x8xf32> to vector<4x8x8xf32>
    %166 = arith.addf %164, %165 : vector<4x8x8xf32>
    %cst_51 = arith.constant dense<0xFF800000> : vector<4x8xf32>
    %167 = vector.multi_reduction <maximumf>, %166, %cst_51 [2] : vector<4x8x8xf32> to vector<4x8xf32>
    %168 = vector.shape_cast %167 : vector<4x8xf32> to vector<4x8x1xf32>
    %169 = vector.broadcast %168 : vector<4x8x1xf32> to vector<4x8x8xf32>
    %170 = arith.subf %166, %169 : vector<4x8x8xf32>
    %171 = math.exp %170 : vector<4x8x8xf32>
    %cst_52 = arith.constant dense<0.000000e+00> : vector<4x8xf32>
    %172 = vector.multi_reduction <add>, %171, %cst_52 [2] : vector<4x8x8xf32> to vector<4x8xf32>
    %173 = vector.shape_cast %172 : vector<4x8xf32> to vector<4x8x1xf32>
    %174 = tpu.reciprocal %173 : vector<4x8x1xf32> -> vector<4x8x1xf32>
    %175 = vector.broadcast %174 : vector<4x8x1xf32> to vector<4x8x8xf32>
    %176 = arith.mulf %171, %175 : vector<4x8x8xf32>
    %177 = arith.truncf %176 : vector<4x8x8xf32> to vector<4x8x8xbf16>
    "tpu.trace_start"() <{level = 10 : i32, message = "bts,bsd->btd"}> : () -> ()
    %cst_53 = arith.constant dense<0.000000e+00> : vector<4x8x8xf32>
    %178 = tpu.matmul %177, %116, %cst_53 {dimension_numbers = #tpu.dot_dimension_numbers<[2], [1], [1], [2], [0, 0, 0, 1, 1, 2], [0], [0]>} : vector<4x8x8xbf16>, vector<4x8x8xbf16>, vector<4x8x8xf32> -> vector<4x8x8xf32>
    "tpu.trace_stop"() : () -> ()
    %179 = vector.shape_cast %178 : vector<4x8x8xf32> to vector<32x8xf32>
    %180 = arith.truncf %179 : vector<32x8xf32> to vector<32x8xbf16>
    %c0_54 = arith.constant 0 : index
    %c0_55 = arith.constant 0 : index
    %181 = vector.load %arg25[%c0_54, %c0_55] : memref<32x32xbf16, #tpu.memory_space<vmem>>, vector<32x8xbf16>
    tpu.vector_store %arg25[%c0_54, %c0_55], %180 {strides = array<i32>} : memref<32x32xbf16, #tpu.memory_space<vmem>>, vector<32x8xbf16>,
    %c0_56 = arith.constant 0 : index
    %c1 = arith.constant 1 : index
    %c0_57 = arith.constant 0 : index
    %c0_58 = arith.constant 0 : index
    %182 = vector.load %arg6[%c0_56, %c1, %c0_57, %c0_58] : memref<1x4x32x8xbf16, #tpu.memory_space<vmem>>, vector<1x1x32x8xbf16>
    %183 = vector.shape_cast %182 : vector<1x1x32x8xbf16> to vector<32x8xbf16>
    %cst_59 = arith.constant dense<0.000000e+00> : vector<32x8xf32>
    %184 = tpu.matmul %31, %183, %cst_59 {dimension_numbers = #tpu.dot_dimension_numbers<[1], [0], [0], [1], [0, 0, 1, 1], [], []>} : vector<32x32xbf16>, vector<32x8xbf16>, vector<32x8xf32> -> vector<32x8xf32>
    %c0_60 = arith.constant 0 : index
    %c1_61 = arith.constant 1 : index
    %c0_62 = arith.constant 0 : index
    %c0_63 = arith.constant 0 : index
    %185 = vector.load %arg7[%c0_60, %c1_61, %c0_62, %c0_63] : memref<1x4x1x8xf32, #tpu.memory_space<vmem>>, vector<1x1x1x8xf32>
    %186 = vector.shape_cast %185 : vector<1x1x1x8xf32> to vector<1x8xf32>
    %187 = vector.broadcast %186 : vector<1x8xf32> to vector<32x8xf32>
    %188 = arith.addf %184, %187 : vector<32x8xf32>
    %c0_64 = arith.constant 0 : index
    %c1_65 = arith.constant 1 : index
    %c0_66 = arith.constant 0 : index
    %c0_67 = arith.constant 0 : index
    %189 = vector.load %arg8[%c0_64, %c1_65, %c0_66, %c0_67] : memref<1x4x32x8xbf16, #tpu.memory_space<vmem>>, vector<1x1x32x8xbf16>
    %190 = vector.shape_cast %189 : vector<1x1x32x8xbf16> to vector<32x8xbf16>
    %cst_68 = arith.constant dense<0.000000e+00> : vector<32x8xf32>
    %191 = tpu.matmul %31, %190, %cst_68 {dimension_numbers = #tpu.dot_dimension_numbers<[1], [0], [0], [1], [0, 0, 1, 1], [], []>} : vector<32x32xbf16>, vector<32x8xbf16>, vector<32x8xf32> -> vector<32x8xf32>
    %c0_69 = arith.constant 0 : index
    %c1_70 = arith.constant 1 : index
    %c0_71 = arith.constant 0 : index
    %c0_72 = arith.constant 0 : index
    %192 = vector.load %arg9[%c0_69, %c1_70, %c0_71, %c0_72] : memref<1x4x1x8xf32, #tpu.memory_space<vmem>>, vector<1x1x1x8xf32>
    %193 = vector.shape_cast %192 : vector<1x1x1x8xf32> to vector<1x8xf32>
    %194 = vector.broadcast %193 : vector<1x8xf32> to vector<32x8xf32>
    %195 = arith.addf %191, %194 : vector<32x8xf32>
    %c0_73 = arith.constant 0 : index
    %c1_74 = arith.constant 1 : index
    %c0_75 = arith.constant 0 : index
    %c0_76 = arith.constant 0 : index
    %196 = vector.load %arg10[%c0_73, %c1_74, %c0_75, %c0_76] : memref<1x4x32x8xbf16, #tpu.memory_space<vmem>>, vector<1x1x32x8xbf16>
    %197 = vector.shape_cast %196 : vector<1x1x32x8xbf16> to vector<32x8xbf16>
    %cst_77 = arith.constant dense<0.000000e+00> : vector<32x8xf32>
    %198 = tpu.matmul %31, %197, %cst_77 {dimension_numbers = #tpu.dot_dimension_numbers<[1], [0], [0], [1], [0, 0, 1, 1], [], []>} : vector<32x32xbf16>, vector<32x8xbf16>, vector<32x8xf32> -> vector<32x8xf32>
    %c0_78 = arith.constant 0 : index
    %c1_79 = arith.constant 1 : index
    %c0_80 = arith.constant 0 : index
    %c0_81 = arith.constant 0 : index
    %199 = vector.load %arg11[%c0_78, %c1_79, %c0_80, %c0_81] : memref<1x4x1x8xf32, #tpu.memory_space<vmem>>, vector<1x1x1x8xf32>
    %200 = vector.shape_cast %199 : vector<1x1x1x8xf32> to vector<1x8xf32>
    %201 = vector.broadcast %200 : vector<1x8xf32> to vector<32x8xf32>
    %202 = arith.addf %198, %201 : vector<32x8xf32>
    %cst_82 = arith.constant 0.353553385 : f32
    %203 = vector.broadcast %cst_82 : f32 to vector<32x8xf32>
    %204 = arith.mulf %188, %203 : vector<32x8xf32>
    %205 = arith.truncf %204 : vector<32x8xf32> to vector<32x8xbf16>
    %206 = arith.truncf %195 : vector<32x8xf32> to vector<32x8xbf16>
    %207 = arith.truncf %202 : vector<32x8xf32> to vector<32x8xbf16>
    %208 = vector.shape_cast %205 : vector<32x8xbf16> to vector<4x8x8xbf16>
    %209 = vector.shape_cast %206 : vector<32x8xbf16> to vector<4x8x8xbf16>
    %210 = vector.shape_cast %207 : vector<32x8xbf16> to vector<4x8x8xbf16>
    "tpu.trace_start"() <{level = 10 : i32, message = "btd,bsd->bts"}> : () -> ()
    %cst_83 = arith.constant dense<0.000000e+00> : vector<4x8x8xf32>
    %211 = tpu.matmul %208, %209, %cst_83 {dimension_numbers = #tpu.dot_dimension_numbers<[2], [2], [1], [1], [0, 0, 0, 1, 1, 1], [0], [0]>} : vector<4x8x8xbf16>, vector<4x8x8xbf16>, vector<4x8x8xf32> -> vector<4x8x8xf32>
    "tpu.trace_stop"() : () -> ()
    %cst_84 = arith.constant dense<0.000000e+00> : vector<32x9xf32>
    %212 = tpu.matmul %205, %87, %cst_84 {dimension_numbers = #tpu.dot_dimension_numbers<[1], [1], [0], [0], [0, 0, 1, 0], [], []>} : vector<32x8xbf16>, vector<9x8xbf16>, vector<32x9xf32> -> vector<32x9xf32>
    %213 = vector.shape_cast %212 : vector<32x9xf32> to vector<4x8x9xf32>
    %214 = vector.extract_strided_slice %213 {offsets = [0, 0, 0], sizes = [4, 8, 1], strides = [1, 1, 1]} : vector<4x8x9xf32> to vector<4x8x1xf32>
    %215 = vector.broadcast %45 : vector<1x8x8xf32> to vector<4x8x8xf32>
    %216 = vector.broadcast %214 : vector<4x8x1xf32> to vector<4x8x8xf32>
    %217 = arith.mulf %215, %216 : vector<4x8x8xf32>
    %218 = vector.extract_strided_slice %213 {offsets = [0, 0, 1], sizes = [4, 8, 1], strides = [1, 1, 1]} : vector<4x8x9xf32> to vector<4x8x1xf32>
    %219 = vector.broadcast %50 : vector<1x8x8xf32> to vector<4x8x8xf32>
    %220 = vector.broadcast %218 : vector<4x8x1xf32> to vector<4x8x8xf32>
    %221 = arith.mulf %219, %220 : vector<4x8x8xf32>
    %222 = vector.extract_strided_slice %213 {offsets = [0, 0, 2], sizes = [4, 8, 1], strides = [1, 1, 1]} : vector<4x8x9xf32> to vector<4x8x1xf32>
    %223 = vector.broadcast %55 : vector<1x8x8xf32> to vector<4x8x8xf32>
    %224 = vector.broadcast %222 : vector<4x8x1xf32> to vector<4x8x8xf32>
    %225 = arith.mulf %223, %224 : vector<4x8x8xf32>
    %226 = vector.extract_strided_slice %213 {offsets = [0, 0, 3], sizes = [4, 8, 1], strides = [1, 1, 1]} : vector<4x8x9xf32> to vector<4x8x1xf32>
    %227 = vector.broadcast %60 : vector<1x8x8xf32> to vector<4x8x8xf32>
    %228 = vector.broadcast %226 : vector<4x8x1xf32> to vector<4x8x8xf32>
    %229 = arith.mulf %227, %228 : vector<4x8x8xf32>
    %230 = vector.extract_strided_slice %213 {offsets = [0, 0, 4], sizes = [4, 8, 1], strides = [1, 1, 1]} : vector<4x8x9xf32> to vector<4x8x1xf32>
    %231 = vector.broadcast %65 : vector<1x8x8xf32> to vector<4x8x8xf32>
    %232 = vector.broadcast %230 : vector<4x8x1xf32> to vector<4x8x8xf32>
    %233 = arith.mulf %231, %232 : vector<4x8x8xf32>
    %234 = vector.extract_strided_slice %213 {offsets = [0, 0, 5], sizes = [4, 8, 1], strides = [1, 1, 1]} : vector<4x8x9xf32> to vector<4x8x1xf32>
    %235 = vector.broadcast %70 : vector<1x8x8xf32> to vector<4x8x8xf32>
    %236 = vector.broadcast %234 : vector<4x8x1xf32> to vector<4x8x8xf32>
    %237 = arith.mulf %235, %236 : vector<4x8x8xf32>
    %238 = vector.extract_strided_slice %213 {offsets = [0, 0, 6], sizes = [4, 8, 1], strides = [1, 1, 1]} : vector<4x8x9xf32> to vector<4x8x1xf32>
    %239 = vector.broadcast %75 : vector<1x8x8xf32> to vector<4x8x8xf32>
    %240 = vector.broadcast %238 : vector<4x8x1xf32> to vector<4x8x8xf32>
    %241 = arith.mulf %239, %240 : vector<4x8x8xf32>
    %242 = vector.extract_strided_slice %213 {offsets = [0, 0, 7], sizes = [4, 8, 1], strides = [1, 1, 1]} : vector<4x8x9xf32> to vector<4x8x1xf32>
    %243 = vector.broadcast %80 : vector<1x8x8xf32> to vector<4x8x8xf32>
    %244 = vector.broadcast %242 : vector<4x8x1xf32> to vector<4x8x8xf32>
    %245 = arith.mulf %243, %244 : vector<4x8x8xf32>
    %246 = vector.extract_strided_slice %213 {offsets = [0, 0, 8], sizes = [4, 8, 1], strides = [1, 1, 1]} : vector<4x8x9xf32> to vector<4x8x1xf32>
    %247 = vector.broadcast %85 : vector<1x8x8xf32> to vector<4x8x8xf32>
    %248 = vector.broadcast %246 : vector<4x8x1xf32> to vector<4x8x8xf32>
    %249 = arith.mulf %247, %248 : vector<4x8x8xf32>
    %250 = arith.addf %217, %221 : vector<4x8x8xf32>
    %251 = arith.addf %225, %229 : vector<4x8x8xf32>
    %252 = arith.addf %233, %237 : vector<4x8x8xf32>
    %253 = arith.addf %241, %245 : vector<4x8x8xf32>
    %254 = arith.addf %250, %251 : vector<4x8x8xf32>
    %255 = arith.addf %252, %253 : vector<4x8x8xf32>
    %256 = arith.addf %254, %255 : vector<4x8x8xf32>
    %257 = arith.addf %256, %249 : vector<4x8x8xf32>
    %258 = arith.addf %211, %257 : vector<4x8x8xf32>
    %259 = vector.broadcast %4 : vector<4x1x8xf32> to vector<4x8x8xf32>
    %260 = arith.addf %258, %259 : vector<4x8x8xf32>
    %cst_85 = arith.constant dense<0xFF800000> : vector<4x8xf32>
    %261 = vector.multi_reduction <maximumf>, %260, %cst_85 [2] : vector<4x8x8xf32> to vector<4x8xf32>
    %262 = vector.shape_cast %261 : vector<4x8xf32> to vector<4x8x1xf32>
    %263 = vector.broadcast %262 : vector<4x8x1xf32> to vector<4x8x8xf32>
    %264 = arith.subf %260, %263 : vector<4x8x8xf32>
    %265 = math.exp %264 : vector<4x8x8xf32>
    %cst_86 = arith.constant dense<0.000000e+00> : vector<4x8xf32>
    %266 = vector.multi_reduction <add>, %265, %cst_86 [2] : vector<4x8x8xf32> to vector<4x8xf32>
    %267 = vector.shape_cast %266 : vector<4x8xf32> to vector<4x8x1xf32>
    %268 = tpu.reciprocal %267 : vector<4x8x1xf32> -> vector<4x8x1xf32>
    %269 = vector.broadcast %268 : vector<4x8x1xf32> to vector<4x8x8xf32>
    %270 = arith.mulf %265, %269 : vector<4x8x8xf32>
    %271 = arith.truncf %270 : vector<4x8x8xf32> to vector<4x8x8xbf16>
    "tpu.trace_start"() <{level = 10 : i32, message = "bts,bsd->btd"}> : () -> ()
    %cst_87 = arith.constant dense<0.000000e+00> : vector<4x8x8xf32>
    %272 = tpu.matmul %271, %210, %cst_87 {dimension_numbers = #tpu.dot_dimension_numbers<[2], [1], [1], [2], [0, 0, 0, 1, 1, 2], [0], [0]>} : vector<4x8x8xbf16>, vector<4x8x8xbf16>, vector<4x8x8xf32> -> vector<4x8x8xf32>
    "tpu.trace_stop"() : () -> ()
    %273 = vector.shape_cast %272 : vector<4x8x8xf32> to vector<32x8xf32>
    %274 = arith.truncf %273 : vector<32x8xf32> to vector<32x8xbf16>
    %c0_88 = arith.constant 0 : index
    %c8 = arith.constant 8 : index
    %275 = vector.load %arg25[%c0_88, %c8] : memref<32x32xbf16, #tpu.memory_space<vmem>>, vector<32x8xbf16>
    tpu.vector_store %arg25[%c0_88, %c8], %274 {strides = array<i32>} : memref<32x32xbf16, #tpu.memory_space<vmem>>, vector<32x8xbf16>,
    %c0_89 = arith.constant 0 : index
    %c2 = arith.constant 2 : index
    %c0_90 = arith.constant 0 : index
    %c0_91 = arith.constant 0 : index
    %276 = vector.load %arg6[%c0_89, %c2, %c0_90, %c0_91] : memref<1x4x32x8xbf16, #tpu.memory_space<vmem>>, vector<1x1x32x8xbf16>
    %277 = vector.shape_cast %276 : vector<1x1x32x8xbf16> to vector<32x8xbf16>
    %cst_92 = arith.constant dense<0.000000e+00> : vector<32x8xf32>
    %278 = tpu.matmul %31, %277, %cst_92 {dimension_numbers = #tpu.dot_dimension_numbers<[1], [0], [0], [1], [0, 0, 1, 1], [], []>} : vector<32x32xbf16>, vector<32x8xbf16>, vector<32x8xf32> -> vector<32x8xf32>
    %c0_93 = arith.constant 0 : index
    %c2_94 = arith.constant 2 : index
    %c0_95 = arith.constant 0 : index
    %c0_96 = arith.constant 0 : index
    %279 = vector.load %arg7[%c0_93, %c2_94, %c0_95, %c0_96] : memref<1x4x1x8xf32, #tpu.memory_space<vmem>>, vector<1x1x1x8xf32>
    %280 = vector.shape_cast %279 : vector<1x1x1x8xf32> to vector<1x8xf32>
    %281 = vector.broadcast %280 : vector<1x8xf32> to vector<32x8xf32>
    %282 = arith.addf %278, %281 : vector<32x8xf32>
    %c0_97 = arith.constant 0 : index
    %c2_98 = arith.constant 2 : index
    %c0_99 = arith.constant 0 : index
    %c0_100 = arith.constant 0 : index
    %283 = vector.load %arg8[%c0_97, %c2_98, %c0_99, %c0_100] : memref<1x4x32x8xbf16, #tpu.memory_space<vmem>>, vector<1x1x32x8xbf16>
    %284 = vector.shape_cast %283 : vector<1x1x32x8xbf16> to vector<32x8xbf16>
    %cst_101 = arith.constant dense<0.000000e+00> : vector<32x8xf32>
    %285 = tpu.matmul %31, %284, %cst_101 {dimension_numbers = #tpu.dot_dimension_numbers<[1], [0], [0], [1], [0, 0, 1, 1], [], []>} : vector<32x32xbf16>, vector<32x8xbf16>, vector<32x8xf32> -> vector<32x8xf32>
    %c0_102 = arith.constant 0 : index
    %c2_103 = arith.constant 2 : index
    %c0_104 = arith.constant 0 : index
    %c0_105 = arith.constant 0 : index
    %286 = vector.load %arg9[%c0_102, %c2_103, %c0_104, %c0_105] : memref<1x4x1x8xf32, #tpu.memory_space<vmem>>, vector<1x1x1x8xf32>
    %287 = vector.shape_cast %286 : vector<1x1x1x8xf32> to vector<1x8xf32>
    %288 = vector.broadcast %287 : vector<1x8xf32> to vector<32x8xf32>
    %289 = arith.addf %285, %288 : vector<32x8xf32>
    %c0_106 = arith.constant 0 : index
    %c2_107 = arith.constant 2 : index
    %c0_108 = arith.constant 0 : index
    %c0_109 = arith.constant 0 : index
    %290 = vector.load %arg10[%c0_106, %c2_107, %c0_108, %c0_109] : memref<1x4x32x8xbf16, #tpu.memory_space<vmem>>, vector<1x1x32x8xbf16>
    %291 = vector.shape_cast %290 : vector<1x1x32x8xbf16> to vector<32x8xbf16>
    %cst_110 = arith.constant dense<0.000000e+00> : vector<32x8xf32>
    %292 = tpu.matmul %31, %291, %cst_110 {dimension_numbers = #tpu.dot_dimension_numbers<[1], [0], [0], [1], [0, 0, 1, 1], [], []>} : vector<32x32xbf16>, vector<32x8xbf16>, vector<32x8xf32> -> vector<32x8xf32>
    %c0_111 = arith.constant 0 : index
    %c2_112 = arith.constant 2 : index
    %c0_113 = arith.constant 0 : index
    %c0_114 = arith.constant 0 : index
    %293 = vector.load %arg11[%c0_111, %c2_112, %c0_113, %c0_114] : memref<1x4x1x8xf32, #tpu.memory_space<vmem>>, vector<1x1x1x8xf32>
    %294 = vector.shape_cast %293 : vector<1x1x1x8xf32> to vector<1x8xf32>
    %295 = vector.broadcast %294 : vector<1x8xf32> to vector<32x8xf32>
    %296 = arith.addf %292, %295 : vector<32x8xf32>
    %cst_115 = arith.constant 0.353553385 : f32
    %297 = vector.broadcast %cst_115 : f32 to vector<32x8xf32>
    %298 = arith.mulf %282, %297 : vector<32x8xf32>
    %299 = arith.truncf %298 : vector<32x8xf32> to vector<32x8xbf16>
    %300 = arith.truncf %289 : vector<32x8xf32> to vector<32x8xbf16>
    %301 = arith.truncf %296 : vector<32x8xf32> to vector<32x8xbf16>
    %302 = vector.shape_cast %299 : vector<32x8xbf16> to vector<4x8x8xbf16>
    %303 = vector.shape_cast %300 : vector<32x8xbf16> to vector<4x8x8xbf16>
    %304 = vector.shape_cast %301 : vector<32x8xbf16> to vector<4x8x8xbf16>
    "tpu.trace_start"() <{level = 10 : i32, message = "btd,bsd->bts"}> : () -> ()
    %cst_116 = arith.constant dense<0.000000e+00> : vector<4x8x8xf32>
    %305 = tpu.matmul %302, %303, %cst_116 {dimension_numbers = #tpu.dot_dimension_numbers<[2], [2], [1], [1], [0, 0, 0, 1, 1, 1], [0], [0]>} : vector<4x8x8xbf16>, vector<4x8x8xbf16>, vector<4x8x8xf32> -> vector<4x8x8xf32>
    "tpu.trace_stop"() : () -> ()
    %cst_117 = arith.constant dense<0.000000e+00> : vector<32x9xf32>
    %306 = tpu.matmul %299, %87, %cst_117 {dimension_numbers = #tpu.dot_dimension_numbers<[1], [1], [0], [0], [0, 0, 1, 0], [], []>} : vector<32x8xbf16>, vector<9x8xbf16>, vector<32x9xf32> -> vector<32x9xf32>
    %307 = vector.shape_cast %306 : vector<32x9xf32> to vector<4x8x9xf32>
    %308 = vector.extract_strided_slice %307 {offsets = [0, 0, 0], sizes = [4, 8, 1], strides = [1, 1, 1]} : vector<4x8x9xf32> to vector<4x8x1xf32>
    %309 = vector.broadcast %45 : vector<1x8x8xf32> to vector<4x8x8xf32>
    %310 = vector.broadcast %308 : vector<4x8x1xf32> to vector<4x8x8xf32>
    %311 = arith.mulf %309, %310 : vector<4x8x8xf32>
    %312 = vector.extract_strided_slice %307 {offsets = [0, 0, 1], sizes = [4, 8, 1], strides = [1, 1, 1]} : vector<4x8x9xf32> to vector<4x8x1xf32>
    %313 = vector.broadcast %50 : vector<1x8x8xf32> to vector<4x8x8xf32>
    %314 = vector.broadcast %312 : vector<4x8x1xf32> to vector<4x8x8xf32>
    %315 = arith.mulf %313, %314 : vector<4x8x8xf32>
    %316 = vector.extract_strided_slice %307 {offsets = [0, 0, 2], sizes = [4, 8, 1], strides = [1, 1, 1]} : vector<4x8x9xf32> to vector<4x8x1xf32>
    %317 = vector.broadcast %55 : vector<1x8x8xf32> to vector<4x8x8xf32>
    %318 = vector.broadcast %316 : vector<4x8x1xf32> to vector<4x8x8xf32>
    %319 = arith.mulf %317, %318 : vector<4x8x8xf32>
    %320 = vector.extract_strided_slice %307 {offsets = [0, 0, 3], sizes = [4, 8, 1], strides = [1, 1, 1]} : vector<4x8x9xf32> to vector<4x8x1xf32>
    %321 = vector.broadcast %60 : vector<1x8x8xf32> to vector<4x8x8xf32>
    %322 = vector.broadcast %320 : vector<4x8x1xf32> to vector<4x8x8xf32>
    %323 = arith.mulf %321, %322 : vector<4x8x8xf32>
    %324 = vector.extract_strided_slice %307 {offsets = [0, 0, 4], sizes = [4, 8, 1], strides = [1, 1, 1]} : vector<4x8x9xf32> to vector<4x8x1xf32>
    %325 = vector.broadcast %65 : vector<1x8x8xf32> to vector<4x8x8xf32>
    %326 = vector.broadcast %324 : vector<4x8x1xf32> to vector<4x8x8xf32>
    %327 = arith.mulf %325, %326 : vector<4x8x8xf32>
    %328 = vector.extract_strided_slice %307 {offsets = [0, 0, 5], sizes = [4, 8, 1], strides = [1, 1, 1]} : vector<4x8x9xf32> to vector<4x8x1xf32>
    %329 = vector.broadcast %70 : vector<1x8x8xf32> to vector<4x8x8xf32>
    %330 = vector.broadcast %328 : vector<4x8x1xf32> to vector<4x8x8xf32>
    %331 = arith.mulf %329, %330 : vector<4x8x8xf32>
    %332 = vector.extract_strided_slice %307 {offsets = [0, 0, 6], sizes = [4, 8, 1], strides = [1, 1, 1]} : vector<4x8x9xf32> to vector<4x8x1xf32>
    %333 = vector.broadcast %75 : vector<1x8x8xf32> to vector<4x8x8xf32>
    %334 = vector.broadcast %332 : vector<4x8x1xf32> to vector<4x8x8xf32>
    %335 = arith.mulf %333, %334 : vector<4x8x8xf32>
    %336 = vector.extract_strided_slice %307 {offsets = [0, 0, 7], sizes = [4, 8, 1], strides = [1, 1, 1]} : vector<4x8x9xf32> to vector<4x8x1xf32>
    %337 = vector.broadcast %80 : vector<1x8x8xf32> to vector<4x8x8xf32>
    %338 = vector.broadcast %336 : vector<4x8x1xf32> to vector<4x8x8xf32>
    %339 = arith.mulf %337, %338 : vector<4x8x8xf32>
    %340 = vector.extract_strided_slice %307 {offsets = [0, 0, 8], sizes = [4, 8, 1], strides = [1, 1, 1]} : vector<4x8x9xf32> to vector<4x8x1xf32>
    %341 = vector.broadcast %85 : vector<1x8x8xf32> to vector<4x8x8xf32>
    %342 = vector.broadcast %340 : vector<4x8x1xf32> to vector<4x8x8xf32>
    %343 = arith.mulf %341, %342 : vector<4x8x8xf32>
    %344 = arith.addf %311, %315 : vector<4x8x8xf32>
    %345 = arith.addf %319, %323 : vector<4x8x8xf32>
    %346 = arith.addf %327, %331 : vector<4x8x8xf32>
    %347 = arith.addf %335, %339 : vector<4x8x8xf32>
    %348 = arith.addf %344, %345 : vector<4x8x8xf32>
    %349 = arith.addf %346, %347 : vector<4x8x8xf32>
    %350 = arith.addf %348, %349 : vector<4x8x8xf32>
    %351 = arith.addf %350, %343 : vector<4x8x8xf32>
    %352 = arith.addf %305, %351 : vector<4x8x8xf32>
    %353 = vector.broadcast %4 : vector<4x1x8xf32> to vector<4x8x8xf32>
    %354 = arith.addf %352, %353 : vector<4x8x8xf32>
    %cst_118 = arith.constant dense<0xFF800000> : vector<4x8xf32>
    %355 = vector.multi_reduction <maximumf>, %354, %cst_118 [2] : vector<4x8x8xf32> to vector<4x8xf32>
    %356 = vector.shape_cast %355 : vector<4x8xf32> to vector<4x8x1xf32>
    %357 = vector.broadcast %356 : vector<4x8x1xf32> to vector<4x8x8xf32>
    %358 = arith.subf %354, %357 : vector<4x8x8xf32>
    %359 = math.exp %358 : vector<4x8x8xf32>
    %cst_119 = arith.constant dense<0.000000e+00> : vector<4x8xf32>
    %360 = vector.multi_reduction <add>, %359, %cst_119 [2] : vector<4x8x8xf32> to vector<4x8xf32>
    %361 = vector.shape_cast %360 : vector<4x8xf32> to vector<4x8x1xf32>
    %362 = tpu.reciprocal %361 : vector<4x8x1xf32> -> vector<4x8x1xf32>
    %363 = vector.broadcast %362 : vector<4x8x1xf32> to vector<4x8x8xf32>
    %364 = arith.mulf %359, %363 : vector<4x8x8xf32>
    %365 = arith.truncf %364 : vector<4x8x8xf32> to vector<4x8x8xbf16>
    "tpu.trace_start"() <{level = 10 : i32, message = "bts,bsd->btd"}> : () -> ()
    %cst_120 = arith.constant dense<0.000000e+00> : vector<4x8x8xf32>
    %366 = tpu.matmul %365, %304, %cst_120 {dimension_numbers = #tpu.dot_dimension_numbers<[2], [1], [1], [2], [0, 0, 0, 1, 1, 2], [0], [0]>} : vector<4x8x8xbf16>, vector<4x8x8xbf16>, vector<4x8x8xf32> -> vector<4x8x8xf32>
    "tpu.trace_stop"() : () -> ()
    %367 = vector.shape_cast %366 : vector<4x8x8xf32> to vector<32x8xf32>
    %368 = arith.truncf %367 : vector<32x8xf32> to vector<32x8xbf16>
    %c0_121 = arith.constant 0 : index
    %c16 = arith.constant 16 : index
    %369 = vector.load %arg25[%c0_121, %c16] : memref<32x32xbf16, #tpu.memory_space<vmem>>, vector<32x8xbf16>
    tpu.vector_store %arg25[%c0_121, %c16], %368 {strides = array<i32>} : memref<32x32xbf16, #tpu.memory_space<vmem>>, vector<32x8xbf16>,
    %c0_122 = arith.constant 0 : index
    %c3 = arith.constant 3 : index
    %c0_123 = arith.constant 0 : index
    %c0_124 = arith.constant 0 : index
    %370 = vector.load %arg6[%c0_122, %c3, %c0_123, %c0_124] : memref<1x4x32x8xbf16, #tpu.memory_space<vmem>>, vector<1x1x32x8xbf16>
    %371 = vector.shape_cast %370 : vector<1x1x32x8xbf16> to vector<32x8xbf16>
    %cst_125 = arith.constant dense<0.000000e+00> : vector<32x8xf32>
    %372 = tpu.matmul %31, %371, %cst_125 {dimension_numbers = #tpu.dot_dimension_numbers<[1], [0], [0], [1], [0, 0, 1, 1], [], []>} : vector<32x32xbf16>, vector<32x8xbf16>, vector<32x8xf32> -> vector<32x8xf32>
    %c0_126 = arith.constant 0 : index
    %c3_127 = arith.constant 3 : index
    %c0_128 = arith.constant 0 : index
    %c0_129 = arith.constant 0 : index
    %373 = vector.load %arg7[%c0_126, %c3_127, %c0_128, %c0_129] : memref<1x4x1x8xf32, #tpu.memory_space<vmem>>, vector<1x1x1x8xf32>
    %374 = vector.shape_cast %373 : vector<1x1x1x8xf32> to vector<1x8xf32>
    %375 = vector.broadcast %374 : vector<1x8xf32> to vector<32x8xf32>
    %376 = arith.addf %372, %375 : vector<32x8xf32>
    %c0_130 = arith.constant 0 : index
    %c3_131 = arith.constant 3 : index
    %c0_132 = arith.constant 0 : index
    %c0_133 = arith.constant 0 : index
    %377 = vector.load %arg8[%c0_130, %c3_131, %c0_132, %c0_133] : memref<1x4x32x8xbf16, #tpu.memory_space<vmem>>, vector<1x1x32x8xbf16>
    %378 = vector.shape_cast %377 : vector<1x1x32x8xbf16> to vector<32x8xbf16>
    %cst_134 = arith.constant dense<0.000000e+00> : vector<32x8xf32>
    %379 = tpu.matmul %31, %378, %cst_134 {dimension_numbers = #tpu.dot_dimension_numbers<[1], [0], [0], [1], [0, 0, 1, 1], [], []>} : vector<32x32xbf16>, vector<32x8xbf16>, vector<32x8xf32> -> vector<32x8xf32>
    %c0_135 = arith.constant 0 : index
    %c3_136 = arith.constant 3 : index
    %c0_137 = arith.constant 0 : index
    %c0_138 = arith.constant 0 : index
    %380 = vector.load %arg9[%c0_135, %c3_136, %c0_137, %c0_138] : memref<1x4x1x8xf32, #tpu.memory_space<vmem>>, vector<1x1x1x8xf32>
    %381 = vector.shape_cast %380 : vector<1x1x1x8xf32> to vector<1x8xf32>
    %382 = vector.broadcast %381 : vector<1x8xf32> to vector<32x8xf32>
    %383 = arith.addf %379, %382 : vector<32x8xf32>
    %c0_139 = arith.constant 0 : index
    %c3_140 = arith.constant 3 : index
    %c0_141 = arith.constant 0 : index
    %c0_142 = arith.constant 0 : index
    %384 = vector.load %arg10[%c0_139, %c3_140, %c0_141, %c0_142] : memref<1x4x32x8xbf16, #tpu.memory_space<vmem>>, vector<1x1x32x8xbf16>
    %385 = vector.shape_cast %384 : vector<1x1x32x8xbf16> to vector<32x8xbf16>
    %cst_143 = arith.constant dense<0.000000e+00> : vector<32x8xf32>
    %386 = tpu.matmul %31, %385, %cst_143 {dimension_numbers = #tpu.dot_dimension_numbers<[1], [0], [0], [1], [0, 0, 1, 1], [], []>} : vector<32x32xbf16>, vector<32x8xbf16>, vector<32x8xf32> -> vector<32x8xf32>
    %c0_144 = arith.constant 0 : index
    %c3_145 = arith.constant 3 : index
    %c0_146 = arith.constant 0 : index
    %c0_147 = arith.constant 0 : index
    %387 = vector.load %arg11[%c0_144, %c3_145, %c0_146, %c0_147] : memref<1x4x1x8xf32, #tpu.memory_space<vmem>>, vector<1x1x1x8xf32>
    %388 = vector.shape_cast %387 : vector<1x1x1x8xf32> to vector<1x8xf32>
    %389 = vector.broadcast %388 : vector<1x8xf32> to vector<32x8xf32>
    %390 = arith.addf %386, %389 : vector<32x8xf32>
    %cst_148 = arith.constant 0.353553385 : f32
    %391 = vector.broadcast %cst_148 : f32 to vector<32x8xf32>
    %392 = arith.mulf %376, %391 : vector<32x8xf32>
    %393 = arith.truncf %392 : vector<32x8xf32> to vector<32x8xbf16>
    %394 = arith.truncf %383 : vector<32x8xf32> to vector<32x8xbf16>
    %395 = arith.truncf %390 : vector<32x8xf32> to vector<32x8xbf16>
    %396 = vector.shape_cast %393 : vector<32x8xbf16> to vector<4x8x8xbf16>
    %397 = vector.shape_cast %394 : vector<32x8xbf16> to vector<4x8x8xbf16>
    %398 = vector.shape_cast %395 : vector<32x8xbf16> to vector<4x8x8xbf16>
    "tpu.trace_start"() <{level = 10 : i32, message = "btd,bsd->bts"}> : () -> ()
    %cst_149 = arith.constant dense<0.000000e+00> : vector<4x8x8xf32>
    %399 = tpu.matmul %396, %397, %cst_149 {dimension_numbers = #tpu.dot_dimension_numbers<[2], [2], [1], [1], [0, 0, 0, 1, 1, 1], [0], [0]>} : vector<4x8x8xbf16>, vector<4x8x8xbf16>, vector<4x8x8xf32> -> vector<4x8x8xf32>
    "tpu.trace_stop"() : () -> ()
    %cst_150 = arith.constant dense<0.000000e+00> : vector<32x9xf32>
    %400 = tpu.matmul %393, %87, %cst_150 {dimension_numbers = #tpu.dot_dimension_numbers<[1], [1], [0], [0], [0, 0, 1, 0], [], []>} : vector<32x8xbf16>, vector<9x8xbf16>, vector<32x9xf32> -> vector<32x9xf32>
    %401 = vector.shape_cast %400 : vector<32x9xf32> to vector<4x8x9xf32>
    %402 = vector.extract_strided_slice %401 {offsets = [0, 0, 0], sizes = [4, 8, 1], strides = [1, 1, 1]} : vector<4x8x9xf32> to vector<4x8x1xf32>
    %403 = vector.broadcast %45 : vector<1x8x8xf32> to vector<4x8x8xf32>
    %404 = vector.broadcast %402 : vector<4x8x1xf32> to vector<4x8x8xf32>
    %405 = arith.mulf %403, %404 : vector<4x8x8xf32>
    %406 = vector.extract_strided_slice %401 {offsets = [0, 0, 1], sizes = [4, 8, 1], strides = [1, 1, 1]} : vector<4x8x9xf32> to vector<4x8x1xf32>
    %407 = vector.broadcast %50 : vector<1x8x8xf32> to vector<4x8x8xf32>
    %408 = vector.broadcast %406 : vector<4x8x1xf32> to vector<4x8x8xf32>
    %409 = arith.mulf %407, %408 : vector<4x8x8xf32>
    %410 = vector.extract_strided_slice %401 {offsets = [0, 0, 2], sizes = [4, 8, 1], strides = [1, 1, 1]} : vector<4x8x9xf32> to vector<4x8x1xf32>
    %411 = vector.broadcast %55 : vector<1x8x8xf32> to vector<4x8x8xf32>
    %412 = vector.broadcast %410 : vector<4x8x1xf32> to vector<4x8x8xf32>
    %413 = arith.mulf %411, %412 : vector<4x8x8xf32>
    %414 = vector.extract_strided_slice %401 {offsets = [0, 0, 3], sizes = [4, 8, 1], strides = [1, 1, 1]} : vector<4x8x9xf32> to vector<4x8x1xf32>
    %415 = vector.broadcast %60 : vector<1x8x8xf32> to vector<4x8x8xf32>
    %416 = vector.broadcast %414 : vector<4x8x1xf32> to vector<4x8x8xf32>
    %417 = arith.mulf %415, %416 : vector<4x8x8xf32>
    %418 = vector.extract_strided_slice %401 {offsets = [0, 0, 4], sizes = [4, 8, 1], strides = [1, 1, 1]} : vector<4x8x9xf32> to vector<4x8x1xf32>
    %419 = vector.broadcast %65 : vector<1x8x8xf32> to vector<4x8x8xf32>
    %420 = vector.broadcast %418 : vector<4x8x1xf32> to vector<4x8x8xf32>
    %421 = arith.mulf %419, %420 : vector<4x8x8xf32>
    %422 = vector.extract_strided_slice %401 {offsets = [0, 0, 5], sizes = [4, 8, 1], strides = [1, 1, 1]} : vector<4x8x9xf32> to vector<4x8x1xf32>
    %423 = vector.broadcast %70 : vector<1x8x8xf32> to vector<4x8x8xf32>
    %424 = vector.broadcast %422 : vector<4x8x1xf32> to vector<4x8x8xf32>
    %425 = arith.mulf %423, %424 : vector<4x8x8xf32>
    %426 = vector.extract_strided_slice %401 {offsets = [0, 0, 6], sizes = [4, 8, 1], strides = [1, 1, 1]} : vector<4x8x9xf32> to vector<4x8x1xf32>
    %427 = vector.broadcast %75 : vector<1x8x8xf32> to vector<4x8x8xf32>
    %428 = vector.broadcast %426 : vector<4x8x1xf32> to vector<4x8x8xf32>
    %429 = arith.mulf %427, %428 : vector<4x8x8xf32>
    %430 = vector.extract_strided_slice %401 {offsets = [0, 0, 7], sizes = [4, 8, 1], strides = [1, 1, 1]} : vector<4x8x9xf32> to vector<4x8x1xf32>
    %431 = vector.broadcast %80 : vector<1x8x8xf32> to vector<4x8x8xf32>
    %432 = vector.broadcast %430 : vector<4x8x1xf32> to vector<4x8x8xf32>
    %433 = arith.mulf %431, %432 : vector<4x8x8xf32>
    %434 = vector.extract_strided_slice %401 {offsets = [0, 0, 8], sizes = [4, 8, 1], strides = [1, 1, 1]} : vector<4x8x9xf32> to vector<4x8x1xf32>
    %435 = vector.broadcast %85 : vector<1x8x8xf32> to vector<4x8x8xf32>
    %436 = vector.broadcast %434 : vector<4x8x1xf32> to vector<4x8x8xf32>
    %437 = arith.mulf %435, %436 : vector<4x8x8xf32>
    %438 = arith.addf %405, %409 : vector<4x8x8xf32>
    %439 = arith.addf %413, %417 : vector<4x8x8xf32>
    %440 = arith.addf %421, %425 : vector<4x8x8xf32>
    %441 = arith.addf %429, %433 : vector<4x8x8xf32>
    %442 = arith.addf %438, %439 : vector<4x8x8xf32>
    %443 = arith.addf %440, %441 : vector<4x8x8xf32>
    %444 = arith.addf %442, %443 : vector<4x8x8xf32>
    %445 = arith.addf %444, %437 : vector<4x8x8xf32>
    %446 = arith.addf %399, %445 : vector<4x8x8xf32>
    %447 = vector.broadcast %4 : vector<4x1x8xf32> to vector<4x8x8xf32>
    %448 = arith.addf %446, %447 : vector<4x8x8xf32>
    %cst_151 = arith.constant dense<0xFF800000> : vector<4x8xf32>
    %449 = vector.multi_reduction <maximumf>, %448, %cst_151 [2] : vector<4x8x8xf32> to vector<4x8xf32>
    %450 = vector.shape_cast %449 : vector<4x8xf32> to vector<4x8x1xf32>
    %451 = vector.broadcast %450 : vector<4x8x1xf32> to vector<4x8x8xf32>
    %452 = arith.subf %448, %451 : vector<4x8x8xf32>
    %453 = math.exp %452 : vector<4x8x8xf32>
    %cst_152 = arith.constant dense<0.000000e+00> : vector<4x8xf32>
    %454 = vector.multi_reduction <add>, %453, %cst_152 [2] : vector<4x8x8xf32> to vector<4x8xf32>
    %455 = vector.shape_cast %454 : vector<4x8xf32> to vector<4x8x1xf32>
    %456 = tpu.reciprocal %455 : vector<4x8x1xf32> -> vector<4x8x1xf32>
    %457 = vector.broadcast %456 : vector<4x8x1xf32> to vector<4x8x8xf32>
    %458 = arith.mulf %453, %457 : vector<4x8x8xf32>
    %459 = arith.truncf %458 : vector<4x8x8xf32> to vector<4x8x8xbf16>
    "tpu.trace_start"() <{level = 10 : i32, message = "bts,bsd->btd"}> : () -> ()
    %cst_153 = arith.constant dense<0.000000e+00> : vector<4x8x8xf32>
    %460 = tpu.matmul %459, %398, %cst_153 {dimension_numbers = #tpu.dot_dimension_numbers<[2], [1], [1], [2], [0, 0, 0, 1, 1, 2], [0], [0]>} : vector<4x8x8xbf16>, vector<4x8x8xbf16>, vector<4x8x8xf32> -> vector<4x8x8xf32>
    "tpu.trace_stop"() : () -> ()
    %461 = vector.shape_cast %460 : vector<4x8x8xf32> to vector<32x8xf32>
    %462 = arith.truncf %461 : vector<32x8xf32> to vector<32x8xbf16>
    %c0_154 = arith.constant 0 : index
    %c24 = arith.constant 24 : index
    %463 = vector.load %arg25[%c0_154, %c24] : memref<32x32xbf16, #tpu.memory_space<vmem>>, vector<32x8xbf16>
    tpu.vector_store %arg25[%c0_154, %c24], %462 {strides = array<i32>} : memref<32x32xbf16, #tpu.memory_space<vmem>>, vector<32x8xbf16>,
    %c0_155 = arith.constant 0 : index
    %c0_156 = arith.constant 0 : index
    %464 = vector.load %arg25[%c0_155, %c0_156] : memref<32x32xbf16, #tpu.memory_space<vmem>>, vector<32x32xbf16>
    %c0_157 = arith.constant 0 : index
    %c0_158 = arith.constant 0 : index
    %c0_159 = arith.constant 0 : index
    %465 = vector.load %arg12[%c0_157, %c0_158, %c0_159] : memref<1x32x32xbf16, #tpu.memory_space<vmem>>, vector<1x32x32xbf16>
    %466 = vector.shape_cast %465 : vector<1x32x32xbf16> to vector<32x32xbf16>
    %cst_160 = arith.constant dense<0.000000e+00> : vector<32x32xf32>
    %467 = tpu.matmul %464, %466, %cst_160 {dimension_numbers = #tpu.dot_dimension_numbers<[1], [0], [0], [1], [0, 0, 1, 1], [], []>} : vector<32x32xbf16>, vector<32x32xbf16>, vector<32x32xf32> -> vector<32x32xf32>
    %c0_161 = arith.constant 0 : index
    %c0_162 = arith.constant 0 : index
    %c0_163 = arith.constant 0 : index
    %468 = vector.load %arg13[%c0_161, %c0_162, %c0_163] : memref<1x1x32xf32, #tpu.memory_space<vmem>>, vector<1x1x32xf32>
    %469 = vector.shape_cast %468 : vector<1x1x32xf32> to vector<1x32xf32>
    %470 = vector.broadcast %469 : vector<1x32xf32> to vector<32x32xf32>
    %471 = arith.addf %467, %470 : vector<32x32xf32>
    %472 = arith.addf %3, %471 : vector<32x32xf32>
    %c0_164 = arith.constant 0 : index
    %c0_165 = arith.constant 0 : index
    %c0_166 = arith.constant 0 : index
    %473 = vector.load %arg15[%c0_164, %c0_165, %c0_166] : memref<1x1x32xf32, #tpu.memory_space<vmem>>, vector<1x1x32xf32>
    %474 = vector.shape_cast %473 : vector<1x1x32xf32> to vector<1x32xf32>
    %c0_167 = arith.constant 0 : index
    %c0_168 = arith.constant 0 : index
    %c0_169 = arith.constant 0 : index
    %475 = vector.load %arg16[%c0_167, %c0_168, %c0_169] : memref<1x1x32xf32, #tpu.memory_space<vmem>>, vector<1x1x32xf32>
    %476 = vector.shape_cast %475 : vector<1x1x32xf32> to vector<1x32xf32>
    %cst_170 = arith.constant dense<0.000000e+00> : vector<32xf32>
    %477 = vector.multi_reduction <add>, %472, %cst_170 [1] : vector<32x32xf32> to vector<32xf32>
    %478 = vector.shape_cast %477 : vector<32xf32> to vector<32x1xf32>
    %cst_171 = arith.constant 3.200000e+01 : f32
    %479 = vector.broadcast %cst_171 : f32 to vector<32x1xf32>
    %480 = arith.divf %478, %479 : vector<32x1xf32>
    %481 = vector.broadcast %480 : vector<32x1xf32> to vector<32x32xf32>
    %482 = arith.subf %472, %481 : vector<32x32xf32>
    %483 = arith.mulf %482, %482 : vector<32x32xf32>
    %cst_172 = arith.constant dense<0.000000e+00> : vector<32xf32>
    %484 = vector.multi_reduction <add>, %483, %cst_172 [1] : vector<32x32xf32> to vector<32xf32>
    %485 = vector.shape_cast %484 : vector<32xf32> to vector<32x1xf32>
    %cst_173 = arith.constant 3.200000e+01 : f32
    %486 = vector.broadcast %cst_173 : f32 to vector<32x1xf32>
    %487 = arith.divf %485, %486 : vector<32x1xf32>
    %488 = vector.broadcast %480 : vector<32x1xf32> to vector<32x32xf32>
    %489 = arith.subf %472, %488 : vector<32x32xf32>
    %cst_174 = arith.constant 9.99999974E-6 : f32
    %490 = vector.broadcast %cst_174 : f32 to vector<32x1xf32>
    %491 = arith.addf %487, %490 : vector<32x1xf32>
    %492 = math.rsqrt %491 : vector<32x1xf32>
    %493 = vector.broadcast %492 : vector<32x1xf32> to vector<32x32xf32>
    %494 = arith.mulf %489, %493 : vector<32x32xf32>
    %495 = vector.broadcast %474 : vector<1x32xf32> to vector<32x32xf32>
    %496 = arith.mulf %494, %495 : vector<32x32xf32>
    %497 = vector.broadcast %476 : vector<1x32xf32> to vector<32x32xf32>
    %498 = arith.addf %496, %497 : vector<32x32xf32>
    %499 = arith.truncf %498 : vector<32x32xf32> to vector<32x32xbf16>
    %c0_175 = arith.constant 0 : index
    %c0_176 = arith.constant 0 : index
    %c0_177 = arith.constant 0 : index
    %500 = vector.load %arg17[%c0_175, %c0_176, %c0_177] : memref<1x32x128xbf16, #tpu.memory_space<vmem>>, vector<1x32x128xbf16>
    %501 = vector.shape_cast %500 : vector<1x32x128xbf16> to vector<32x128xbf16>
    %cst_178 = arith.constant dense<0.000000e+00> : vector<32x128xf32>
    %502 = tpu.matmul %499, %501, %cst_178 {dimension_numbers = #tpu.dot_dimension_numbers<[1], [0], [0], [1], [0, 0, 1, 1], [], []>} : vector<32x32xbf16>, vector<32x128xbf16>, vector<32x128xf32> -> vector<32x128xf32>
    %c0_179 = arith.constant 0 : index
    %c0_180 = arith.constant 0 : index
    %c0_181 = arith.constant 0 : index
    %503 = vector.load %arg18[%c0_179, %c0_180, %c0_181] : memref<1x1x128xf32, #tpu.memory_space<vmem>>, vector<1x1x128xf32>
    %504 = vector.shape_cast %503 : vector<1x1x128xf32> to vector<1x128xf32>
    %505 = vector.broadcast %504 : vector<1x128xf32> to vector<32x128xf32>
    %506 = arith.addf %502, %505 : vector<32x128xf32>
    %cst_182 = arith.constant 0.000000e+00 : f32
    %507 = vector.broadcast %cst_182 : f32 to vector<32x128xf32>
    %508 = arith.maximumf %506, %507 : vector<32x128xf32>
    %509 = arith.truncf %508 : vector<32x128xf32> to vector<32x128xbf16>
    %c0_183 = arith.constant 0 : index
    %c0_184 = arith.constant 0 : index
    %c0_185 = arith.constant 0 : index
    %510 = vector.load %arg19[%c0_183, %c0_184, %c0_185] : memref<1x128x32xbf16, #tpu.memory_space<vmem>>, vector<1x128x32xbf16>
    %511 = vector.shape_cast %510 : vector<1x128x32xbf16> to vector<128x32xbf16>
    %cst_186 = arith.constant dense<0.000000e+00> : vector<32x32xf32>
    %512 = tpu.matmul %509, %511, %cst_186 {dimension_numbers = #tpu.dot_dimension_numbers<[1], [0], [0], [1], [0, 0, 1, 1], [], []>} : vector<32x128xbf16>, vector<128x32xbf16>, vector<32x32xf32> -> vector<32x32xf32>
    %c0_187 = arith.constant 0 : index
    %c0_188 = arith.constant 0 : index
    %c0_189 = arith.constant 0 : index
    %513 = vector.load %arg20[%c0_187, %c0_188, %c0_189] : memref<1x1x32xf32, #tpu.memory_space<vmem>>, vector<1x1x32xf32>
    %514 = vector.shape_cast %513 : vector<1x1x32xf32> to vector<1x32xf32>
    %515 = vector.broadcast %514 : vector<1x32xf32> to vector<32x32xf32>
    %516 = arith.addf %512, %515 : vector<32x32xf32>
    %517 = arith.addf %472, %516 : vector<32x32xf32>
    %c0_190 = arith.constant 0 : index
    %c0_191 = arith.constant 0 : index
    %518 = vector.load %arg24[%c0_190, %c0_191] : memref<32x32xf32, #tpu.memory_space<vmem>>, vector<32x32xf32>
    tpu.vector_store %arg24[%c0_190, %c0_191], %517 {strides = array<i32>} : memref<32x32xf32, #tpu.memory_space<vmem>>, vector<32x32xf32>,
    %c1_i32_192 = arith.constant 1 : i32
    %519 = arith.cmpi eq, %arg1, %c1_i32_192 : i32
    %520 = arith.extui %519 : i1 to i32
    %c0_i32_193 = arith.constant 0 : i32
    %521 = arith.cmpi ne, %520, %c0_i32_193 : i32
    scf.if %521 {
      %c0_194 = arith.constant 0 : index
      %c0_195 = arith.constant 0 : index
      %522 = vector.load %arg21[%c0_194, %c0_195] : memref<1x32xf32, #tpu.memory_space<vmem>>, vector<1x32xf32>
      %c0_196 = arith.constant 0 : index
      %c0_197 = arith.constant 0 : index
      %523 = vector.load %arg22[%c0_196, %c0_197] : memref<1x32xf32, #tpu.memory_space<vmem>>, vector<1x32xf32>
      %cst_198 = arith.constant dense<0.000000e+00> : vector<32xf32>
      %524 = vector.multi_reduction <add>, %517, %cst_198 [1] : vector<32x32xf32> to vector<32xf32>
      %525 = vector.shape_cast %524 : vector<32xf32> to vector<32x1xf32>
      %cst_199 = arith.constant 3.200000e+01 : f32
      %526 = vector.broadcast %cst_199 : f32 to vector<32x1xf32>
      %527 = arith.divf %525, %526 : vector<32x1xf32>
      %528 = vector.broadcast %527 : vector<32x1xf32> to vector<32x32xf32>
      %529 = arith.subf %517, %528 : vector<32x32xf32>
      %530 = arith.mulf %529, %529 : vector<32x32xf32>
      %cst_200 = arith.constant dense<0.000000e+00> : vector<32xf32>
      %531 = vector.multi_reduction <add>, %530, %cst_200 [1] : vector<32x32xf32> to vector<32xf32>
      %532 = vector.shape_cast %531 : vector<32xf32> to vector<32x1xf32>
      %cst_201 = arith.constant 3.200000e+01 : f32
      %533 = vector.broadcast %cst_201 : f32 to vector<32x1xf32>
      %534 = arith.divf %532, %533 : vector<32x1xf32>
      %535 = vector.broadcast %527 : vector<32x1xf32> to vector<32x32xf32>
      %536 = arith.subf %517, %535 : vector<32x32xf32>
      %cst_202 = arith.constant 9.99999974E-6 : f32
      %537 = vector.broadcast %cst_202 : f32 to vector<32x1xf32>
      %538 = arith.addf %534, %537 : vector<32x1xf32>
      %539 = math.rsqrt %538 : vector<32x1xf32>
      %540 = vector.broadcast %539 : vector<32x1xf32> to vector<32x32xf32>
      %541 = arith.mulf %536, %540 : vector<32x32xf32>
      %542 = vector.broadcast %522 : vector<1x32xf32> to vector<32x32xf32>
      %543 = arith.mulf %541, %542 : vector<32x32xf32>
      %544 = vector.broadcast %523 : vector<1x32xf32> to vector<32x32xf32>
      %545 = arith.addf %543, %544 : vector<32x32xf32>
      %546 = vector.shape_cast %545 : vector<32x32xf32> to vector<4x8x32xf32>
      %c0_203 = arith.constant 0 : index
      %c0_204 = arith.constant 0 : index
      %c0_205 = arith.constant 0 : index
      %547 = vector.load %arg23[%c0_203, %c0_204, %c0_205] : memref<4x8x32xf32, #tpu.memory_space<vmem>>, vector<4x8x32xf32>
      tpu.vector_store %arg23[%c0_203, %c0_204, %c0_205], %546 {strides = array<i32>} : memref<4x8x32xf32, #tpu.memory_space<vmem>>, vector<4x8x32xf32>,
    } else {
    }
    return
  }
  func.func @transform_0(%arg0: i32, %arg1: i32) -> (i32, i32, i32) {
    %c0_i32 = arith.constant 0 : i32
    %c0_i32_0 = arith.constant 0 : i32
    %c0_i32_1 = arith.constant 0 : i32
    return %arg0, %c0_i32, %c0_i32_0 : i32, i32, i32
  }
  func.func @transform_1(%arg0: i32, %arg1: i32) -> (i32, i32, i32) {
    %c0_i32 = arith.constant 0 : i32
    %c0_i32_0 = arith.constant 0 : i32
    %c0_i32_1 = arith.constant 0 : i32
    return %arg0, %c0_i32, %c0_i32_0 : i32, i32, i32
  }
  func.func @transform_2(%arg0: i32, %arg1: i32) -> (i32, i32, i32) {
    %c0_i32 = arith.constant 0 : i32
    %c0_i32_0 = arith.constant 0 : i32
    %c0_i32_1 = arith.constant 0 : i32
    return %arg1, %c0_i32, %c0_i32_0 : i32, i32, i32
  }
  func.func @transform_3(%arg0: i32, %arg1: i32) -> (i32, i32, i32) {
    %c0_i32 = arith.constant 0 : i32
    %c0_i32_0 = arith.constant 0 : i32
    %c0_i32_1 = arith.constant 0 : i32
    return %arg1, %c0_i32, %c0_i32_0 : i32, i32, i32
  }
  func.func @transform_4(%arg0: i32, %arg1: i32) -> (i32, i32, i32, i32) {
    %c0_i32 = arith.constant 0 : i32
    %c0_i32_0 = arith.constant 0 : i32
    %c0_i32_1 = arith.constant 0 : i32
    %c0_i32_2 = arith.constant 0 : i32
    return %arg1, %c0_i32, %c0_i32_0, %c0_i32_1 : i32, i32, i32, i32
  }
  func.func @transform_5(%arg0: i32, %arg1: i32) -> (i32, i32, i32, i32) {
    %c0_i32 = arith.constant 0 : i32
    %c0_i32_0 = arith.constant 0 : i32
    %c0_i32_1 = arith.constant 0 : i32
    %c0_i32_2 = arith.constant 0 : i32
    return %arg1, %c0_i32, %c0_i32_0, %c0_i32_1 : i32, i32, i32, i32
  }
  func.func @transform_6(%arg0: i32, %arg1: i32) -> (i32, i32, i32, i32) {
    %c0_i32 = arith.constant 0 : i32
    %c0_i32_0 = arith.constant 0 : i32
    %c0_i32_1 = arith.constant 0 : i32
    %c0_i32_2 = arith.constant 0 : i32
    return %arg1, %c0_i32, %c0_i32_0, %c0_i32_1 : i32, i32, i32, i32
  }
  func.func @transform_7(%arg0: i32, %arg1: i32) -> (i32, i32, i32, i32) {
    %c0_i32 = arith.constant 0 : i32
    %c0_i32_0 = arith.constant 0 : i32
    %c0_i32_1 = arith.constant 0 : i32
    %c0_i32_2 = arith.constant 0 : i32
    return %arg1, %c0_i32, %c0_i32_0, %c0_i32_1 : i32, i32, i32, i32
  }
  func.func @transform_8(%arg0: i32, %arg1: i32) -> (i32, i32, i32, i32) {
    %c0_i32 = arith.constant 0 : i32
    %c0_i32_0 = arith.constant 0 : i32
    %c0_i32_1 = arith.constant 0 : i32
    %c0_i32_2 = arith.constant 0 : i32
    return %arg1, %c0_i32, %c0_i32_0, %c0_i32_1 : i32, i32, i32, i32
  }
  func.func @transform_9(%arg0: i32, %arg1: i32) -> (i32, i32, i32, i32) {
    %c0_i32 = arith.constant 0 : i32
    %c0_i32_0 = arith.constant 0 : i32
    %c0_i32_1 = arith.constant 0 : i32
    %c0_i32_2 = arith.constant 0 : i32
    return %arg1, %c0_i32, %c0_i32_0, %c0_i32_1 : i32, i32, i32, i32
  }
  func.func @transform_10(%arg0: i32, %arg1: i32) -> (i32, i32, i32) {
    %c0_i32 = arith.constant 0 : i32
    %c0_i32_0 = arith.constant 0 : i32
    %c0_i32_1 = arith.constant 0 : i32
    return %arg1, %c0_i32, %c0_i32_0 : i32, i32, i32
  }
  func.func @transform_11(%arg0: i32, %arg1: i32) -> (i32, i32, i32) {
    %c0_i32 = arith.constant 0 : i32
    %c0_i32_0 = arith.constant 0 : i32
    %c0_i32_1 = arith.constant 0 : i32
    return %arg1, %c0_i32, %c0_i32_0 : i32, i32, i32
  }
  func.func @transform_12(%arg0: i32, %arg1: i32) -> (i32, i32, i32) {
    %c0_i32 = arith.constant 0 : i32
    %c0_i32_0 = arith.constant 0 : i32
    %c0_i32_1 = arith.constant 0 : i32
    return %arg1, %c0_i32, %c0_i32_0 : i32, i32, i32
  }
  func.func @transform_13(%arg0: i32, %arg1: i32) -> (i32, i32, i32) {
    %c0_i32 = arith.constant 0 : i32
    %c0_i32_0 = arith.constant 0 : i32
    %c0_i32_1 = arith.constant 0 : i32
    return %arg1, %c0_i32, %c0_i32_0 : i32, i32, i32
  }
  func.func @transform_14(%arg0: i32, %arg1: i32) -> (i32, i32, i32) {
    %c0_i32 = arith.constant 0 : i32
    %c0_i32_0 = arith.constant 0 : i32
    %c0_i32_1 = arith.constant 0 : i32
    return %arg1, %c0_i32, %c0_i32_0 : i32, i32, i32
  }
  func.func @transform_15(%arg0: i32, %arg1: i32) -> (i32, i32, i32) {
    %c0_i32 = arith.constant 0 : i32
    %c0_i32_0 = arith.constant 0 : i32
    %c0_i32_1 = arith.constant 0 : i32
    return %arg1, %c0_i32, %c0_i32_0 : i32, i32, i32
  }
  func.func @transform_16(%arg0: i32, %arg1: i32) -> (i32, i32, i32) {
    %c0_i32 = arith.constant 0 : i32
    %c0_i32_0 = arith.constant 0 : i32
    %c0_i32_1 = arith.constant 0 : i32
    return %arg1, %c0_i32, %c0_i32_0 : i32, i32, i32
  }
  func.func @transform_17(%arg0: i32, %arg1: i32) -> (i32, i32, i32) {
    %c0_i32 = arith.constant 0 : i32
    %c0_i32_0 = arith.constant 0 : i32
    %c0_i32_1 = arith.constant 0 : i32
    return %arg1, %c0_i32, %c0_i32_0 : i32, i32, i32
  }
  func.func @transform_18(%arg0: i32, %arg1: i32) -> (i32, i32, i32) {
    %c0_i32 = arith.constant 0 : i32
    %c0_i32_0 = arith.constant 0 : i32
    %c0_i32_1 = arith.constant 0 : i32
    return %arg1, %c0_i32, %c0_i32_0 : i32, i32, i32
  }
  func.func @transform_19(%arg0: i32, %arg1: i32) -> (i32, i32) {
    %c0_i32 = arith.constant 0 : i32
    %c0_i32_0 = arith.constant 0 : i32
    %c0_i32_1 = arith.constant 0 : i32
    return %c0_i32, %c0_i32_0 : i32, i32
  }
  func.func @transform_20(%arg0: i32, %arg1: i32) -> (i32, i32) {
    %c0_i32 = arith.constant 0 : i32
    %c0_i32_0 = arith.constant 0 : i32
    %c0_i32_1 = arith.constant 0 : i32
    return %c0_i32, %c0_i32_0 : i32, i32
  }
  func.func @transform_21(%arg0: i32, %arg1: i32) -> (i32, i32, i32) {
    %c0_i32 = arith.constant 0 : i32
    %c0_i32_0 = arith.constant 0 : i32
    %c0_i32_1 = arith.constant 0 : i32
    return %arg0, %c0_i32, %c0_i32_0 : i32, i32, i32
  }
}

</mosaic_0001>

<bundles_post_ra>
// kernel: tpu_custom_call.1
= control target key start
LH: loop header
LB: loop body
LE: loop exit
PB: predicated region body
PF: predicated region fallthrough
CT: control target
= control target key end

     0   :  { %s10220_s0 = inlined_call_operand.hbm [shape: f32[4,8,32], index: 0, kind: input, shape index: {}]   ;;  %s10221_s1 = inlined_call_operand.hbm [shape: f32[4,1,8], index: 1, kind: input, shape index: {}]   ;;  %s10222_s2 = inlined_call_operand.hbm [shape: f32[2,1,32], index: 2, kind: input, shape index: {}]   ;;  %s10223_s3 = inlined_call_operand.hbm [shape: f32[2,1,32], index: 3, kind: input, shape index: {}]   ;;  %s10224_s4 = inlined_call_operand.hbm [shape: bf16[2,4,32,8], index: 4, kind: input, shape index: {}]   ;;  %s10225_s5 = inlined_call_operand.hbm [shape: f32[2,4,1,8], index: 5, kind: input, shape index: {}]   ;;  %s10226_s6 = inlined_call_operand.hbm [shape: bf16[2,4,32,8], index: 6, kind: input, shape index: {}]   ;;  %s10227_s7 = inlined_call_operand.hbm [shape: f32[2,4,1,8], index: 7, kind: input, shape index: {}]   ;;  %s10228_s8 = inlined_call_operand.hbm [shape: bf16[2,4,32,8], index: 8, kind: input, shape index: {}]   ;;  %s10229_s9 = inlined_call_operand.hbm [shape: f32[2,4,1,8], index: 9, kind: input, shape index: {}]   ;;  %s10230_s10 = inlined_call_operand.hbm [shape: bf16[2,32,32], index: 10, kind: input, shape index: {}]   ;;  %s10231_s11 = inlined_call_operand.hbm [shape: f32[2,1,32], index: 11, kind: input, shape index: {}]   ;;  %s10232_s12 = inlined_call_operand.hbm [shape: bf16[2,9,8], index: 12, kind: input, shape index: {}]   ;;  %s10233_s13 = inlined_call_operand.hbm [shape: f32[2,1,32], index: 13, kind: input, shape index: {}]   ;;  %s10234_s14 = inlined_call_operand.hbm [shape: f32[2,1,32], index: 14, kind: input, shape index: {}]   ;;  %s10235_s15 = inlined_call_operand.hbm [shape: bf16[2,32,128], index: 15, kind: input, shape index: {}]   ;;  %s10236_s16 = inlined_call_operand.hbm [shape: f32[2,1,128], index: 16, kind: input, shape index: {}]   ;;  %s10237_s17 = inlined_call_operand.hbm [shape: bf16[2,128,32], index: 17, kind: input, shape index: {}]   ;;  %s10238_s18 = inlined_call_operand.hbm [shape: f32[2,1,32], index: 18, kind: input, shape index: {}]   ;;  %s10239_s19 = inlined_call_operand.hbm [shape: f32[1,32], index: 19, kind: input, shape index: {}]   ;;  %s10240_s20 = inlined_call_operand.hbm [shape: f32[1,32], index: 20, kind: input, shape index: {}]   ;;  %s10241_s21 = inlined_call_operand.hbm [shape: f32[4,8,32], index: 21, kind: output, shape index: {}]  }
   0x1   :  { %10309 = sst [smem:[#allocation47_spill]] %s10220_s0 }
   0x2   :  { %10310 = sst [smem:[#allocation48_spill]] %s10221_s1 }
   0x3   :  { %10311 = sst [smem:[#allocation49_spill]] %s10222_s2 }
   0x4   :  { %10312 = sst [smem:[#allocation50_spill]] %s10223_s3 }
   0x5   :  { %10313 = sst [smem:[#allocation51_spill]] %s10224_s4 }
   0x6   :  { %10314 = sst [smem:[#allocation52_spill]] %s10225_s5 }
   0x7   :  { %10315 = sst [smem:[#allocation53_spill]] %s10226_s6 }
   0x8   :  { %10316 = sst [smem:[#allocation54_spill]] %s10227_s7 }
   0x9   :  { %10317 = sst [smem:[#allocation55_spill]] %s10228_s8 }
   0xa   :  { %10318 = sst [smem:[#allocation56_spill]] %s10232_s12 }
   0xb   :  { %10319 = sst [smem:[#allocation57_spill]] %s10233_s13 }
   0xc   :  { %10320 = sst [smem:[#allocation58_spill]] %s10234_s14 }
   0xd   :  { %10321 = sst [smem:[#allocation59_spill]] %s10235_s15 }
   0xe   :  { %10322 = sst [smem:[#allocation60_spill]] %s10236_s16 }
   0xf   :  { %10323 = sst [smem:[#allocation61_spill]] %s10237_s17 }
  0x10   :  { %10324 = sst [smem:[#allocation62_spill]] %s10238_s18 }
  0x11   :  { %10325 = sst [smem:[#allocation63_spill]] %s10239_s19 }
  0x12   :  { %10326 = sst [smem:[#allocation64_spill]] %s10240_s20 }
  0x13   :  { %10327 = sst [smem:[#allocation65_spill]] %s10241_s21 }
  0x14   :  { %26 = vsyncpa [#allocation5], 0 }
  0x15   :  { %27 = vsyncpa [#allocation8], 0 }
  0x16   :  { %28 = vsyncpa [#allocation28], 0 }
  0x17   :  { %29 = vsyncpa [#allocation6], 0  ;;  %s8312_s2 = smov 0   ;;  %s8314_s25 = smov 0  }
  0x18   :  { %s8316_s26 = smov 0   ;;  %s8318_s27 = smov 0  }
  0x19   :  { %s8320_s3 = smov 0   ;;  %s8322_s28 = smov 0  }
  0x1a LB: > { %10328 = sst [smem:[#allocation36_spill]] %s8139_s25  ;;  %s8341_s29 = sadd.s32 4294967295, %s8155_s28   ;;  %s8155_s28 = sphi %s8322_s28, %s35_s28   ;;  %s8151_s3 = sphi %s8320_s3, %s10412_s3   ;;  %s8147_s27 = sphi %s8318_s27, %s10411_s27   ;;  %s8143_s26 = sphi %s8316_s26, %s10409_s26   ;;  %s8139_s25 = sphi %s8314_s25, %s10408_s25   ;;  %s8135_s2 = sphi %s8312_s2, %s10407_s2  }
  0x1b   : > { %10329 = sst [smem:[#allocation37_spill]] %s8143_s26  ;;  %s44_s0 = sadd.s32 1, %s8151_s3 }
  0x1c   : > { %10330 = sst [smem:[#allocation38_spill]] %s8147_s27  ;;  %p45_p0 = scmp.ge.s32.totalorder %s44_s0, 2 }
  0x1d   : > { %10331 = sst [smem:[#allocation39_spill]] %s8341_s29  ;;  %s106_s4 = sadd.s32 1, %s8143_s26 }
  0x1e   : > { %p113_p1 = scmp.ne.s32.totalorder %s8143_s26, %s8139_s25  ;;  %p114_p2 = scmp.eq.s32.totalorder %s8155_s28, 0 }
  0x1f   : > { %s10414_s0 = smov (%p45_p0, %s44_s0), 0  ;;  %p119_p4 = scmp.ne.s32.totalorder %s8139_s25, %s8135_s2 }
  0x20   : > { %10332 = sst [smem:[#allocation40_spill]] %s10414_s0  ;;  %p8350_p3 = por %p114_p2, %p113_p1 }
  0x21   : > { %s103_s5 = ssub.s32 %s8151_s3, %s10414_s0  ;;  %p10259_p5 = scmp.eq.s32.totalorder %s8341_s29, 0 }
  0x22   : > { %s10333_s30 = scalar_select %p8350_p3, 1, 0 }
  0x23   : > { %p104_p6 = scmp.eq.s32.totalorder %s103_s5, 0  ;;  %p6198_p7 = scmp.ge.s32.totalorder %s8155_s28, 1 }
  0x24   : > { %p8361_p8 = por %p10259_p5, %p119_p4  ;;  %p614_p9 = scmp.lt.s32.totalorder %s8155_s28, 3 }
  0x25   : > { %s8367_s23 = scalar_select %p104_p6, %s8143_s26, %s106_s4  }
  0x26   : > { %s10334_s22 = scalar_select %p8361_p8, 1, 0 }
  0x27   : > { %10336 = sst [smem:[#allocation42_spill]] %s8367_s23  ;;  %p8369_p10 = pnand %p6198_p7, %p614_p9 }
  0x28   : > { %10335 = sst [smem:[#allocation41_spill]] %s10334_s22  ;;  %s8157_s24 = smov [#allocation7]  }
  0x29   : > { %s10337_s1 = scalar_select %p8369_p10, 1, 0 }
  0x2a   : > { %p7100_p11 = pneg %p8369_p10  ;;  %s645_s2 = sshll.u32 %s8157_s24, 4  ;;  %s646_s2 = int_to_ptr.vmem [resolvable:$true] %s645_s2 }
  0x2b   : > { %10338 = sst [smem:[#allocation43_spill]] %s10337_s1  ;;  %s8158_s0 = smov [#allocation4]  }
  0x2c   : > { %p8377_p12 = pnand %p7100_p11, %p10259_p5  ;;  %s629_s21 = sshll.u32 %s8158_s0, 4  ;;  %s630_s21 = int_to_ptr.vmem [resolvable:$true] %s629_s21 }
  0x2d   : > { %s10340_s27 = sld [smem:[#allocation48_spill]] }
  0x2e   : > { %p8389_p0 = pneg %p8377_p12 }
  0x33   : > { %s10341_s22 = smov %s10340_s27  ;;  %s7471_s25 = scalar_lea.hbm %s10340_s27, 64 }
  0x34   : > { %p7472_p13 = scmp.ne.s32.totalorder %s10341_s22, %s7471_s25  ;;  %p7478_p4 = scmp.lt.u32.totalorder %s7471_s25, %s10341_s22 }
  0x36   : > { %p7474_p1 = pnand %p8389_p0, %p7472_p13 }
  0x38   : > { %p7475_p2 = pneg %p7474_p1 }
  0x3a   : > { %p7480_p6 = pnand %p7478_p4, %p7475_p2 }
  0x3c   : > { %7483 = shalt.err (!%p7480_p6)
}
  0x3d   : > { %s7484_s27 = scalar_lea.vmem %s646_s2, 64  ;;  %p7492_p5 = scmp.lt.s32.totalorder %s646_s2, %s646_s2 }
  0x3e   : > { %p7485_p7 = scmp.ne.s32.totalorder %s646_s2, %s7484_s27  ;;  %p7493_p8 = scmp.lt.s32.totalorder %s7484_s27, %s7484_s27 }
  0x40   : > { %p7487_p9 = pnand %p7485_p7, %p8389_p0  ;;  %p7494_p10 = por %p7493_p8, %p7492_p5 }
  0x42   : > { %p7488_p11 = pneg %p7487_p9 }
  0x44   : > { %p7495_p3 = pnand %p7494_p10, %p7488_p11 }
  0x46   : > { %7498 = shalt.err (!%p7495_p3)
}
  0x47   : > { %s8159_s17 = smov 16   ;;  %s8160_s18 = smov 1  }
  0x48   : > { %7106 = dma.hbm_to_vmem [thread:$0]  (!%p8377_p12), %s10341_s22, 64, %s646_s2, [#allocation8], %s8159_s17, %s8159_s17, %s8160_s18  }
  0x49   : > { %s10343_s1 = sld [smem:[#allocation47_spill]] }
  0x4f   : > { %s7499_s4 = scalar_lea.hbm %s10343_s1, 512 }
  0x50   : > { %p7500_p5 = scmp.ne.s32.totalorder %s10343_s1, %s7499_s4  ;;  %p7506_p10 = scmp.lt.u32.totalorder %s7499_s4, %s10343_s1 }
  0x52   : > { %p7502_p3 = pnand %p7500_p5, %p8389_p0 }
  0x54   : > { %p7503_p8 = pneg %p7502_p3 }
  0x56   : > { %p7508_p13 = pnand %p7506_p10, %p7503_p8 }
  0x58   : > { %7511 = shalt.err (!%p7508_p13)
}
  0x59   : > { %s7512_s29 = scalar_lea.vmem %s630_s21, 512  ;;  %p7520_p6 = scmp.lt.s32.totalorder %s630_s21, %s630_s21 }
  0x5a   : > { %p7513_p1 = scmp.ne.s32.totalorder %s630_s21, %s7512_s29  ;;  %p7521_p7 = scmp.lt.s32.totalorder %s7512_s29, %s7512_s29 }
  0x5c   : > { %p7515_p2 = pnand %p7513_p1, %p8389_p0  ;;  %p7522_p9 = por %p7521_p7, %p7520_p6 }
  0x5e   : > { %p7516_p4 = pneg %p7515_p2 }
  0x60   : > { %p7523_p11 = pnand %p7522_p9, %p7516_p4 }
  0x62   : > { %7526 = shalt.err (!%p7523_p11)
}
  0x63   : > { %s8161_s15 = smov 128   ;;  %s8162_s16 = smov 8  }
  0x64   : > { %7103 = dma.hbm_to_vmem [thread:$0]  (!%p8377_p12), %s10343_s1, 512, %s630_s21, [#allocation5], %s8161_s15, %s8161_s15, %s8162_s16  }
  0x65   : > { %s8163_s17 = smov [#allocation26]   ;;  %s8164_s25 = smov [#allocation27]  }
  0x66   : > { %s659_s18 = sshll.u32 %s8163_s17, 4  ;;  %s670_s0 = sshll.u32 %s8164_s25, 4  ;;  %s660_s18 = int_to_ptr.vmem [resolvable:$true] %s659_s18  ;;  %s671_s0 = int_to_ptr.vmem [resolvable:$true] %s670_s0 }
  0x67   : > { %s10344_s19 = sld [smem:[#allocation63_spill]] }
  0x6d   : > { %s7527_s27 = scalar_lea.hbm %s10344_s19, 16 }
  0x6e   : > { %p7528_p5 = scmp.ne.s32.totalorder %s10344_s19, %s7527_s27  ;;  %p7534_p10 = scmp.lt.u32.totalorder %s7527_s27, %s10344_s19 }
  0x70   : > { %p7530_p3 = pnand %p7528_p5, %p8389_p0 }
  0x72   : > { %p7531_p8 = pneg %p7530_p3 }
  0x74   : > { %p7536_p13 = pnand %p7534_p10, %p7531_p8 }
  0x76   : > { %7539 = shalt.err (!%p7536_p13)
}
  0x77   : > { %s7540_s21 = scalar_lea.vmem %s660_s18, 16  ;;  %s7547_s15 = scalar_lea.vmem %s660_s18, 32 }
  0x78   : > { %p7541_p1 = scmp.ne.s32.totalorder %s660_s18, %s7540_s21  ;;  %p7548_p6 = scmp.lt.s32.totalorder %s660_s18, %s660_s18 }
  0x79   : > { %p7549_p7 = scmp.lt.s32.totalorder %s7547_s15, %s7540_s21 }
  0x7a   : > { %p7543_p2 = pnand %p7541_p1, %p8389_p0 }
  0x7b   : > { %p7550_p9 = por %p7549_p7, %p7548_p6 }
  0x7c   : > { %p7544_p4 = pneg %p7543_p2 }
  0x7e   : > { %p7551_p11 = pnand %p7550_p9, %p7544_p4 }
  0x80   : > { %7554 = shalt.err (!%p7551_p11)
}
  0x81   : > { %7109 = dma.hbm_to_vmem [thread:$0]  (!%p8377_p12), %s10344_s19, 16, %s660_s18, [#allocation8]  }
  0x82   : > { %s10345_s20 = sld [smem:[#allocation64_spill]] }
  0x88   : > { %s7555_s14 = scalar_lea.hbm %s10345_s20, 16 }
  0x89   : > { %p7556_p5 = scmp.ne.s32.totalorder %s10345_s20, %s7555_s14  ;;  %p7562_p10 = scmp.lt.u32.totalorder %s7555_s14, %s10345_s20 }
  0x8b   : > { %p7558_p3 = pnand %p7556_p5, %p8389_p0 }
  0x8d   : > { %p7559_p8 = pneg %p7558_p3 }
  0x8f   : > { %p7564_p13 = pnand %p7562_p10, %p7559_p8 }
  0x91   : > { %7567 = shalt.err (!%p7564_p13)
}
  0x92   : > { %s7568_s4 = scalar_lea.vmem %s671_s0, 16  ;;  %s7575_s18 = scalar_lea.vmem %s671_s0, 32 }
  0x93   : > { %p7569_p1 = scmp.ne.s32.totalorder %s671_s0, %s7568_s4  ;;  %p7576_p6 = scmp.lt.s32.totalorder %s671_s0, %s671_s0 }
  0x94   : > { %p7577_p7 = scmp.lt.s32.totalorder %s7575_s18, %s7568_s4 }
  0x95   : > { %p7571_p2 = pnand %p7569_p1, %p8389_p0 }
  0x96   : > { %p7578_p9 = por %p7577_p7, %p7576_p6 }
  0x97   : > { %p7572_p4 = pneg %p7571_p2 }
  0x99   : > { %p7579_p11 = pnand %p7578_p9, %p7572_p4 }
  0x9b   : > { %7582 = shalt.err (!%p7579_p11)
}
  0x9c   : > { %7112 = dma.hbm_to_vmem [thread:$0]  (!%p8377_p12), %s10345_s20, 16, %s671_s0, [#allocation28]  }
  0x9d   : > { %p6203_p5 = scmp.ge.s32.totalorder %s8155_s28, 2 }
  0x9e   : > { %s681_s24 = sand.u32 (!%p6203_p5), 1, %s8155_s28   ;;  %s8462_s21 = sand.u32 (!%p6203_p5), 1, %s8143_s26  }
  0x9f   : > { %677 = sbr.rel (%p6203_p5) target bundleno = 601 (0x259), region = 32  ;;  %s8465_s15 = sshll.u32 (!%p6203_p5), %s8151_s3, 4 }
  0xa0   : > { %s684_s22 = scalar_lea.vmem (!%p6203_p5), [#allocation9], %s8462_s21  ;;  %s10346_s13 = sld [smem:[#allocation49_spill]] (!%p6203_p5) }
  0xa1   : > { %s691_s5 = sshll.u32 (!%p6203_p5), %s684_s22, 4  ;;  %s8474_s14 = scalar_lea.sflag (!%p6203_p5), [#allocation5], %s681_s24  ;;  %s692_s5 = int_to_ptr.vmem [resolvable:$true] %s691_s5 }
  0xa2   : > { %p10347_p0 = scmp.ne.s32.totalorder (!%p6203_p5), %s10333_s30, 0 }
  0xa6   : > { %s8472_s0 = scalar_lea.hbm %s10346_s13, %s8465_s15  ;;  %s7587_s23 = scalar_lea.hbm %s10346_s13, 32 }
  0xa7   : > { %s7583_s2 = scalar_lea.hbm %s8472_s0, 16  ;;  %p7588_p10 = scmp.lt.u32.totalorder %s8472_s0, %s10346_s13 }
  0xa8   : > { %p7584_p12 = scmp.ne.s32.totalorder %s8472_s0, %s7583_s2  ;;  %p7589_p13 = scmp.lt.u32.totalorder %s7587_s23, %s7583_s2 }
  0xa9   : > { %p7591_p2 = scmp.lt.u32.totalorder %s7583_s2, %s8472_s0 }
  0xaa   : > { %p7585_p3 = pnand %p7584_p12, %p10347_p0  ;;  %p7590_p1 = por %p7589_p13, %p7588_p10 }
  0xac   : > { %p7586_p8 = pneg %p7585_p3  ;;  %p7592_p4 = por %p7591_p2, %p7590_p1 }
  0xae   : > { %p7593_p6 = pnand %p7592_p4, %p7586_p8 }
  0xb0   : > { %7596 = shalt.err (!%p7593_p6)
}
  0xb1   : > { %s7597_s27 = scalar_lea.vmem %s692_s5, 16  ;;  %s8165_s29 = smov [#allocation9]  }
  0xb2   : > { %p7598_p7 = scmp.ne.s32.totalorder %s692_s5, %s7597_s27  ;;  %s7601_s24 = sshll.u32 %s8165_s29, 4  ;;  %s7602_s24 = int_to_ptr.vmem [resolvable:$false] %s7601_s24 }
  0xb3   : > { %s7603_s22 = scalar_lea.vmem %s7602_s24, 32  ;;  %p7604_p5 = scmp.lt.s32.totalorder %s692_s5, %s7602_s24 }
  0xb4   : > { %p7599_p9 = pnand %p7598_p7, %p10347_p0  ;;  %p7605_p12 = scmp.lt.s32.totalorder %s7603_s22, %s7597_s27 }
  0xb6   : > { %p7600_p11 = pneg %p7599_p9  ;;  %p7606_p3 = por %p7605_p12, %p7604_p5 }
  0xb8   : > { %p7607_p10 = pnand %p7606_p3, %p7600_p11 }
  0xba   : > { %7610 = shalt.err (!%p7607_p10)
}
  0xbb   : > { %7054 = dma.hbm_to_vmem [thread:$0]  (%p10347_p0), %s8472_s0, 16, %s692_s5, %s8474_s14  }
  0xbc   : > { %s10348_s2 = sld [smem:[#allocation50_spill]]  ;;  %s701_s23 = scalar_lea.vmem [#allocation10], %s8462_s21 }
  0xbd   : > { %s708_s4 = sshll.u32 %s701_s23, 4  ;;  %s8502_s18 = sshll.u32 %s8462_s21, 6  ;;  %s709_s4 = int_to_ptr.vmem [resolvable:$true] %s708_s4 }
  0xc2   : > { %s10349_s17 = smov %s10348_s2  ;;  %s8498_s25 = scalar_lea.hbm %s10348_s2, %s8465_s15 }
  0xc3   : > { %s7611_s27 = scalar_lea.hbm %s8498_s25, 16  ;;  %s7615_s29 = scalar_lea.hbm %s10349_s17, 32 }
  0xc4   : > { %p7612_p8 = scmp.ne.s32.totalorder %s8498_s25, %s7611_s27  ;;  %p7616_p2 = scmp.lt.u32.totalorder %s8498_s25, %s10349_s17 }
  0xc5   : > { %p7617_p4 = scmp.lt.u32.totalorder %s7615_s29, %s7611_s27  ;;  %p7619_p7 = scmp.lt.u32.totalorder %s7611_s27, %s8498_s25 }
  0xc6   : > { %p7613_p13 = pnand %p7612_p8, %p10347_p0 }
  0xc7   : > { %p7618_p6 = por %p7617_p4, %p7616_p2 }
  0xc8   : > { %p7614_p1 = pneg %p7613_p13 }
  0xc9   : > { %p7620_p9 = por %p7619_p7, %p7618_p6 }
  0xcb   : > { %p7621_p11 = pnand %p7620_p9, %p7614_p1 }
  0xcd   : > { %7624 = shalt.err (!%p7621_p11)
}
  0xce   : > { %s7625_s16 = scalar_lea.vmem %s709_s4, 16  ;;  %s8166_s12 = smov [#allocation10]  }
  0xcf   : > { %p7626_p5 = scmp.ne.s32.totalorder %s709_s4, %s7625_s16  ;;  %s7629_s2 = sshll.u32 %s8166_s12, 4  ;;  %s7630_s2 = int_to_ptr.vmem [resolvable:$false] %s7629_s2 }
  0xd0   : > { %s7631_s23 = scalar_lea.vmem %s7630_s2, 32  ;;  %p7632_p10 = scmp.lt.s32.totalorder %s709_s4, %s7630_s2 }
  0xd1   : > { %p7627_p12 = pnand %p7626_p5, %p10347_p0  ;;  %p7633_p8 = scmp.lt.s32.totalorder %s7631_s23, %s7625_s16 }
  0xd3   : > { %p7628_p3 = pneg %p7627_p12  ;;  %p7634_p13 = por %p7633_p8, %p7632_p10 }
  0xd5   : > { %p7635_p2 = pnand %p7634_p13, %p7628_p3 }
  0xd7   : > { %7638 = shalt.err (!%p7635_p2)
}
  0xd8   : > { %7055 = dma.hbm_to_vmem [thread:$0]  (%p10347_p0), %s8498_s25, 16, %s709_s4, %s8474_s14  }
  0xd9   : > { %s8523_s27 = sshll.u32 %s8151_s3, 10  ;;  %s719_s5 = scalar_lea.vmem [#allocation11], %s8502_s18 }
  0xda   : > { %s726_s0 = sshll.u32 %s719_s5, 4  ;;  %s10350_s22 = sld [smem:[#allocation51_spill]]  ;;  %s8532_s0 = int_to_ptr.vmem [resolvable:$true] %s726_s0 }
  0xe0   : > { %s8530_s16 = scalar_lea.hbm %s10350_s22, %s8523_s27  ;;  %s7643_s2 = scalar_lea.hbm %s10350_s22, 2048 }
  0xe1   : > { %s7639_s12 = scalar_lea.hbm %s8530_s16, 1024  ;;  %p7644_p7 = scmp.lt.u32.totalorder %s8530_s16, %s10350_s22 }
  0xe2   : > { %p7640_p1 = scmp.ne.s32.totalorder %s8530_s16, %s7639_s12  ;;  %p7645_p9 = scmp.lt.u32.totalorder %s7643_s2, %s7639_s12 }
  0xe3   : > { %p7647_p5 = scmp.lt.u32.totalorder %s7639_s12, %s8530_s16 }
  0xe4   : > { %p7641_p4 = pnand %p7640_p1, %p10347_p0  ;;  %p7646_p11 = por %p7645_p9, %p7644_p7 }
  0xe6   : > { %p7642_p6 = pneg %p7641_p4  ;;  %p7648_p12 = por %p7647_p5, %p7646_p11 }
  0xe8   : > { %p7649_p3 = pnand %p7648_p12, %p7642_p6 }
  0xea   : > { %7652 = shalt.err (!%p7649_p3)
}
  0xeb   : > { %s7653_s29 = scalar_lea.vmem %s8532_s0, 1024  ;;  %s8167_s24 = smov [#allocation11]  }
  0xec   : > { %p7654_p10 = scmp.ne.s32.totalorder %s8532_s0, %s7653_s29  ;;  %s7657_s25 = sshll.u32 %s8167_s24, 4  ;;  %s7658_s25 = int_to_ptr.vmem [resolvable:$false] %s7657_s25 }
  0xed   : > { %s7659_s4 = scalar_lea.vmem %s7658_s25, 2048  ;;  %p7660_p2 = scmp.lt.s32.totalorder %s8532_s0, %s7658_s25 }
  0xee   : > { %p7655_p8 = pnand %p7654_p10, %p10347_p0  ;;  %p7661_p1 = scmp.lt.s32.totalorder %s7659_s4, %s7653_s29 }
  0xf0   : > { %p7656_p13 = pneg %p7655_p8  ;;  %p7662_p4 = por %p7661_p1, %p7660_p2 }
  0xf2   : > { %p7663_p7 = pnand %p7662_p4, %p7656_p13 }
  0xf4   : > { %7666 = shalt.err (!%p7663_p7)
}
  0xf5   : > { %s10272_s12 = smov 64   ;;  %s10274_s2 = smov 4  }
  0xf6   : > { %7056 = dma.hbm_to_vmem [thread:$0]  (%p10347_p0), %s8530_s16, 1024, %s8532_s0, %s8474_s14, %s10272_s12, %s10272_s12, %s10274_s2  }
  0xf7   : > { %s8560_s23 = sshll.u32 %s8462_s21, 2  ;;  %s8563_s5 = sshll.u32 %s8151_s3, 6 }
  0xf8   : > { %s10351_s25 = sld [smem:[#allocation52_spill]]  ;;  %s740_s13 = scalar_lea.vmem [#allocation12], %s8560_s23 }
  0xf9   : > { %s747_s17 = sshll.u32 %s740_s13, 4  ;;  %s8572_s17 = int_to_ptr.vmem [resolvable:$true] %s747_s17 }
  0xfe   : > { %s10352_s4 = smov %s10351_s25  ;;  %s8569_s1 = scalar_lea.hbm %s10351_s25, %s8563_s5 }
  0xff   : > { %s7667_s0 = scalar_lea.hbm %s8569_s1, 64  ;;  %s7671_s2 = scalar_lea.hbm %s10352_s4, 128 }
 0x100   : > { %p7668_p6 = scmp.ne.s32.totalorder %s8569_s1, %s7667_s0  ;;  %p7672_p5 = scmp.lt.u32.totalorder %s8569_s1, %s10352_s4 }
 0x101   : > { %p7673_p12 = scmp.lt.u32.totalorder %s7671_s2, %s7667_s0  ;;  %p7675_p10 = scmp.lt.u32.totalorder %s7667_s0, %s8569_s1 }
 0x102   : > { %p7669_p9 = pnand %p7668_p6, %p10347_p0 }
 0x103   : > { %p7674_p3 = por %p7673_p12, %p7672_p5 }
 0x104   : > { %p7670_p11 = pneg %p7669_p9 }
 0x105   : > { %p7676_p8 = por %p7675_p10, %p7674_p3 }
 0x107   : > { %p7677_p13 = pnand %p7676_p8, %p7670_p11 }
 0x109   : > { %7680 = shalt.err (!%p7677_p13)
}
 0x10a   : > { %s7681_s13 = scalar_lea.vmem %s8572_s17, 64  ;;  %s8170_s12 = smov [#allocation12]  }
 0x10b   : > { %p7682_p2 = scmp.ne.s32.totalorder %s8572_s17, %s7681_s13  ;;  %s7685_s25 = sshll.u32 %s8170_s12, 4  ;;  %s7686_s25 = int_to_ptr.vmem [resolvable:$false] %s7685_s25 }
 0x10c   : > { %s7687_s16 = scalar_lea.vmem %s7686_s25, 128  ;;  %p7688_p7 = scmp.lt.s32.totalorder %s8572_s17, %s7686_s25 }
 0x10d   : > { %p7683_p1 = pnand %p7682_p2, %p10347_p0  ;;  %p7689_p6 = scmp.lt.s32.totalorder %s7687_s16, %s7681_s13 }
 0x10f   : > { %p7684_p4 = pneg %p7683_p1  ;;  %p7690_p9 = por %p7689_p6, %p7688_p7 }
 0x111   : > { %p7691_p5 = pnand %p7690_p9, %p7684_p4 }
 0x113   : > { %7694 = shalt.err (!%p7691_p5)
}
 0x114   : > { %s10277_s2 = smov 16   ;;  %s10279_s0 = smov 1  }
 0x115   : > { %7057 = dma.hbm_to_vmem [thread:$0]  (%p10347_p0), %s8569_s1, 64, %s8572_s17, %s8474_s14, %s10277_s2, %s10277_s2, %s10279_s0  }
 0x116   : > { %s10353_s6 = sld [smem:[#allocation53_spill]]  ;;  %s761_s12 = scalar_lea.vmem [#allocation13], %s8502_s18 }
 0x117   : > { %s768_s25 = sshll.u32 %s761_s12, 4  ;;  %s10354_s7 = sld [smem:[#allocation54_spill]]  ;;  %s8606_s25 = int_to_ptr.vmem [resolvable:$true] %s768_s25 }
 0x11c   : > { %s8603_s13 = scalar_lea.hbm %s10353_s6, %s8523_s27  ;;  %s7699_s29 = scalar_lea.hbm %s10353_s6, 2048 }
 0x11d   : > { %s8612_s19 = scalar_lea.hbm %s10354_s7, %s8563_s5  ;;  %s7695_s20 = scalar_lea.hbm %s8603_s13, 1024 }
 0x11e   : > { %p7696_p11 = scmp.ne.s32.totalorder %s8603_s13, %s7695_s20  ;;  %p7700_p10 = scmp.lt.u32.totalorder %s8603_s13, %s10353_s6 }
 0x11f   : > { %p7701_p8 = scmp.lt.u32.totalorder %s7699_s29, %s7695_s20  ;;  %p7703_p2 = scmp.lt.u32.totalorder %s7695_s20, %s8603_s13 }
 0x120   : > { %p7697_p12 = pnand %p7696_p11, %p10347_p0 }
 0x121   : > { %p7702_p13 = por %p7701_p8, %p7700_p10 }
 0x122   : > { %p7698_p3 = pneg %p7697_p12 }
 0x123   : > { %p7704_p1 = por %p7703_p2, %p7702_p13 }
 0x125   : > { %p7705_p4 = pnand %p7704_p1, %p7698_p3 }
 0x127   : > { %7708 = shalt.err (!%p7705_p4)
}
 0x128   : > { %s7709_s4 = scalar_lea.vmem %s8606_s25, 1024  ;;  %s8173_s12 = smov [#allocation13]  }
 0x129   : > { %p7710_p7 = scmp.ne.s32.totalorder %s8606_s25, %s7709_s4  ;;  %s7713_s16 = sshll.u32 %s8173_s12, 4  ;;  %s7714_s16 = int_to_ptr.vmem [resolvable:$false] %s7713_s16 }
 0x12a   : > { %s7715_s2 = scalar_lea.vmem %s7714_s16, 2048  ;;  %p7716_p5 = scmp.lt.s32.totalorder %s8606_s25, %s7714_s16 }
 0x12b   : > { %p7711_p6 = pnand %p7710_p7, %p10347_p0  ;;  %p7717_p11 = scmp.lt.s32.totalorder %s7715_s2, %s7709_s4 }
 0x12d   : > { %p7712_p9 = pneg %p7711_p6  ;;  %p7718_p12 = por %p7717_p11, %p7716_p5 }
 0x12f   : > { %p7719_p10 = pnand %p7718_p12, %p7712_p9 }
 0x131   : > { %7722 = shalt.err (!%p7719_p10)
}
 0x132   : > { %s10355_s20 = smov 4   ;;  %s10356_s1 = smov 64  }
 0x133   : > { %7058 = dma.hbm_to_vmem [thread:$0]  (%p10347_p0), %s8603_s13, 1024, %s8606_s25, %s8474_s14, %s10356_s1, %s10356_s1, %s10355_s20  }
 0x134   : > { %s782_s17 = scalar_lea.vmem [#allocation14], %s8560_s23  ;;  %s10357_s8 = sld [smem:[#allocation55_spill]] }
 0x135   : > { %s789_s29 = sshll.u32 %s782_s17, 4  ;;  %s7723_s16 = scalar_lea.hbm %s8612_s19, 64  ;;  %s8640_s29 = int_to_ptr.vmem [resolvable:$true] %s789_s29 }
 0x136   : > { %p7724_p3 = scmp.ne.s32.totalorder %s8612_s19, %s7723_s16  ;;  %s7727_s6 = scalar_lea.hbm %s10354_s7, 128 }
 0x137   : > { %p7728_p2 = scmp.lt.u32.totalorder %s8612_s19, %s10354_s7  ;;  %p7729_p1 = scmp.lt.u32.totalorder %s7727_s6, %s7723_s16 }
 0x138   : > { %p7725_p8 = pnand %p7724_p3, %p10347_p0  ;;  %p7731_p7 = scmp.lt.u32.totalorder %s7723_s16, %s8612_s19 }
 0x139   : > { %p7730_p4 = por %p7729_p1, %p7728_p2 }
 0x13a   : > { %s8646_s12 = scalar_lea.hbm %s10357_s8, %s8523_s27  ;;  %p7726_p13 = pneg %p7725_p8 }
 0x13b   : > { %p7732_p6 = por %p7731_p7, %p7730_p4 }
 0x13d   : > { %p7733_p9 = pnand %p7732_p6, %p7726_p13 }
 0x13f   : > { %7736 = shalt.err (!%p7733_p9)
}
 0x140   : > { %s7737_s25 = scalar_lea.vmem %s8640_s29, 64  ;;  %s8174_s0 = smov [#allocation14]  }
 0x141   : > { %p7738_p5 = scmp.ne.s32.totalorder %s8640_s29, %s7737_s25  ;;  %s7741_s17 = sshll.u32 %s8174_s0, 4  ;;  %s7742_s17 = int_to_ptr.vmem [resolvable:$false] %s7741_s17 }
 0x142   : > { %s7743_s22 = scalar_lea.vmem %s7742_s17, 128  ;;  %p7744_p10 = scmp.lt.s32.totalorder %s8640_s29, %s7742_s17 }
 0x143   : > { %p7739_p11 = pnand %p7738_p5, %p10347_p0  ;;  %p7745_p3 = scmp.lt.s32.totalorder %s7743_s22, %s7737_s25 }
 0x145   : > { %p7740_p12 = pneg %p7739_p11  ;;  %p7746_p8 = por %p7745_p3, %p7744_p10 }
 0x147   : > { %p7747_p2 = pnand %p7746_p8, %p7740_p12 }
 0x149   : > { %7750 = shalt.err (!%p7747_p2)
}
 0x14a   : > { %s10358_s6 = smov 1   ;;  %s10359_s24 = smov 16  }
 0x14b   : > { %7059 = dma.hbm_to_vmem [thread:$0]  (%p10347_p0), %s8612_s19, 64, %s8640_s29, %s8474_s14, %s10359_s24, %s10359_s24, %s10358_s6  }
 0x14c   : > { %s803_s4 = scalar_lea.vmem [#allocation15], %s8502_s18  ;;  %s8680_s25 = scalar_lea.hbm %s10229_s9, %s8563_s5 }
 0x14d   : > { %s810_s16 = sshll.u32 %s803_s4, 4  ;;  %s7751_s0 = scalar_lea.hbm %s8646_s12, 1024  ;;  %s8674_s16 = int_to_ptr.vmem [resolvable:$true] %s810_s16 }
 0x14e   : > { %p7752_p13 = scmp.ne.s32.totalorder %s8646_s12, %s7751_s0  ;;  %s7755_s7 = scalar_lea.hbm %s10357_s8, 2048 }
 0x14f   : > { %p7756_p7 = scmp.lt.u32.totalorder %s8646_s12, %s10357_s8  ;;  %p7757_p6 = scmp.lt.u32.totalorder %s7755_s7, %s7751_s0 }
 0x150   : > { %p7753_p1 = pnand %p7752_p13, %p10347_p0  ;;  %p7759_p5 = scmp.lt.u32.totalorder %s7751_s0, %s8646_s12 }
 0x151   : > { %p7758_p9 = por %p7757_p6, %p7756_p7 }
 0x152   : > { %p7754_p4 = pneg %p7753_p1 }
 0x153   : > { %p7760_p11 = por %p7759_p5, %p7758_p9 }
 0x155   : > { %p7761_p12 = pnand %p7760_p11, %p7754_p4 }
 0x157   : > { %7764 = shalt.err (!%p7761_p12)
}
 0x158   : > { %s7765_s5 = scalar_lea.vmem %s8674_s16, 1024  ;;  %s8175_s29 = smov [#allocation15]  }
 0x159   : > { %p7766_p10 = scmp.ne.s32.totalorder %s8674_s16, %s7765_s5  ;;  %s7769_s4 = sshll.u32 %s8175_s29, 4  ;;  %s7770_s4 = int_to_ptr.vmem [resolvable:$false] %s7769_s4 }
 0x15a   : > { %s7771_s26 = scalar_lea.vmem %s7770_s4, 2048  ;;  %p7772_p2 = scmp.lt.s32.totalorder %s8674_s16, %s7770_s4 }
 0x15b   : > { %p7767_p3 = pnand %p7766_p10, %p10347_p0  ;;  %p7773_p13 = scmp.lt.s32.totalorder %s7771_s26, %s7765_s5 }
 0x15d   : > { %p7768_p8 = pneg %p7767_p3  ;;  %p7774_p1 = por %p7773_p13, %p7772_p2 }
 0x15f   : > { %p7775_p7 = pnand %p7774_p1, %p7768_p8 }
 0x161   : > { %7778 = shalt.err (!%p7775_p7)
}
 0x162   : > { %7060 = dma.hbm_to_vmem [thread:$0]  (%p10347_p0), %s8646_s12, 1024, %s8674_s16, %s8474_s14, %s10356_s1, %s10356_s1, %s10355_s20  }
 0x163   : > { %s824_s7 = scalar_lea.vmem [#allocation16], %s8560_s23  ;;  %s10283_s13 = sshll.u32 %s8462_s21, 4 }
 0x164   : > { %s831_s2 = sshll.u32 %s824_s7, 4  ;;  %s7779_s0 = scalar_lea.hbm %s8680_s25, 64  ;;  %s8709_s2 = int_to_ptr.vmem [resolvable:$true] %s831_s2 }
 0x165   : > { %p7780_p4 = scmp.ne.s32.totalorder %s8680_s25, %s7779_s0  ;;  %s7783_s19 = scalar_lea.hbm %s10229_s9, 128 }
 0x166   : > { %p7784_p5 = scmp.lt.u32.totalorder %s8680_s25, %s10229_s9  ;;  %p7785_p11 = scmp.lt.u32.totalorder %s7783_s19, %s7779_s0 }
 0x167   : > { %p7781_p6 = pnand %p7780_p4, %p10347_p0  ;;  %p7787_p10 = scmp.lt.u32.totalorder %s7779_s0, %s8680_s25 }
 0x168   : > { %p7786_p12 = por %p7785_p11, %p7784_p5 }
 0x169   : > { %p7782_p9 = pneg %p7781_p6 }
 0x16a   : > { %p7788_p3 = por %p7787_p10, %p7786_p12 }
 0x16c   : > { %p7789_p8 = pnand %p7788_p3, %p7782_p9 }
 0x16e   : > { %7792 = shalt.err (!%p7789_p8)
}
 0x16f   : > { %s7793_s23 = scalar_lea.vmem %s8709_s2, 64  ;;  %s8176_s12 = smov [#allocation16]  }
 0x170   : > { %p7794_p2 = scmp.ne.s32.totalorder %s8709_s2, %s7793_s23  ;;  %s7797_s16 = sshll.u32 %s8176_s12, 4  ;;  %s7798_s16 = int_to_ptr.vmem [resolvable:$false] %s7797_s16 }
 0x171   : > { %s7799_s4 = scalar_lea.vmem %s7798_s16, 128  ;;  %p7800_p7 = scmp.lt.s32.totalorder %s8709_s2, %s7798_s16 }
 0x172   : > { %p7795_p13 = pnand %p7794_p2, %p10347_p0  ;;  %p7801_p4 = scmp.lt.s32.totalorder %s7799_s4, %s7793_s23 }
 0x174   : > { %p7796_p1 = pneg %p7795_p13  ;;  %p7802_p6 = por %p7801_p4, %p7800_p7 }
 0x176   : > { %p7803_p5 = pnand %p7802_p6, %p7796_p1 }
 0x178   : > { %7806 = shalt.err (!%p7803_p5)
}
 0x179   : > { %7061 = dma.hbm_to_vmem [thread:$0]  (%p10347_p0), %s8680_s25, 64, %s8709_s2, %s8474_s14, %s10359_s24, %s10359_s24, %s10358_s6  }
 0x17a   : > { %s6500_s26 = sshll.u32 %s8151_s3, 8  ;;  %s845_s7 = scalar_lea.vmem [#allocation17], %s10283_s13 }
 0x17b   : > { %s852_s0 = sshll.u32 %s845_s7, 4  ;;  %s8744_s19 = scalar_lea.hbm %s10230_s10, %s6500_s26  ;;  %s8746_s0 = int_to_ptr.vmem [resolvable:$true] %s852_s0 }
 0x17c   : > { %s7807_s5 = scalar_lea.hbm %s8744_s19, 256  ;;  %s7811_s25 = scalar_lea.hbm %s10230_s10, 512 }
 0x17d   : > { %p7808_p9 = scmp.ne.s32.totalorder %s8744_s19, %s7807_s5  ;;  %p7812_p10 = scmp.lt.u32.totalorder %s8744_s19, %s10230_s10 }
 0x17e   : > { %p7813_p3 = scmp.lt.u32.totalorder %s7811_s25, %s7807_s5  ;;  %p7815_p2 = scmp.lt.u32.totalorder %s7807_s5, %s8744_s19 }
 0x17f   : > { %p7809_p11 = pnand %p7808_p9, %p10347_p0 }
 0x180   : > { %p7814_p8 = por %p7813_p3, %p7812_p10 }
 0x181   : > { %p7810_p12 = pneg %p7809_p11 }
 0x182   : > { %p7816_p13 = por %p7815_p2, %p7814_p8 }
 0x184   : > { %p7817_p1 = pnand %p7816_p13, %p7810_p12 }
 0x186   : > { %7820 = shalt.err (!%p7817_p1)
}
 0x187   : > { %s7821_s23 = scalar_lea.vmem %s8746_s0, 256  ;;  %s8177_s12 = smov [#allocation17]  }
 0x188   : > { %p7822_p7 = scmp.ne.s32.totalorder %s8746_s0, %s7821_s23  ;;  %s7825_s16 = sshll.u32 %s8177_s12, 4  ;;  %s7826_s16 = int_to_ptr.vmem [resolvable:$false] %s7825_s16 }
 0x189   : > { %s7827_s4 = scalar_lea.vmem %s7826_s16, 512  ;;  %p7828_p5 = scmp.lt.s32.totalorder %s8746_s0, %s7826_s16 }
 0x18a   : > { %p7823_p4 = pnand %p7822_p7, %p10347_p0  ;;  %p7829_p9 = scmp.lt.s32.totalorder %s7827_s4, %s7821_s23 }
 0x18c   : > { %p7824_p6 = pneg %p7823_p4  ;;  %p7830_p11 = por %p7829_p9, %p7828_p5 }
 0x18e   : > { %p7831_p10 = pnand %p7830_p11, %p7824_p6 }
 0x190   : > { %7834 = shalt.err (!%p7831_p10)
}
 0x191   : > { %7062 = dma.hbm_to_vmem [thread:$0]  (%p10347_p0), %s8744_s19, 256, %s8746_s0, %s8474_s14, %s10356_s1, %s10356_s1, %s10355_s20  }
 0x192   : > { %s8777_s22 = scalar_lea.hbm %s10231_s11, %s8465_s15  ;;  %s865_s5 = scalar_lea.vmem [#allocation18], %s8462_s21 }
 0x193   : > { %s872_s6 = sshll.u32 %s865_s5, 4  ;;  %s6228_s24 = sshll.u32 %s8462_s21, 3  ;;  %s873_s6 = int_to_ptr.vmem [resolvable:$true] %s872_s6 }
 0x194   : > { %s7835_s25 = scalar_lea.hbm %s8777_s22, 16  ;;  %s7839_s19 = scalar_lea.hbm %s10231_s11, 32 }
 0x195   : > { %p7836_p12 = scmp.ne.s32.totalorder %s8777_s22, %s7835_s25  ;;  %p7840_p2 = scmp.lt.u32.totalorder %s8777_s22, %s10231_s11 }
 0x196   : > { %p7841_p13 = scmp.lt.u32.totalorder %s7839_s19, %s7835_s25  ;;  %p7843_p7 = scmp.lt.u32.totalorder %s7835_s25, %s8777_s22 }
 0x197   : > { %p7837_p3 = pnand %p7836_p12, %p10347_p0 }
 0x198   : > { %p7842_p1 = por %p7841_p13, %p7840_p2 }
 0x199   : > { %p7838_p8 = pneg %p7837_p3 }
 0x19a   : > { %p7844_p4 = por %p7843_p7, %p7842_p1 }
 0x19c   : > { %p7845_p6 = pnand %p7844_p4, %p7838_p8 }
 0x19e   : > { %7848 = shalt.err (!%p7845_p6)
}
 0x19f   : > { %s7849_s12 = scalar_lea.vmem %s873_s6, 16  ;;  %s8178_s16 = smov [#allocation18]  }
 0x1a0   : > { %p7850_p5 = scmp.ne.s32.totalorder %s873_s6, %s7849_s12  ;;  %s7853_s4 = sshll.u32 %s8178_s16, 4  ;;  %s7854_s4 = int_to_ptr.vmem [resolvable:$false] %s7853_s4 }
 0x1a1   : > { %s7855_s7 = scalar_lea.vmem %s7854_s4, 32  ;;  %p7856_p10 = scmp.lt.s32.totalorder %s873_s6, %s7854_s4 }
 0x1a2   : > { %p7851_p9 = pnand %p7850_p5, %p10347_p0  ;;  %p7857_p12 = scmp.lt.s32.totalorder %s7855_s7, %s7849_s12 }
 0x1a4   : > { %p7852_p11 = pneg %p7851_p9  ;;  %p7858_p3 = por %p7857_p12, %p7856_p10 }
 0x1a6   : > { %p7859_p2 = pnand %p7858_p3, %p7852_p11 }
 0x1a8   : > { %7862 = shalt.err (!%p7859_p2)
}
 0x1a9   : > { %7063 = dma.hbm_to_vmem [thread:$0]  (%p10347_p0), %s8777_s22, 16, %s873_s6, %s8474_s14  }
 0x1aa   : > { %s6501_s17 = sshll.u32 %s8151_s3, 7  ;;  %s883_s5 = scalar_lea.vmem [#allocation19], %s6228_s24 }
 0x1ab   : > { %s890_s25 = sshll.u32 %s883_s5, 4  ;;  %s10360_s19 = sld [smem:[#allocation56_spill]]  ;;  %s8807_s25 = int_to_ptr.vmem [resolvable:$true] %s890_s25 }
 0x1b1   : > { %s8805_s29 = scalar_lea.hbm %s10360_s19, %s6501_s17  ;;  %s7867_s24 = scalar_lea.hbm %s10360_s19, 256 }
 0x1b2   : > { %s7863_s23 = scalar_lea.hbm %s8805_s29, 128  ;;  %p7868_p7 = scmp.lt.u32.totalorder %s8805_s29, %s10360_s19 }
 0x1b3   : > { %p7864_p8 = scmp.ne.s32.totalorder %s8805_s29, %s7863_s23  ;;  %p7869_p4 = scmp.lt.u32.totalorder %s7867_s24, %s7863_s23 }
 0x1b4   : > { %p7871_p5 = scmp.lt.u32.totalorder %s7863_s23, %s8805_s29 }
 0x1b5   : > { %p7865_p13 = pnand %p7864_p8, %p10347_p0  ;;  %p7870_p6 = por %p7869_p4, %p7868_p7 }
 0x1b7   : > { %p7866_p1 = pneg %p7865_p13  ;;  %p7872_p9 = por %p7871_p5, %p7870_p6 }
 0x1b9   : > { %p7873_p11 = pnand %p7872_p9, %p7866_p1 }
 0x1bb   : > { %7876 = shalt.err (!%p7873_p11)
}
 0x1bc   : > { %s7877_s4 = scalar_lea.vmem %s8807_s25, 128  ;;  %s8179_s7 = smov [#allocation19]  }
 0x1bd   : > { %p7878_p10 = scmp.ne.s32.totalorder %s8807_s25, %s7877_s4  ;;  %s7881_s17 = sshll.u32 %s8179_s7, 4  ;;  %s7882_s17 = int_to_ptr.vmem [resolvable:$false] %s7881_s17 }
 0x1be   : > { %s7883_s5 = scalar_lea.vmem %s7882_s17, 256  ;;  %p7884_p2 = scmp.lt.s32.totalorder %s8807_s25, %s7882_s17 }
 0x1bf   : > { %p7879_p12 = pnand %p7878_p10, %p10347_p0  ;;  %p7885_p8 = scmp.lt.s32.totalorder %s7883_s5, %s7877_s4 }
 0x1c1   : > { %p7880_p3 = pneg %p7879_p12  ;;  %p7886_p13 = por %p7885_p8, %p7884_p2 }
 0x1c3   : > { %p7887_p7 = pnand %p7886_p13, %p7880_p3 }
 0x1c5   : > { %7890 = shalt.err (!%p7887_p7)
}
 0x1c6   : > { %7064 = dma.hbm_to_vmem [thread:$0]  (%p10347_p0), %s8805_s29, 128, %s8807_s25, %s8474_s14, %s10356_s1, %s10356_s1, %s10355_s20  }
 0x1c7   : > { %s10361_s23 = sld [smem:[#allocation57_spill]]  ;;  %s903_s6 = scalar_lea.vmem [#allocation20], %s8462_s21 }
 0x1c8   : > { %s910_s24 = sshll.u32 %s903_s6, 4  ;;  %s10362_s4 = sld [smem:[#allocation58_spill]]  ;;  %s911_s24 = int_to_ptr.vmem [resolvable:$true] %s910_s24 }
 0x1cd   : > { %s8838_s22 = scalar_lea.hbm %s10361_s23, %s8465_s15  ;;  %s7895_s5 = scalar_lea.hbm %s10361_s23, 32 }
 0x1ce   : > { %s8845_s7 = scalar_lea.hbm %s10362_s4, %s8465_s15  ;;  %s7891_s17 = scalar_lea.hbm %s8838_s22, 16 }
 0x1cf   : > { %p7892_p1 = scmp.ne.s32.totalorder %s8838_s22, %s7891_s17  ;;  %p7896_p5 = scmp.lt.u32.totalorder %s8838_s22, %s10361_s23 }
 0x1d0   : > { %p7897_p9 = scmp.lt.u32.totalorder %s7895_s5, %s7891_s17  ;;  %p7899_p10 = scmp.lt.u32.totalorder %s7891_s17, %s8838_s22 }
 0x1d1   : > { %p7893_p4 = pnand %p7892_p1, %p10347_p0 }
 0x1d2   : > { %p7898_p11 = por %p7897_p9, %p7896_p5 }
 0x1d3   : > { %p7894_p6 = pneg %p7893_p4 }
 0x1d4   : > { %p7900_p12 = por %p7899_p10, %p7898_p11 }
 0x1d6   : > { %p7901_p3 = pnand %p7900_p12, %p7894_p6 }
 0x1d8   : > { %7904 = shalt.err (!%p7901_p3)
}
 0x1d9   : > { %s7905_s6 = scalar_lea.vmem %s911_s24, 16  ;;  %s8180_s12 = smov [#allocation20]  }
 0x1da   : > { %p7906_p2 = scmp.ne.s32.totalorder %s911_s24, %s7905_s6  ;;  %s7909_s16 = sshll.u32 %s8180_s12, 4  ;;  %s7910_s16 = int_to_ptr.vmem [resolvable:$false] %s7909_s16 }
 0x1db   : > { %s7911_s25 = scalar_lea.vmem %s7910_s16, 32  ;;  %p7912_p7 = scmp.lt.s32.totalorder %s911_s24, %s7910_s16 }
 0x1dc   : > { %p7907_p8 = pnand %p7906_p2, %p10347_p0  ;;  %p7913_p1 = scmp.lt.s32.totalorder %s7911_s25, %s7905_s6 }
 0x1de   : > { %p7908_p13 = pneg %p7907_p8  ;;  %p7914_p4 = por %p7913_p1, %p7912_p7 }
 0x1e0   : > { %p7915_p5 = pnand %p7914_p4, %p7908_p13 }
 0x1e2   : > { %7918 = shalt.err (!%p7915_p5)
}
 0x1e3   : > { %7065 = dma.hbm_to_vmem [thread:$0]  (%p10347_p0), %s8838_s22, 16, %s911_s24, %s8474_s14  }
 0x1e4   : > { %s920_s17 = scalar_lea.vmem [#allocation21], %s8462_s21  ;;  %s10363_s0 = sld [smem:[#allocation59_spill]] }
 0x1e5   : > { %s927_s29 = sshll.u32 %s920_s17, 4  ;;  %s7919_s12 = scalar_lea.hbm %s8845_s7, 16  ;;  %s928_s29 = int_to_ptr.vmem [resolvable:$true] %s927_s29 }
 0x1e6   : > { %p7920_p6 = scmp.ne.s32.totalorder %s8845_s7, %s7919_s12  ;;  %s7923_s13 = scalar_lea.hbm %s10362_s4, 32 }
 0x1e7   : > { %p7924_p10 = scmp.lt.u32.totalorder %s8845_s7, %s10362_s4  ;;  %p7925_p12 = scmp.lt.u32.totalorder %s7923_s13, %s7919_s12 }
 0x1e8   : > { %p7921_p9 = pnand %p7920_p6, %p10347_p0  ;;  %p7927_p2 = scmp.lt.u32.totalorder %s7919_s12, %s8845_s7 }
 0x1e9   : > { %p7926_p3 = por %p7925_p12, %p7924_p10 }
 0x1ea   : > { %s8871_s6 = scalar_lea.hbm %s10363_s0, %s6500_s26  ;;  %p7922_p11 = pneg %p7921_p9 }
 0x1eb   : > { %p7928_p8 = por %p7927_p2, %p7926_p3 }
 0x1ed   : > { %p7929_p13 = pnand %p7928_p8, %p7922_p11 }
 0x1ef   : > { %7932 = shalt.err (!%p7929_p13)
}
 0x1f0   : > { %s7933_s26 = scalar_lea.vmem %s928_s29, 16  ;;  %s8181_s24 = smov [#allocation21]  }
 0x1f1   : > { %p7934_p7 = scmp.ne.s32.totalorder %s928_s29, %s7933_s26  ;;  %s7937_s17 = sshll.u32 %s8181_s24, 4  ;;  %s7938_s17 = int_to_ptr.vmem [resolvable:$false] %s7937_s17 }
 0x1f2   : > { %s7939_s5 = scalar_lea.vmem %s7938_s17, 32  ;;  %p7940_p5 = scmp.lt.s32.totalorder %s928_s29, %s7938_s17 }
 0x1f3   : > { %p7935_p1 = pnand %p7934_p7, %p10347_p0  ;;  %p7941_p6 = scmp.lt.s32.totalorder %s7939_s5, %s7933_s26 }
 0x1f5   : > { %p7936_p4 = pneg %p7935_p1  ;;  %p7942_p9 = por %p7941_p6, %p7940_p5 }
 0x1f7   : > { %p7943_p10 = pnand %p7942_p9, %p7936_p4 }
 0x1f9   : > { %7946 = shalt.err (!%p7943_p10)
}
 0x1fa   : > { %7066 = dma.hbm_to_vmem [thread:$0]  (%p10347_p0), %s8845_s7, 16, %s928_s29, %s8474_s14  }
 0x1fb   : > { %s10364_s8 = sshll.u32 %s8462_s21, 4  ;;  %s10365_s25 = sld [smem:[#allocation60_spill]] }
 0x1fc   : > { %s938_s13 = scalar_lea.vmem [#allocation22], %s10364_s8  ;;  %s7947_s24 = scalar_lea.hbm %s8871_s6, 256 }
 0x1fd   : > { %s945_s2 = sshll.u32 %s938_s13, 4  ;;  %p7948_p11 = scmp.ne.s32.totalorder %s8871_s6, %s7947_s24  ;;  %s8893_s2 = int_to_ptr.vmem [resolvable:$true] %s945_s2 }
 0x1fe   : > { %s7951_s4 = scalar_lea.hbm %s10363_s0, 512  ;;  %p7952_p2 = scmp.lt.u32.totalorder %s8871_s6, %s10363_s0 }
 0x1ff   : > { %p7949_p12 = pnand %p7948_p11, %p10347_p0  ;;  %p7953_p8 = scmp.lt.u32.totalorder %s7951_s4, %s7947_s24 }
 0x200   : > { %p7955_p7 = scmp.lt.u32.totalorder %s7947_s24, %s8871_s6 }
 0x201   : > { %s10366_s22 = smov %s10365_s25  ;;  %s8899_s26 = scalar_lea.hbm %s10365_s25, %s8465_s15 }
 0x202   : > { %p7950_p3 = pneg %p7949_p12  ;;  %p7954_p13 = por %p7953_p8, %p7952_p2 }
 0x204   : > { %p7956_p1 = por %p7955_p7, %p7954_p13 }
 0x206   : > { %p7957_p4 = pnand %p7956_p1, %p7950_p3 }
 0x208   : > { %7960 = shalt.err (!%p7957_p4)
}
 0x209   : > { %s7961_s8 = scalar_lea.vmem %s8893_s2, 256  ;;  %s8182_s13 = smov [#allocation22]  }
 0x20a   : > { %p7962_p5 = scmp.ne.s32.totalorder %s8893_s2, %s7961_s8  ;;  %s7965_s12 = sshll.u32 %s8182_s13, 4  ;;  %s7966_s12 = int_to_ptr.vmem [resolvable:$false] %s7965_s12 }
 0x20b   : > { %s7967_s16 = scalar_lea.vmem %s7966_s12, 512  ;;  %p7968_p10 = scmp.lt.s32.totalorder %s8893_s2, %s7966_s12 }
 0x20c   : > { %p7963_p6 = pnand %p7962_p5, %p10347_p0  ;;  %p7969_p11 = scmp.lt.s32.totalorder %s7967_s16, %s7961_s8 }
 0x20e   : > { %p7964_p9 = pneg %p7963_p6  ;;  %p7970_p12 = por %p7969_p11, %p7968_p10 }
 0x210   : > { %p7971_p2 = pnand %p7970_p12, %p7964_p9 }
 0x212   : > { %7974 = shalt.err (!%p7971_p2)
}
 0x213   : > { %7067 = dma.hbm_to_vmem [thread:$0]  (%p10347_p0), %s8871_s6, 256, %s8893_s2, %s8474_s14, %s10356_s1, %s10356_s1, %s10355_s20  }
 0x214   : > { %s958_s4 = scalar_lea.vmem [#allocation23], %s8462_s21  ;;  %s10367_s5 = sld [smem:[#allocation61_spill]] }
 0x215   : > { %s965_s25 = sshll.u32 %s958_s4, 4  ;;  %s7975_s29 = scalar_lea.hbm %s8899_s26, 16  ;;  %s966_s25 = int_to_ptr.vmem [resolvable:$true] %s965_s25 }
 0x216   : > { %p7976_p3 = scmp.ne.s32.totalorder %s8899_s26, %s7975_s29  ;;  %s7979_s12 = scalar_lea.hbm %s10366_s22, 32 }
 0x217   : > { %p7980_p7 = scmp.lt.u32.totalorder %s8899_s26, %s10366_s22  ;;  %p7981_p1 = scmp.lt.u32.totalorder %s7979_s12, %s7975_s29 }
 0x218   : > { %p7977_p8 = pnand %p7976_p3, %p10347_p0  ;;  %p7983_p5 = scmp.lt.u32.totalorder %s7975_s29, %s8899_s26 }
 0x219   : > { %p7982_p4 = por %p7981_p1, %p7980_p7 }
 0x21a   : > { %s8931_s7 = scalar_lea.hbm %s10367_s5, %s8523_s27  ;;  %p7978_p13 = pneg %p7977_p8 }
 0x21b   : > { %p7984_p6 = por %p7983_p5, %p7982_p4 }
 0x21d   : > { %p7985_p9 = pnand %p7984_p6, %p7978_p13 }
 0x21f   : > { %7988 = shalt.err (!%p7985_p9)
}
 0x220   : > { %s7989_s27 = scalar_lea.vmem %s966_s25, 16  ;;  %s8183_s6 = smov [#allocation23]  }
 0x221   : > { %p7990_p10 = scmp.ne.s32.totalorder %s966_s25, %s7989_s27  ;;  %s7993_s2 = sshll.u32 %s8183_s6, 4  ;;  %s7994_s2 = int_to_ptr.vmem [resolvable:$false] %s7993_s2 }
 0x222   : > { %s7995_s4 = scalar_lea.vmem %s7994_s2, 32  ;;  %p7996_p2 = scmp.lt.s32.totalorder %s966_s25, %s7994_s2 }
 0x223   : > { %p7991_p11 = pnand %p7990_p10, %p10347_p0  ;;  %p7997_p3 = scmp.lt.s32.totalorder %s7995_s4, %s7989_s27 }
 0x225   : > { %p7992_p12 = pneg %p7991_p11  ;;  %p7998_p8 = por %p7997_p3, %p7996_p2 }
 0x227   : > { %p7999_p1 = pnand %p7998_p8, %p7992_p12 }
 0x229   : > { %8002 = shalt.err (!%p7999_p1)
}
 0x22a   : > { %7068 = dma.hbm_to_vmem [thread:$0]  (%p10347_p0), %s8899_s26, 16, %s966_s25, %s8474_s14  }
 0x22b   : > { %s976_s0 = scalar_lea.vmem [#allocation24], %s8502_s18  ;;  %s10368_s8 = sld [smem:[#allocation62_spill]] }
 0x22c   : > { %s983_s24 = sshll.u32 %s976_s0, 4  ;;  %s8003_s12 = scalar_lea.hbm %s8931_s7, 1024  ;;  %s8952_s24 = int_to_ptr.vmem [resolvable:$true] %s983_s24 }
 0x22d   : > { %p8004_p13 = scmp.ne.s32.totalorder %s8931_s7, %s8003_s12  ;;  %s8007_s6 = scalar_lea.hbm %s10367_s5, 2048 }
 0x22e   : > { %p8008_p5 = scmp.lt.u32.totalorder %s8931_s7, %s10367_s5  ;;  %p8009_p6 = scmp.lt.u32.totalorder %s8007_s6, %s8003_s12 }
 0x22f   : > { %p8005_p7 = pnand %p8004_p13, %p10347_p0  ;;  %p8011_p10 = scmp.lt.u32.totalorder %s8003_s12, %s8931_s7 }
 0x230   : > { %p8010_p9 = por %p8009_p6, %p8008_p5 }
 0x231   : > { %s8958_s13 = scalar_lea.hbm %s10368_s8, %s8465_s15  ;;  %p8006_p4 = pneg %p8005_p7 }
 0x232   : > { %p8012_p11 = por %p8011_p10, %p8010_p9 }
 0x234   : > { %p8013_p12 = pnand %p8012_p11, %p8006_p4 }
 0x236   : > { %8016 = shalt.err (!%p8013_p12)
}
 0x237   : > { %s8017_s15 = scalar_lea.vmem %s8952_s24, 1024  ;;  %s8184_s18 = smov [#allocation24]  }
 0x238   : > { %p8018_p2 = scmp.ne.s32.totalorder %s8952_s24, %s8017_s15  ;;  %s8021_s25 = sshll.u32 %s8184_s18, 4  ;;  %s8022_s25 = int_to_ptr.vmem [resolvable:$false] %s8021_s25 }
 0x239   : > { %s8023_s4 = scalar_lea.vmem %s8022_s25, 2048  ;;  %p8024_p1 = scmp.lt.s32.totalorder %s8952_s24, %s8022_s25 }
 0x23a   : > { %p8019_p3 = pnand %p8018_p2, %p10347_p0  ;;  %p8025_p13 = scmp.lt.s32.totalorder %s8023_s4, %s8017_s15 }
 0x23c   : > { %p8020_p8 = pneg %p8019_p3  ;;  %p8026_p7 = por %p8025_p13, %p8024_p1 }
 0x23e   : > { %p8027_p5 = pnand %p8026_p7, %p8020_p8 }
 0x240   : > { %8030 = shalt.err (!%p8027_p5)
}
 0x241   : > { %7069 = dma.hbm_to_vmem [thread:$0]  (%p10347_p0), %s8931_s7, 1024, %s8952_s24, %s8474_s14, %s10356_s1, %s10356_s1, %s10355_s20  }
 0x242   : > { %s996_s0 = scalar_lea.vmem [#allocation25], %s8462_s21  ;;  %s8031_s29 = scalar_lea.hbm %s8958_s13, 16 }
 0x243   : > { %s1003_s17 = sshll.u32 %s996_s0, 4  ;;  %p8032_p4 = scmp.ne.s32.totalorder %s8958_s13, %s8031_s29  ;;  %s1004_s17 = int_to_ptr.vmem [resolvable:$true] %s1003_s17 }
 0x244   : > { %s8035_s27 = scalar_lea.hbm %s10368_s8, 32  ;;  %p8036_p10 = scmp.lt.u32.totalorder %s8958_s13, %s10368_s8 }
 0x245   : > { %p8033_p6 = pnand %p8032_p4, %p10347_p0  ;;  %p8037_p11 = scmp.lt.u32.totalorder %s8035_s27, %s8031_s29 }
 0x246   : > { %p8039_p2 = scmp.lt.u32.totalorder %s8031_s29, %s8958_s13 }
 0x247   : > { %p8034_p9 = pneg %p8033_p6  ;;  %p8038_p12 = por %p8037_p11, %p8036_p10 }
 0x249   : > { %p8040_p3 = por %p8039_p2, %p8038_p12 }
 0x24b   : > { %p8041_p8 = pnand %p8040_p3, %p8034_p9 }
 0x24d   : > { %8044 = shalt.err (!%p8041_p8)
}
 0x24e   : > { %s8045_s21 = scalar_lea.vmem %s1004_s17, 16  ;;  %s8185_s20 = smov [#allocation25]  }
 0x24f   : > { %p8046_p1 = scmp.ne.s32.totalorder %s1004_s17, %s8045_s21  ;;  %s8049_s1 = sshll.u32 %s8185_s20, 4  ;;  %s8050_s1 = int_to_ptr.vmem [resolvable:$false] %s8049_s1 }
 0x250   : > { %s8051_s7 = scalar_lea.vmem %s8050_s1, 32  ;;  %p8052_p5 = scmp.lt.s32.totalorder %s1004_s17, %s8050_s1 }
 0x251   : > { %p8047_p13 = pnand %p8046_p1, %p10347_p0  ;;  %p8053_p4 = scmp.lt.s32.totalorder %s8051_s7, %s8045_s21 }
 0x253   : > { %p8048_p7 = pneg %p8047_p13  ;;  %p8054_p6 = por %p8053_p4, %p8052_p5 }
 0x255   : > { %p8055_p10 = pnand %p8054_p6, %p8048_p7 }
 0x257   : > { %8058 = shalt.err (!%p8055_p10)
}
 0x258   : > { %7070 = dma.hbm_to_vmem [thread:$0]  (%p10347_p0), %s8958_s13, 16, %s1004_s17, %s8474_s14  }
 0x259 PF: > { %s10369_s24 = sld [smem:[#allocation43_spill]] }
 0x25f   : > { %p10370_p9 = scmp.ne.s32.totalorder %s10369_s24, 0 }
 0x261   : > { %1012 = sbr.rel (%p10370_p9) target bundleno = 6702 (0x1a2e), region = 104 }
 0x268   : > { %s10371_s26 = sld [smem:[#allocation39_spill]] }
 0x26e   : > { %p10372_p11 = scmp.eq.s32.totalorder %s10371_s26, 0 }
 0x270   : > { %8110 = dma.done.wait (%p10372_p11), [#allocation5], 512   ;;  %p10373_p12 = pmov %p10372_p11 }
 0x271   : > { %p10374_p2 = pmov %p10372_p11 }
 0x272   : > { %8112 = vsyncadd (%p10373_p12), [#allocation5], 4294966784 }
 0x273   : > { %8114 = dma.done.wait (%p10374_p2), [#allocation8], 64   ;;  %p10375_p3 = pmov %p10374_p2 }
 0x274   : > { %s10376_s30 = sld [smem:[#allocation36_spill]]  ;;  %s10377_s15 = sld [smem:[#allocation41_spill]] }
 0x275   : > { %8116 = vsyncadd (%p10375_p3), [#allocation8], 4294967232  ;;  %s1022_s14 = sand.u32 1, %s10371_s26  }
 0x276   : > { %s1023_s18 = scalar_lea.sflag [#allocation5], %s1022_s14 }
 0x27a   : > { %s9016_s13 = sand.u32 1, %s10376_s30   ;;  %p10378_p0 = scmp.ne.s32.totalorder %s10377_s15, 0 }
 0x27c   : > { %8118 = dma.done.wait (%p10378_p0), %s1023_s18, 5040  }
 0x27d   : > { %8120 = vsyncadd (%p10378_p0), %s1023_s18, 4294962256  ;;  %s6244_s4 = sshll.u32 %s9016_s13, 6  ;;  %s6245_s0 = sshll.u32 %s9016_s13, 2 }
 0x27e   : > { %s6250_s17 = sshll.u32 %s9016_s13, 4  ;;  %s6251_s29 = sshll.u32 %s9016_s13, 3 }
 0x27f   : > { %s9028_s16 = scalar_lea.vmem [#allocation11], %s6244_s4  ;;  %s9030_s27 = scalar_lea.vmem [#allocation12], %s6245_s0 }
 0x280   : > { %s9032_s6 = scalar_lea.vmem [#allocation13], %s6244_s4  ;;  %s9034_s2 = scalar_lea.vmem [#allocation14], %s6245_s0 }
 0x281   : > { %s9036_s21 = scalar_lea.vmem [#allocation15], %s6244_s4  ;;  %s9038_s20 = scalar_lea.vmem [#allocation16], %s6245_s0 }
 0x282   : > { %s9040_s1 = scalar_lea.vmem [#allocation17], %s6250_s17  ;;  %s1104_s7 = scalar_lea.vmem [#allocation18], %s9016_s13 }
 0x283   : > { %s9043_s24 = scalar_lea.vmem [#allocation19], %s6251_s29  ;;  %s1121_s30 = scalar_lea.vmem [#allocation20], %s9016_s13 }
 0x284   : > { %s1129_s15 = scalar_lea.vmem [#allocation21], %s9016_s13  ;;  %s9047_s14 = scalar_lea.vmem [#allocation22], %s6250_s17 }
 0x285   : > { %s1146_s18 = scalar_lea.vmem [#allocation23], %s9016_s13  ;;  %s9050_s12 = scalar_lea.vmem [#allocation24], %s6244_s4 }
 0x286   : > { %s1163_s25 = scalar_lea.vmem [#allocation25], %s9016_s13  ;;  %p10379_p8 = pmov %p10374_p2 }
 0x287   : > { %p10380_p1 = pmov %p10374_p2 }
 0x288   : > { %8122 = dma.done.wait (%p10379_p8), [#allocation8], 16  }
 0x289   : > { %8124 = vsyncadd (%p10380_p1), [#allocation8], 4294967280  ;;  %p10381_p13 = pmov %p10380_p1 }
 0x28a   : > { %p10382_p7 = pmov %p10380_p1 }
 0x28b   : > { %8126 = dma.done.wait (%p10381_p13), [#allocation28], 16  }
 0x28c   : > { %8128 = vsyncadd (%p10382_p7), [#allocation28], 4294967280  ;;  %s10383_s0 = sld [smem:[#allocation38_spill]] }
 0x292   : > { %p6256_p5 = scmp.ne.s32.totalorder %s10383_s0, 0 }
 0x293   : > { %v1306_v0 = vld [vmem:[#allocation4] sm:$0xff] (!%p6256_p5)  ;;  %vm1310_vm0 = vcmask (!%p6256_p5), 261120   ;;  %v1307_v1 = vld [vmem:[#allocation4 + $0x8] sm:$0xff] (!%p6256_p5)  ;;  %v1308_v2 = vld [vmem:[#allocation4 + $0x10] sm:$0xff] (!%p6256_p5) }
 0x294   : > { %1305 = sbr.rel (%p6256_p5) target bundleno = 667 (0x29b), region = 192  ;;  %1311 = vst.msk [vmem:[#allocation2] sm:$0xff] (!%p6256_p5), %vm1310_vm0, %v1306_v0  ;;  %1312 = vst.msk [vmem:[#allocation2 + $0x8] sm:$0xff] (!%p6256_p5), %vm1310_vm0, %v1307_v1  ;;  %v1309_v3 = vld [vmem:[#allocation4 + $0x18] sm:$0xff] (!%p6256_p5) }
 0x295   : > { %1313 = vst.msk [vmem:[#allocation2 + $0x10] sm:$0xff] (!%p6256_p5), %vm1310_vm0, %v1308_v2  ;;  %1314 = vst.msk [vmem:[#allocation2 + $0x18] sm:$0xff] (!%p6256_p5), %vm1310_vm0, %v1309_v3 }
 0x29b PF: > { %v1315_v4 = vld [vmem:[#allocation2] sm:$0xff]  ;;  %vm1325_vm1 = vcmask 261120   ;;  %v1316_v6 = vld [vmem:[#allocation2 + $0x8] sm:$0xff]  ;;  %v7337_v32 = vld [vmem:[%s9028_s16] sm:$0xff]   ;;  %s10384_s26 = scalar_lea.vmem [#allocation9], %s9016_s13  ;;  %s10385_s4 = scalar_lea.vmem [#allocation10], %s9016_s13 }
 0x29c   : > { %v1317_v5 = vld [vmem:[#allocation2 + $0x10] sm:$0xff]  ;;  %v1326_v7 = vsel %vm1325_vm1, %v1315_v4, 0.0  ;;  %v1318_v9 = vld [vmem:[#allocation2 + $0x18] sm:$0xff]  ;;  %v1329_v10 = vsel %vm1325_vm1, %v1316_v6, 0.0  ;;  %6694 = vmatprep.subr.bf16.mxu1 %v7337_v32  ;;  %v7338_v33 = vld [vmem:[%s9028_s16 + $0x8] sm:$0xff]   ;;  %vm1707_vm2 = vcmask 64512  }
 0x29d   : > { %v1332_v8 = vsel %vm1325_vm1, %v1317_v5, 0.0  ;;  %1327 = vadd.xlane.f32.xlu0 %v1326_v7  ;;  %v1335_v11 = vsel %vm1325_vm1, %v1318_v9, 0.0  ;;  %6695 = vmatpush3.bf16.msra.mxu1 %v7337_v32  ;;  %v7339_v34 = vld [vmem:[%s9032_s6] sm:$0xff]   ;;  %v7340_v3 = vld [vmem:[%s9032_s6 + $0x8] sm:$0xff]   ;;  %vm8187_vm3 = vmmov 0   ;;  %vm2245_vm4 = vcmask 1043456  }
 0x29e   : > { %1333 = vadd.xlane.f32.xlu1 %v1332_v8  ;;  %6696 = vmatprep.subr.bf16.mxu1 %v7338_v33  ;;  %v6257_v49 = vld [vmem:[%s10384_s26] ss:$0 sm:$0xff]  ;;  %v10304_v8 = vmov 0.0   ;;  %s8197_s17 = smov 8   ;;  %s8198_s29 = smov 16   ;;  %vm3394_vm0 = vcmask 130112  }
 0x29f   : > { %v6258_v54 = vld [vmem:[%s10385_s4] ss:$0 sm:$0xff]  ;;  %6724 = vmatprep.subr.bf16.mxu0 %v10304_v8  ;;  %6726 = vmatprep.mubr.msk.bf16.mxu0 %vm8187_vm3, %v10304_v8  ;;  %s10404_s13 = sld [smem:[#allocation38_spill]] }
 0x2a1   : > { %1330 = vadd.xlane.f32.xlu0 %v1329_v10  ;;  %6697 = vmatpush3.bf16.msra.mxu1 %v7338_v33  ;;  %v10296_v10 = vmov 0  }
 0x2a2   : > { %1336 = vadd.xlane.f32.xlu1 %v1335_v11  ;;  %6702 = vmatprep.subr.bf16.mxu1 %v7339_v34  ;;  %v6268_v11 = vld [vmem:[%s9030_s27] ss:$0 sm:$0xff] }
 0x2a3   : > { %7199 = vset.pattern.permute.xlu0 %v10296_v10 }
 0x2a5   : > { %p6487_p4 = scmp.ne.s32.totalorder %s10404_s13, 1 }
 0x32a   : > { %v1328_v12 = vpop.xlane.xlu0 %1327 }
 0x32b   : > { %v1334_v13 = vpop.xlane.xlu1 %1333  ;;  %v1339_v14 = vmul.f32 0.03125, %v1328_v12 }
 0x32c   : > { %v1341_v15 = vmul.f32 0.03125, %v1334_v13 }
 0x32d   : > { %v1343_v16 = vsub.f32 %v1315_v4, %v1339_v14  ;;  %v7341_v4 = vld [vmem:[%s9036_s21] sm:$0xff]  }
 0x32e   : > { %v1345_v17 = vsub.f32 %v1317_v5, %v1341_v15  ;;  %v1331_v18 = vpop.xlane.xlu0 %1330  ;;  %v7342_v5 = vld [vmem:[%s9036_s21 + $0x8] sm:$0xff]  }
 0x32f   : > { %v1337_v19 = vpop.xlane.xlu1 %1336  ;;  %v1340_v20 = vmul.f32 0.03125, %v1331_v18  ;;  %v1347_v22 = vmul.f32 %v1343_v16, %v1343_v16 }
 0x330   : > { %v1342_v21 = vmul.f32 0.03125, %v1337_v19  ;;  %v1349_v23 = vmul.f32 %v1345_v17, %v1345_v17 }
 0x331   : > { %v1344_v24 = vsub.f32 %v1316_v6, %v1340_v20  ;;  %v1351_v26 = vsel %vm1325_vm1, %v1347_v22, 0.0  ;;  %v9097_v6 = vld [vmem:[%s9043_s24] sm:$0x1f]  }
 0x332   : > { %v1346_v25 = vsub.f32 %v1318_v9, %v1342_v21  ;;  %1352 = vadd.xlane.f32.xlu0 %v1351_v26  ;;  %v1357_v27 = vsel %vm1325_vm1, %v1349_v23, 0.0  ;;  %v9103_v7 = vsel %vm1707_vm2, %v9097_v6, 0  ;;  %v10300_v9 = vmov 1  }
 0x333   : > { %v1348_v28 = vmul.f32 %v1344_v24, %v1344_v24  ;;  %7200 = vset.pattern.permute.xlu1 %v10300_v9 }
 0x334   : > { %v1350_v29 = vmul.f32 %v1346_v25, %v1346_v25 }
 0x335   : > { %v1354_v30 = vsel %vm1325_vm1, %v1348_v28, 0.0 }
 0x336   : > { %1358 = vadd.xlane.f32.xlu0 %v1357_v27  ;;  %1355 = vadd.xlane.f32.xlu1 %v1354_v30  ;;  %v1360_v31 = vsel %vm1325_vm1, %v1350_v29, 0.0 }
 0x33a   : > { %1361 = vadd.xlane.f32.xlu1 %v1360_v31 }
 0x3bf   : > { %v1353_v35 = vpop.xlane.xlu0 %1352 }
 0x3c0   : > { %v1363_v36 = vmul.f32 0.03125, %v1353_v35 }
 0x3c2   : > { %v1367_v37 = vadd.f32 1e-05, %v1363_v36 }
 0x3c3   : > { %v1356_v38 = vpop.xlane.xlu1 %1355  ;;  %v1359_v39 = vpop.xlane.xlu0 %1358 }
 0x3c4   : > { %7374 = vrsqrt.f32 %v1367_v37  ;;  %v1364_v40 = vmul.f32 0.03125, %v1356_v38  ;;  %v1365_v41 = vmul.f32 0.03125, %v1359_v39  ;;  %v6278_v37 = vld [vmem:[%s9038_s20] ss:$0 sm:$0xff] }
 0x3c6   : > { %v1368_v42 = vadd.f32 1e-05, %v1364_v40  ;;  %v1369_v43 = vadd.f32 1e-05, %v1365_v41 }
 0x3c7   : > { %v1362_v44 = vpop.xlane.xlu1 %1361 }
 0x3c8   : > { %7376 = vrsqrt.f32 %v1368_v42  ;;  %v1366_v45 = vmul.f32 0.03125, %v1362_v44 }
 0x3c9   : > { %7378 = vrsqrt.f32 %v1369_v43 }
 0x3ca   : > { %v1370_v46 = vadd.f32 1e-05, %v1366_v45 }
 0x3cc   : > { %7380 = vrsqrt.f32 %v1370_v46 }
 0x3ce   : > { %v7375_v47 = vpop.eup %7374 }
 0x3cf   : > { %v1375_v48 = vmul.f32 %v7375_v47, %v1343_v16 }
 0x3d1   : > { %v1385_v52 = vmul.f32 %v6257_v49, %v1375_v48 }
 0x3d2   : > { %v7377_v50 = vpop.eup %7376 }
 0x3d3   : > { %v7379_v51 = vpop.eup %7378  ;;  %v1376_v53 = vmul.f32 %v7377_v50, %v1344_v24  ;;  %v1395_v58 = vadd.f32 %v6258_v54, %v1385_v52 }
 0x3d4   : > { %v1377_v55 = vmul.f32 %v7379_v51, %v1345_v17 }
 0x3d5   : > { %v1386_v56 = vmul.f32 %v6257_v49, %v1376_v53 }
 0x3d6   : > { %v7381_v57 = vpop.eup %7380  ;;  %v1387_v60 = vmul.f32 %v6257_v49, %v1377_v55 }
 0x3d7   : > { %v1396_v59 = vadd.f32 %v6258_v54, %v1386_v56  ;;  %v1378_v61 = vmul.f32 %v7381_v57, %v1346_v25  ;;  %v6273_v25 = vld [vmem:[%s9034_s2] ss:$0 sm:$0xff] }
 0x3d8   : > { %v1397_v0 = vadd.f32 %v6258_v54, %v1387_v60 }
 0x3d9   : > { %v9077_v62 = vpack.c.bf16 %v1396_v59, %v1395_v58  ;;  %v1388_v63 = vmul.f32 %v6257_v49, %v1378_v61 }
 0x3db   : > { %v1398_v1 = vadd.f32 %v6258_v54, %v1388_v63  ;;  %6698 = vmatprep.mubr.msk.bf16.mxu1 %vm1325_vm1, %v9077_v62 }
 0x3dd   : > { %v9081_v2 = vpack.c.bf16 %v1398_v1, %v1397_v0  ;;  %v10298_v1 = vmov 3  }
 0x3df   : > { %6699 = vmatmul.mubr.msk.bf16.vlgmr.msra.gmra.mrb[0].mxu1 %vm1325_vm1, %v9081_v2 }
 0x3e0   : > { %6703 = vmatpush3.bf16.msra.mxu1 %v7339_v34  ;;  %6706 = vmatprep.mubr.msk.bf16.mxu1 %vm1325_vm1, %v9077_v62 }
 0x3e1   : > { %6704 = vmatprep.subr.bf16.mxu1 %v7340_v3 }
 0x3e4   : > { %6705 = vmatpush3.bf16.msra.mxu1 %v7340_v3  ;;  %v10286_v3 = vmov 2  }
 0x3e5   : > { %6710 = vmatprep.subr.bf16.mxu1 %v7341_v4 }
 0x3e7   : > { %6707 = vmatmul.mubr.msk.bf16.vlgmr.msra.gmra.mrb[4].mxu1 %vm1325_vm1, %v9081_v2 }
 0x3e8   : > { %6711 = vmatpush3.bf16.msra.mxu1 %v7341_v4  ;;  %6714 = vmatprep.mubr.msk.bf16.mxu1 %vm1325_vm1, %v9077_v62  ;;  %v10294_v4 = vmov 4  }
 0x3e9   : > { %6712 = vmatprep.subr.bf16.mxu1 %v7342_v5 }
 0x3ec   : > { %6713 = vmatpush3.bf16.msra.mxu1 %v7342_v5  ;;  %v10302_v5 = vmov 5  }
 0x3ed   : > { %7042 = vmatprep.subr.msk.bf16.mxu1 %vm1707_vm2, %v9097_v6 }
 0x3ef   : > { %6715 = vmatmul.mubr.msk.bf16.vlgmr.msra.gmra.mrb[8].mxu1 %vm1325_vm1, %v9081_v2 }
 0x3f5   : > { %6719 = vmatpush3.bf16.xpose.msra.mxu1 %v9103_v7 }
 0x3f6   : > { %6730 = vmatprep.subr.bf16.mxu1 %v10304_v8 }
 0x4b2   : > { %v6700_v12 = vpop.f32.mrb[0].mxu1 }
 0x4b3   : > { %v1512_v13 = vadd.f32 %v6700_v12, %v6268_v11  ;;  %v1503_v14 = vpop.f32.mrb[1].mxu1 }
 0x4b4   : > { %v1504_v15 = vadd.f32 %v6268_v11, %v1503_v14  ;;  %v6701_v16 = vpop.f32.mrb[2].mxu1 }
 0x4b5   : > { %v1515_v17 = vadd.f32 %v6701_v16, %v6268_v11  ;;  %v1506_v18 = vpop.f32.mrb[3].mxu1  ;;  %v1664_v20 = vmul.f32 0.35355338, %v1512_v13 }
 0x4b6   : > { %v1507_v19 = vadd.f32 %v6268_v11, %v1506_v18  ;;  %v1662_v22 = vmul.f32 0.35355338, %v1504_v15 }
 0x4b7   : > { %v1665_v21 = vmul.f32 0.35355338, %v1515_v17  ;;  %v6506_v55 = vpack.c.bf16 %v1664_v20, %v1664_v20  ;;  %v10290_v17 = vmov 6  }
 0x4b8   : > { %v1663_v23 = vmul.f32 0.35355338, %v1507_v19  ;;  %v6504_v47 = vpack.c.bf16 %v1662_v22, %v1662_v22 }
 0x4b9   : > { %v1667_v24 = vpack.c.bf16 %v1665_v21, %v1664_v20  ;;  %v6507_v57 = vpack.c.bf16 %v1665_v21, %v1665_v21 }
 0x4ba   : > { %v1666_v26 = vpack.c.bf16 %v1663_v23, %v1662_v22  ;;  %v6708_v27 = vpop.f32.mrb[4].mxu1  ;;  %v6505_v49 = vpack.c.bf16 %v1663_v23, %v1663_v23  ;;  %v10288_v22 = vmov 7   ;;  %v10292_v23 = vmov 8  }
 0x4bb   : > { %v1575_v28 = vpop.f32.mrb[5].mxu1  ;;  %v1584_v34 = vadd.f32 %v6708_v27, %v6273_v25 }
 0x4bc   : > { %v1576_v29 = vadd.f32 %v6273_v25, %v1575_v28  ;;  %v6709_v30 = vpop.f32.mrb[6].mxu1  ;;  %6720 = vmatprep.mubr.msk.bf16.mxu1 %vm1707_vm2, %v1666_v26 }
 0x4bd   : > { %v1578_v31 = vpop.f32.mrb[7].mxu1  ;;  %6721 = vmatmul.mubr.msk.bf16.vlgmr.msra.gmra.mrb[12].mxu1 %vm1707_vm2, %v1667_v24  ;;  %v1587_v38 = vadd.f32 %v6709_v30, %v6273_v25  ;;  %v6510_v43 = vpack.c.bf16 %v1584_v34, %v1584_v34 }
 0x4be   : > { %v6508_v32 = vpack.c.bf16 %v1576_v29, %v1576_v29  ;;  %v1579_v33 = vadd.f32 %v6273_v25, %v1578_v31  ;;  %6732 = vmatprep.mubr.msk.bf16.mxu1 %vm8187_vm3, %v10304_v8 }
 0x4bf   : > { %v6511_v48 = vpack.c.bf16 %v1587_v38, %v1587_v38  ;;  %v2078_v50 = vsel %vm1707_vm2, %v6510_v43, 0 }
 0x4c0   : > { %v6509_v35 = vpack.c.bf16 %v1579_v33, %v1579_v33  ;;  %v1986_v36 = vsel %vm1707_vm2, %v6508_v32, 0 }
 0x4c1   : > { %6725 = vmatpush3.bf16.xpose.msra.mxu0 %v1986_v36  ;;  %v2124_v52 = vsel %vm1707_vm2, %v6511_v48, 0 }
 0x4c2   : > { %v2032_v39 = vsel %vm1707_vm2, %v6509_v35, 0  ;;  %v6716_v40 = vpop.f32.mrb[8].mxu1  ;;  %6736 = vmatprep.subr.bf16.mxu0 %v10304_v8  ;;  %v1401_v35 = vlaneseq }
 0x4c3   : > { %v9122_v41 = vadd.f32 %v6716_v40, %v6278_v37  ;;  %v1647_v42 = vpop.f32.mrb[9].mxu1  ;;  %6731 = vmatpush3.bf16.xpose.msra.mxu1 %v2032_v39 }
 0x4c4   : > { %v6717_v44 = vpop.f32.mrb[10].mxu1  ;;  %6742 = vmatprep.subr.bf16.mxu1 %v10304_v8  ;;  %v1648_v51 = vadd.f32 %v6278_v37, %v1647_v42  ;;  %v1404_v38 = vshrl.u32 %v1401_v35, 7 }
 0x4c5   : > { %v9125_v45 = vadd.f32 %v6717_v44, %v6278_v37  ;;  %v1650_v46 = vpop.f32.mrb[11].mxu1 }
 0x4c6   : > { %v1651_v53 = vadd.f32 %v6278_v37, %v1650_v46  ;;  %v6512_v54 = vpack.c.bf16 %v1648_v51, %v1648_v51  ;;  %v1402_v37 = vand.u32 127, %v1401_v35 }
 0x4c8   : > { %6727 = vmatmul.mubr.msk.bf16.vlgmr.msra.gmra.mrb[0].mxu0 %vm1707_vm2, %v6504_v47  ;;  %v6513_v56 = vpack.c.bf16 %v1651_v53, %v1651_v53  ;;  %v2247_v58 = vsel %vm2245_vm4, %v6512_v54, 0  ;;  %v1405_v40 = vsub.s32 %v1402_v37, %v1404_v38 }
 0x4c9   : > { %6737 = vmatpush3.bf16.xpose.msra.mxu0 %v2078_v50  ;;  %6738 = vmatprep.mubr.msk.bf16.mxu0 %vm8187_vm3, %v10304_v8 }
 0x4ca   : > { %6733 = vmatmul.mubr.msk.bf16.vlgmr.msra.gmra.mrb[16].mxu1 %vm1707_vm2, %v6505_v49  ;;  %6748 = vmatprep.subr.bf16.mxu0 %v10304_v8  ;;  %v2293_v59 = vsel %vm2245_vm4, %v6513_v56, 0  ;;  %vm1406_vm5 = vcmp.gt.s32.totalorder %v1405_v40, 4294967292 }
 0x4cb   : > { %6743 = vmatpush3.bf16.xpose.msra.mxu1 %v2124_v52  ;;  %6744 = vmatprep.mubr.msk.bf16.mxu1 %vm8187_vm3, %v10304_v8  ;;  %v1407_v46 = vsel %vm1406_vm5, %v1405_v40, 4294967292  ;;  %vm4360_vm5 = vcmask 195712  }
 0x4cc   : > { %6754 = vmatprep.subr.bf16.mxu1 %v10304_v8  ;;  %vm1408_vm6 = vcmp.lt.s32.totalorder %v1407_v46, 4 }
 0x4cd   : > { %v1409_v49 = vsel %vm1408_vm6, %v1407_v46, 4 }
 0x4ce   : > { %v1410_v52 = vadd.s32 4, %v1409_v49 }
 0x4d0   : > { %6739 = vmatmul.mubr.msk.bf16.vlgmr.msra.gmra.mrb[4].mxu0 %vm1707_vm2, %v6506_v55  ;;  %vm1420_vm7 = vcmp.eq.s32.totalorder %v1410_v52, 3  ;;  %vm1414_vm8 = vcmp.eq.s32.totalorder %v1410_v52, 1  ;;  %vm1417_vm9 = vcmp.eq.s32.totalorder %v1410_v52, 2  ;;  %vm1426_vm10 = vcmp.eq.s32.totalorder %v1410_v52, 5 }
 0x4d1   : > { %6749 = vmatpush3.bf16.msra.mxu0 %v2247_v58  ;;  %6750 = vmatprep.mubr.msk.bf16.mxu0 %vm8187_vm3, %v10304_v8  ;;  %vm1411_vm11 = vcmp.eq.s32.totalorder %v1410_v52, 0  ;;  %v9240_v55 = vsel %vm1420_vm7, 1.0, %v10304_v8  ;;  %vm1423_vm12 = vcmp.eq.s32.totalorder %v1410_v52, 4  ;;  %vm1429_vm13 = vcmp.eq.s32.totalorder %v1410_v52, 6 }
 0x4d2   : > { %6745 = vmatmul.mubr.msk.bf16.vlgmr.msra.gmra.mrb[20].mxu1 %vm1707_vm2, %v6507_v57  ;;  %6760 = vmatprep.subr.bf16.mxu0 %v10304_v8  ;;  %vm1432_vm14 = vcmp.eq.s32.totalorder %v1410_v52, 7  ;;  %v9244_v57 = vsel %vm1414_vm8, 1.0, %v10304_v8  ;;  %v9247_v58 = vsel %vm1417_vm9, 1.0, %v10304_v8  ;;  %vm1435_vm15 = vcmp.eq.s32.totalorder %v1410_v52, 8 }
 0x4d3   : > { %6755 = vmatpush3.bf16.msra.mxu1 %v2293_v59  ;;  %6756 = vmatprep.mubr.msk.bf16.mxu1 %vm8187_vm3, %v10304_v8  ;;  %v9250_v59 = vsel %vm1426_vm10, 1.0, %v10304_v8  ;;  %v9274_v37 = vsel %vm1435_vm15, 1.0, %v10304_v8 }
 0x4d4   : > { %6766 = vmatprep.subr.bf16.mxu1 %v10304_v8 }
 0x590   : > { %v6722_v60 = vpop.f32.mrb[12].mxu1 }
 0x591   : > { %1799 = vperm.xlu1 %7200, %v6722_v60   ;;  %1778 = vperm.xlu0 %7199, %v6722_v60   ;;  %v9147_v61 = vpop.f32.mrb[13].mxu1 }
 0x592   : > { %v9149_v63 = vpop.f32.mrb[14].mxu1 }
 0x593   : > { %v9151_v0 = vpop.f32.mrb[15].mxu1 }
 0x595   : > { %7202 = vset.pattern.permute.xlu1 %v10298_v1  ;;  %7201 = vset.pattern.permute.xlu0 %v10286_v3 }
 0x596   : > { %1839 = vperm.xlu1 %7202, %v6722_v60   ;;  %1819 = vperm.xlu0 %7201, %v6722_v60  }
 0x59a   : > { %7203 = vset.pattern.permute.xlu1 %v10294_v4  ;;  %7204 = vset.pattern.permute.xlu0 %v10302_v5 }
 0x59b   : > { %v9157_v11 = vpop.f32.mrb[0].mxu0  ;;  %1859 = vperm.xlu1 %7203, %v6722_v60   ;;  %1879 = vperm.xlu0 %7204, %v6722_v60  }
 0x59c   : > { %v6728_v12 = vpop.f32.mrb[1].mxu0 }
 0x59d   : > { %v2025_v13 = vpop.f32.mrb[2].mxu0  ;;  %v9159_v14 = vpop.f32.mrb[16].mxu1 }
 0x59e   : > { %v6729_v15 = vpop.f32.mrb[3].mxu0  ;;  %v6734_v16 = vpop.f32.mrb[17].mxu1  ;;  %v9259_v13 = vsel %vm1423_vm12, 1.0, %v10304_v8 }
 0x59f   : > { %7205 = vset.pattern.permute.xlu1 %v10290_v17  ;;  %7207 = vset.pattern.permute.xlu0 %v10296_v10  ;;  %v2071_v18 = vpop.f32.mrb[18].mxu1  ;;  %v9262_v15 = vsel %vm1429_vm13, 1.0, %v10304_v8 }
 0x5a0   : > { %1899 = vperm.xlu1 %7205, %v6722_v60   ;;  %1768 = vperm.xlu0 %7207, %v9147_v61   ;;  %v6735_v19 = vpop.f32.mrb[19].mxu1  ;;  %v9266_v18 = vsel %vm1432_vm14, 1.0, %v10304_v8 }
 0x5a3   : > { %v9164_v20 = vpop.f32.mrb[4].mxu0 }
 0x5a4   : > { %v6740_v21 = vpop.f32.mrb[5].mxu0  ;;  %7206 = vset.pattern.permute.xlu1 %v10288_v22  ;;  %7208 = vset.pattern.permute.xlu0 %v10292_v23 }
 0x5a5   : > { %v2117_v24 = vpop.f32.mrb[6].mxu0  ;;  %1919 = vperm.xlu1 %7206, %v6722_v60   ;;  %1939 = vperm.xlu0 %7208, %v6722_v60   ;;  %v9168_v25 = vpop.f32.mrb[20].mxu1  ;;  %v9253_v60 = vsel %vm1411_vm11, 1.0, %v10304_v8 }
 0x5a6   : > { %v6741_v26 = vpop.f32.mrb[7].mxu0  ;;  %v6746_v27 = vpop.f32.mrb[21].mxu1 }
 0x5a7   : > { %v2163_v28 = vpop.f32.mrb[22].mxu1 }
 0x5a8   : > { %v6747_v29 = vpop.f32.mrb[23].mxu1 }
 0x5a9   : > { %7209 = vset.pattern.permute.xlu1 %v10300_v9  ;;  %7217 = vset.pattern.permute.xlu0 %v10296_v10 }
 0x5aa   : > { %1791 = vperm.xlu1 %7209, %v9147_v61   ;;  %1783 = vperm.xlu0 %7217, %v9149_v63  }
 0x5ae   : > { %7210 = vset.pattern.permute.xlu1 %v10286_v3  ;;  %7218 = vset.pattern.permute.xlu0 %v10300_v9 }
 0x5af   : > { %1811 = vperm.xlu1 %7210, %v9147_v61   ;;  %1803 = vperm.xlu0 %7218, %v9149_v63  }
 0x5b3   : > { %7211 = vset.pattern.permute.xlu1 %v10298_v1  ;;  %7219 = vset.pattern.permute.xlu0 %v10286_v3 }
 0x5b4   : > { %1831 = vperm.xlu1 %7211, %v9147_v61   ;;  %1823 = vperm.xlu0 %7219, %v9149_v63  }
 0x5b8   : > { %7212 = vset.pattern.permute.xlu1 %v10294_v4  ;;  %7220 = vset.pattern.permute.xlu0 %v10298_v1 }
 0x5b9   : > { %1851 = vperm.xlu1 %7212, %v9147_v61   ;;  %1843 = vperm.xlu0 %7220, %v9149_v63  }
 0x5bd   : > { %7213 = vset.pattern.permute.xlu1 %v10302_v5  ;;  %7222 = vset.pattern.permute.xlu0 %v10302_v5 }
 0x5be   : > { %1871 = vperm.xlu1 %7213, %v9147_v61   ;;  %1883 = vperm.xlu0 %7222, %v9149_v63  }
 0x5c2   : > { %7214 = vset.pattern.permute.xlu1 %v10290_v17  ;;  %7225 = vset.pattern.permute.xlu0 %v10286_v3 }
 0x5c3   : > { %1891 = vperm.xlu1 %7214, %v9147_v61   ;;  %1815 = vperm.xlu0 %7225, %v9151_v0  }
 0x5c7   : > { %7215 = vset.pattern.permute.xlu1 %v10288_v22  ;;  %7228 = vset.pattern.permute.xlu0 %v10302_v5 }
 0x5c8   : > { %1911 = vperm.xlu1 %7215, %v9147_v61   ;;  %1875 = vperm.xlu0 %7228, %v9151_v0  }
 0x5cc   : > { %7216 = vset.pattern.permute.xlu1 %v10292_v23  ;;  %7231 = vset.pattern.permute.xlu0 %v10292_v23 }
 0x5cd   : > { %1931 = vperm.xlu1 %7216, %v9147_v61   ;;  %1935 = vperm.xlu0 %7231, %v9151_v0  }
 0x5d1   : > { %7221 = vset.pattern.permute.xlu1 %v10294_v4  ;;  %7232 = vset.pattern.permute.xlu0 %v10290_v17 }
 0x5d2   : > { %1863 = vperm.xlu1 %7221, %v9149_v63   ;;  %1903 = vperm.xlu0 %7232, %v9149_v63  }
 0x5d6   : > { %7223 = vset.pattern.permute.xlu1 %v10296_v10  ;;  %7233 = vset.pattern.permute.xlu0 %v10292_v23 }
 0x5d7   : > { %1943 = vperm.xlu0 %7233, %v9149_v63   ;;  %1773 = vperm.xlu1 %7223, %v9151_v0  }
 0x5db   : > { %7224 = vset.pattern.permute.xlu1 %v10300_v9  ;;  %7236 = vset.pattern.permute.xlu0 %v10286_v3 }
 0x5dc   : > { %1795 = vperm.xlu1 %7224, %v9151_v0  }
 0x5e0   : > { %7226 = vset.pattern.permute.xlu1 %v10298_v1 }
 0x5e1   : > { %1835 = vperm.xlu1 %7226, %v9151_v0  }
 0x5e5   : > { %7227 = vset.pattern.permute.xlu1 %v10294_v4 }
 0x5e6   : > { %1855 = vperm.xlu1 %7227, %v9151_v0  }
 0x5ea   : > { %7229 = vset.pattern.permute.xlu1 %v10290_v17 }
 0x5eb   : > { %1895 = vperm.xlu1 %7229, %v9151_v0  }
 0x5ef   : > { %7230 = vset.pattern.permute.xlu1 %v10288_v22 }
 0x5f0   : > { %1915 = vperm.xlu1 %7230, %v9151_v0  }
 0x610   : > { %v9221_v30 = vpop.permute.xlu1 %1799  ;;  %v9231_v39 = vpop.permute.xlu0 %1778 }
 0x615   : > { %v9223_v31 = vpop.permute.xlu1 %1839  ;;  %v9233_v43 = vpop.permute.xlu0 %1819 }
 0x61a   : > { %v9225_v32 = vpop.permute.xlu1 %1859  ;;  %v9235_v47 = vpop.permute.xlu0 %1879 }
 0x61f   : > { %v9227_v33 = vpop.permute.xlu1 %1899  ;;  %v1769_v50 = vpop.permute.xlu0 %1768 }
 0x620   : > { %v1786_v16 = vmul.f32 %v9253_v60, %v1769_v50 }
 0x624   : > { %v9229_v34 = vpop.permute.xlu1 %1919  ;;  %v9237_v53 = vpop.permute.xlu0 %1939 }
 0x629   : > { %v1792_v36 = vpop.permute.xlu1 %1791  ;;  %v9268_v21 = vpop.permute.xlu0 %1783 }
 0x62a   : > { %v1806_v61 = vmul.f32 %v9244_v57, %v1792_v36 }
 0x62c   : > { %v1950_v29 = vadd.f32 %v1806_v61, %v1786_v16 }
 0x62e   : > { %v1812_v42 = vpop.permute.xlu1 %1811  ;;  %v9277_v46 = vpop.permute.xlu0 %1803 }
 0x62f   : > { %v1826_v0 = vmul.f32 %v9247_v58, %v1812_v42 }
 0x633   : > { %v1832_v44 = vpop.permute.xlu1 %1831 }
 0x634   : > { %v1846_v56 = vmul.f32 %v9240_v55, %v1832_v44 }
 0x636   : > { %v1954_v24 = vadd.f32 %v1846_v56, %v1826_v0 }
 0x638   : > { %v1852_v48 = vpop.permute.xlu1 %1851  ;;  %v1966_v38 = vadd.f32 %v1954_v24, %v1950_v29 }
 0x639   : > { %v1866_v26 = vmul.f32 %v9259_v13, %v1852_v48 }
 0x63d   : > { %v1872_v51 = vpop.permute.xlu1 %1871 }
 0x63e   : > { %v1886_v12 = vmul.f32 %v9250_v59, %v1872_v51  ;;  %v9281_v51 = vld [vmem:[#allocation7] ss:$0 sm:$0xff] }
 0x640   : > { %v1958_v35 = vadd.f32 %v1886_v12, %v1866_v26 }
 0x642   : > { %v1892_v54 = vpop.permute.xlu1 %1891 }
 0x643   : > { %v1906_v27 = vmul.f32 %v9262_v15, %v1892_v54  ;;  %v9284_v54 = vpop.permute.xlu0 %1823 }
 0x647   : > { %v1912_v19 = vpop.permute.xlu1 %1911  ;;  %v1844_v12 = vpop.permute.xlu0 %1843 }
 0x648   : > { %v1926_v28 = vmul.f32 %v9266_v18, %v1912_v19 }
 0x64a   : > { %v1962_v36 = vadd.f32 %v1926_v28, %v1906_v27 }
 0x64b   : > { %v9291_v19 = vpop.permute.xlu0 %1883 }
 0x64c   : > { %v1970_v40 = vadd.f32 %v1962_v36, %v1958_v35  ;;  %v1932_v42 = vpop.permute.xlu1 %1931 }
 0x64d   : > { %v1946_v44 = vmul.f32 %v9274_v37, %v1932_v42  ;;  %v1928_v42 = vmul.f32 %v9266_v18, %v9229_v34  ;;  %v1908_v34 = vmul.f32 %v9262_v15, %v9227_v33 }
 0x64e   : > { %v1974_v49 = vadd.f32 %v1970_v40, %v1966_v38  ;;  %v1848_v40 = vmul.f32 %v9240_v55, %v9223_v31  ;;  %v1888_v31 = vmul.f32 %v9250_v59, %v9235_v47 }
 0x64f   : > { %v1816_v27 = vpop.permute.xlu0 %1815 }
 0x650   : > { %v1978_v48 = vadd.f32 %v1974_v49, %v1946_v44  ;;  %v1827_v35 = vmul.f32 %v9247_v58, %v1816_v27 }
 0x651   : > { %v9279_v50 = vpop.permute.xlu1 %1863 }
 0x652   : > { %v2023_v52 = vadd.f32 %v9157_v11, %v1978_v48 }
 0x653   : > { %v1876_v28 = vpop.permute.xlu0 %1875 }
 0x654   : > { %v9287_v56 = vadd.f32 %v9281_v51, %v2023_v52 }
 0x656   : > { %v1774_v61 = vpop.permute.xlu1 %1773  ;;  %v2194_v0 = vsel %vm1707_vm2, %v9287_v56, -inf }
 0x657   : > { %2195 = vmax.xlane.f32.xlu1 %v2194_v0  ;;  %v1787_v49 = vmul.f32 %v9253_v60, %v1774_v61 }
 0x65b   : > { %v1796_v16 = vpop.permute.xlu1 %1795 }
 0x65c   : > { %v1807_v36 = vmul.f32 %v9244_v57, %v1796_v16  ;;  %v1828_v16 = vmul.f32 %v9247_v58, %v9233_v43  ;;  %v1936_v43 = vpop.permute.xlu0 %1935 }
 0x65d   : > { %v1947_v47 = vmul.f32 %v9274_v37, %v1936_v43 }
 0x660   : > { %v1836_v24 = vpop.permute.xlu1 %1835 }
 0x661   : > { %v1847_v29 = vmul.f32 %v9240_v55, %v1836_v24  ;;  %v1868_v24 = vmul.f32 %v9259_v13, %v9225_v32  ;;  %v1956_v32 = vadd.f32 %v1848_v40, %v1828_v16 }
 0x663   : > { %v1955_v48 = vadd.f32 %v1847_v29, %v1827_v35  ;;  %v1964_v29 = vadd.f32 %v1928_v42, %v1908_v34  ;;  %v1960_v3 = vadd.f32 %v1888_v31, %v1868_v24  ;;  %v1948_v42 = vmul.f32 %v9274_v37, %v9237_v53  ;;  %v1904_v24 = vpop.permute.xlu0 %1903 }
 0x664   : > { %v1829_v53 = vmul.f32 %v9247_v58, %v9284_v54  ;;  %v1809_v31 = vmul.f32 %v9244_v57, %v9277_v46 }
 0x665   : > { %v1856_v26 = vpop.permute.xlu1 %1855  ;;  %v1972_v33 = vadd.f32 %v1964_v29, %v1960_v3 }
 0x666   : > { %v1867_v38 = vmul.f32 %v9259_v13, %v1856_v26  ;;  %v1951_v26 = vadd.f32 %v1807_v36, %v1787_v49 }
 0x667   : > { %v1944_v29 = vpop.permute.xlu0 %1943 }
 0x668   : > { %1923 = vperm.xlu1 %7230, %v9149_v63   ;;  %v1887_v63 = vmul.f32 %v9250_v59, %v1876_v28  ;;  %v1788_v28 = vmul.f32 %v9253_v60, %v9231_v39  ;;  %v1967_v35 = vadd.f32 %v1955_v48, %v1951_v26  ;;  %v1789_v26 = vmul.f32 %v9253_v60, %v9268_v21 }
 0x66a   : > { %v1896_v11 = vpop.permute.xlu1 %1895  ;;  %v1959_v27 = vadd.f32 %v1887_v63, %v1867_v38  ;;  %v9320_v63 = vld [vmem:[#allocation7 + $0x1] ss:$0 sm:$0xff] }
 0x66b   : > { %v1907_v52 = vmul.f32 %v9262_v15, %v1896_v11  ;;  %v1808_v11 = vmul.f32 %v9244_v57, %v9221_v30 }
 0x66c   : > { %7234 = vset.pattern.permute.xlu1 %v10296_v10 }
 0x66d   : > { %v1952_v17 = vadd.f32 %v1808_v11, %v1788_v28  ;;  %v1953_v11 = vadd.f32 %v1809_v31, %v1789_v26  ;;  %v7344_v26 = vld [vmem:[%s9028_s16 + $0x10] sm:$0xff]  }
 0x66f   : > { %v1916_v44 = vpop.permute.xlu1 %1915  ;;  %v1968_v38 = vadd.f32 %v1956_v32, %v1952_v17  ;;  %v9347_v32 = vld [vmem:[#allocation7 + $0x3] ss:$0 sm:$0xff] }
 0x670   : > { %v1927_v0 = vmul.f32 %v9266_v18, %v1916_v44 }
 0x671   : > { %v1976_v49 = vadd.f32 %v1972_v33, %v1968_v38 }
 0x672   : > { %v1963_v61 = vadd.f32 %v1927_v0, %v1907_v52  ;;  %v9328_v0 = vld [vmem:[#allocation7 + $0x2] ss:$0 sm:$0xff] }
 0x673   : > { %v1980_v48 = vadd.f32 %v1976_v49, %v1948_v42 }
 0x674   : > { %v1971_v44 = vadd.f32 %v1963_v61, %v1959_v27 }
 0x675   : > { %v2115_v52 = vadd.f32 %v9164_v20, %v1980_v48  ;;  %v1869_v20 = vmul.f32 %v9259_v13, %v9279_v50 }
 0x676   : > { %v1975_v22 = vadd.f32 %v1971_v44, %v1967_v35  ;;  %v1949_v35 = vmul.f32 %v9274_v37, %v1944_v29  ;;  %v7348_v29 = vld [vmem:[%s9032_s6 + $0x10] sm:$0xff]  }
 0x677   : > { %v2192_v3 = vadd.f32 %v9328_v0, %v2115_v52 }
 0x678   : > { %v1979_v36 = vadd.f32 %v1975_v22, %v1947_v47 }
 0x679   : > { %v2200_v17 = vsel %vm1707_vm2, %v2192_v3, -inf }
 0x67a   : > { %v2069_v30 = vadd.f32 %v9159_v14, %v1979_v36  ;;  %v1849_v14 = vmul.f32 %v9240_v55, %v1844_v12  ;;  %v1889_v12 = vmul.f32 %v9250_v59, %v9291_v19 }
 0x67c   : > { %v2191_v39 = vadd.f32 %v9320_v63, %v2069_v30  ;;  %v1957_v27 = vadd.f32 %v1849_v14, %v1829_v53  ;;  %v1961_v28 = vadd.f32 %v1889_v12, %v1869_v20 }
 0x67e   : > { %v2197_v40 = vsel %vm1707_vm2, %v2191_v39, -inf  ;;  %v1969_v43 = vadd.f32 %v1957_v27, %v1953_v11 }
 0x67f   : > { %2198 = vmax.xlane.f32.xlu0 %v2197_v40 }
 0x68c   : > { %2201 = vmax.xlane.f32.xlu1 %v2200_v17 }
 0x6e4   : > { %v2196_v22 = vpop.xlane.xlu1 %2195 }
 0x6e5   : > { %v2206_v16 = vsub.f32 %v9287_v56, %v2196_v22  ;;  %v1909_v56 = vmul.f32 %v9262_v15, %v1904_v24 }
 0x6e7   : > { %v2210_v34 = vmul.f32 1.442695, %v2206_v16 }
 0x6e8   : > { %v1924_v61 = vpop.permute.xlu1 %1923 }
 0x6e9   : > { %7382 = vpow2.f32 %v2210_v34  ;;  %v1929_v54 = vmul.f32 %v9266_v18, %v1924_v61 }
 0x6eb   : > { %v1965_v46 = vadd.f32 %v1929_v54, %v1909_v56  ;;  %v6515_v54 = vpack.c.bf16 %v9125_v45, %v9125_v45  ;;  %v7345_v45 = vld [vmem:[%s9028_s16 + $0x18] sm:$0xff]  }
 0x6ed   : > { %v1973_v50 = vadd.f32 %v1965_v46, %v1961_v28 }
 0x6ef   : > { %v1977_v44 = vadd.f32 %v1973_v50, %v1969_v43  ;;  %v2385_v43 = vsel %vm2245_vm4, %v6515_v54, 0 }
 0x6f1   : > { %v1981_v21 = vadd.f32 %v1977_v44, %v1949_v35 }
 0x6f3   : > { %v7383_v47 = vpop.eup %7382  ;;  %v2161_v19 = vadd.f32 %v9168_v25, %v1981_v21  ;;  %v7346_v21 = vld [vmem:[%s9036_s21 + $0x10] sm:$0xff]  }
 0x6f4   : > { %v2218_v33 = vsel %vm1707_vm2, %v7383_v47, 0.0 }
 0x6f5   : > { %2219 = vadd.xlane.f32.xlu0 %v2218_v33  ;;  %v2193_v36 = vadd.f32 %v9347_v32, %v2161_v19 }
 0x6f7   : > { %v2203_v38 = vsel %vm1707_vm2, %v2193_v36, -inf }
 0x6f8   : > { %2204 = vmax.xlane.f32.xlu1 %v2203_v38 }
 0x70c   : > { %v2199_v30 = vpop.xlane.xlu0 %2198 }
 0x70d   : > { %v2207_v49 = vsub.f32 %v2191_v39, %v2199_v30  ;;  %v7349_v30 = vld [vmem:[%s9032_s6 + $0x18] sm:$0xff]  }
 0x70f   : > { %v2212_v42 = vmul.f32 1.442695, %v2207_v49 }
 0x711   : > { %7384 = vpow2.f32 %v2212_v42 }
 0x719   : > { %v2202_v40 = vpop.xlane.xlu1 %2201 }
 0x71a   : > { %v2208_v48 = vsub.f32 %v2192_v3, %v2202_v40  ;;  %v6514_v3 = vpack.c.bf16 %v9122_v41, %v9122_v41 }
 0x71b   : > { %v7385_v52 = vpop.eup %7384 }
 0x71c   : > { %v2214_v17 = vmul.f32 1.442695, %v2208_v48  ;;  %v2221_v14 = vsel %vm1707_vm2, %v7385_v52, 0.0  ;;  %v2339_v27 = vsel %vm2245_vm4, %v6514_v3, 0 }
 0x71d   : > { %2222 = vadd.xlane.f32.xlu0 %v2221_v14 }
 0x71e   : > { %7386 = vpow2.f32 %v2214_v17 }
 0x728   : > { %v7387_v25 = vpop.eup %7386 }
 0x729   : > { %v2224_v22 = vsel %vm1707_vm2, %v7387_v25, 0.0 }
 0x72a   : > { %2225 = vadd.xlane.f32.xlu1 %v2224_v22 }
 0x782   : > { %v2220_v16 = vpop.xlane.xlu0 %2219 }
 0x783   : > { %7388 = vrcp.f32 %v2220_v16 }
 0x785   : > { %v2205_v53 = vpop.xlane.xlu1 %2204 }
 0x786   : > { %v2209_v24 = vsub.f32 %v2193_v36, %v2205_v53 }
 0x788   : > { %v2216_v39 = vmul.f32 1.442695, %v2209_v24 }
 0x78a   : > { %7390 = vpow2.f32 %v2216_v39  ;;  %v6315_v39 = vld [vmem:[%s9030_s27 + $0x1] ss:$0 sm:$0xff] }
 0x78d   : > { %v7389_v31 = vpop.eup %7388 }
 0x78e   : > { %v2234_v20 = vmul.f32 %v7389_v31, %v7383_v47  ;;  %v7347_v47 = vld [vmem:[%s9036_s21 + $0x18] sm:$0xff]  }
 0x790   : > { %v2238_v34 = vpack.c.bf16 %v2234_v20, %v2234_v20 }
 0x792   : > { %6751 = vmatmul.mubr.msk.bf16.vlgmr.msra.gmra.mrb[8].mxu0 %vm1707_vm2, %v2238_v34 }
 0x793   : > { %6761 = vmatpush3.bf16.msra.mxu0 %v2339_v27  ;;  %6762 = vmatprep.mubr.msk.bf16.mxu0 %vm8187_vm3, %v10304_v8 }
 0x794   : > { %v7391_v61 = vpop.eup %7390  ;;  %6772 = vmatprep.subr.bf16.mxu0 %v7344_v26 }
 0x795   : > { %v2227_v12 = vsel %vm1707_vm2, %v7391_v61, 0.0 }
 0x796   : > { %2228 = vadd.xlane.f32.xlu1 %v2227_v12 }
 0x7aa   : > { %v2223_v56 = vpop.xlane.xlu0 %2222 }
 0x7ab   : > { %7392 = vrcp.f32 %v2223_v56 }
 0x7b5   : > { %v7393_v41 = vpop.eup %7392 }
 0x7b6   : > { %v2235_v11 = vmul.f32 %v7393_v41, %v7385_v52 }
 0x7b7   : > { %v2226_v28 = vpop.xlane.xlu1 %2225 }
 0x7b8   : > { %7394 = vrcp.f32 %v2226_v28  ;;  %v2239_v46 = vpack.c.bf16 %v2235_v11, %v2235_v11  ;;  %v6335_v28 = vld [vmem:[%s9038_s20 + $0x1] ss:$0 sm:$0xff] }
 0x7ba   : > { %6757 = vmatmul.mubr.msk.bf16.vlgmr.msra.gmra.mrb[24].mxu1 %vm1707_vm2, %v2239_v46 }
 0x7bb   : > { %6767 = vmatpush3.bf16.msra.mxu1 %v2385_v43  ;;  %6768 = vmatprep.mubr.msk.bf16.mxu1 %vm8187_vm3, %v10304_v8 }
 0x7bc   : > { %6780 = vmatprep.subr.bf16.mxu1 %v7348_v29 }
 0x7c2   : > { %v7395_v50 = vpop.eup %7394 }
 0x7c3   : > { %v2236_v35 = vmul.f32 %v7395_v50, %v7387_v25 }
 0x7c5   : > { %v2240_v44 = vpack.c.bf16 %v2236_v35, %v2236_v35 }
 0x7c7   : > { %6763 = vmatmul.mubr.msk.bf16.vlgmr.msra.gmra.mrb[12].mxu0 %vm1707_vm2, %v2240_v44 }
 0x7c8   : > { %6773 = vmatpush3.bf16.msra.mxu0 %v7344_v26  ;;  %6776 = vmatprep.mubr.msk.bf16.mxu0 %vm1325_vm1, %v9077_v62 }
 0x7c9   : > { %6774 = vmatprep.subr.bf16.mxu0 %v7345_v45 }
 0x7cc   : > { %6775 = vmatpush3.bf16.msra.mxu0 %v7345_v45 }
 0x7cd   : > { %6788 = vmatprep.subr.bf16.mxu0 %v7346_v21 }
 0x7cf   : > { %6777 = vmatmul.mubr.msk.bf16.vlgmr.msra.gmra.mrb[16].mxu0 %vm1325_vm1, %v9081_v2 }
 0x7d0   : > { %6789 = vmatpush3.bf16.msra.mxu0 %v7346_v21  ;;  %6792 = vmatprep.mubr.msk.bf16.mxu0 %vm1325_vm1, %v9077_v62 }
 0x7d1   : > { %6790 = vmatprep.subr.bf16.mxu0 %v7347_v47 }
 0x7d4   : > { %6791 = vmatpush3.bf16.msra.mxu0 %v7347_v47 }
 0x7d5   : > { %6802 = vmatprep.subr.bf16.mxu0 %v10304_v8 }
 0x7d7   : > { %6793 = vmatmul.mubr.msk.bf16.vlgmr.msra.gmra.mrb[20].mxu0 %vm1325_vm1, %v9081_v2 }
 0x7d8   : > { %6804 = vmatprep.mubr.msk.bf16.mxu0 %vm8187_vm3, %v10304_v8 }
 0x823   : > { %v2229_v19 = vpop.xlane.xlu1 %2228 }
 0x824   : > { %7396 = vrcp.f32 %v2229_v19 }
 0x82e   : > { %v7397_v33 = vpop.eup %7396 }
 0x82f   : > { %v2237_v36 = vmul.f32 %v7397_v33, %v7391_v61 }
 0x831   : > { %v2241_v38 = vpack.c.bf16 %v2237_v36, %v2237_v36 }
 0x833   : > { %6769 = vmatmul.mubr.msk.bf16.vlgmr.msra.gmra.mrb[28].mxu1 %vm1707_vm2, %v2241_v38 }
 0x834   : > { %6781 = vmatpush3.bf16.msra.mxu1 %v7348_v29  ;;  %6784 = vmatprep.mubr.msk.bf16.mxu1 %vm1325_vm1, %v9077_v62 }
 0x835   : > { %6782 = vmatprep.subr.bf16.mxu1 %v7349_v30 }
 0x838   : > { %6783 = vmatpush3.bf16.msra.mxu1 %v7349_v30  ;;  %v6325_v30 = vld [vmem:[%s9034_s2 + $0x1] ss:$0 sm:$0xff] }
 0x839   : > { %7043 = vmatprep.subr.msk.bf16.mxu1 %vm1707_vm2, %v9097_v6 }
 0x83b   : > { %6785 = vmatmul.mubr.msk.bf16.vlgmr.msra.gmra.mrb[32].mxu1 %vm1325_vm1, %v9081_v2 }
 0x841   : > { %6797 = vmatpush3.bf16.xpose.msra.mxu1 %v9103_v7 }
 0x842   : > { %6808 = vmatprep.subr.bf16.mxu1 %v10304_v8 }
 0x865   : > { %v2283_v49 = vpop.f32.mrb[8].mxu0 }
 0x866   : > { %v6752_v42 = vpop.f32.mrb[9].mxu0 }
 0x867   : > { %v2286_v40 = vpop.f32.mrb[10].mxu0 }
 0x868   : > { %v6753_v48 = vpop.f32.mrb[11].mxu0 }
 0x88d   : > { %v2329_v52 = vpop.f32.mrb[24].mxu1 }
 0x88e   : > { %v2427_v17 = vpack.c.bf16 %v2329_v52, %v2283_v49  ;;  %v6758_v14 = vpop.f32.mrb[25].mxu1 }
 0x88f   : > { %v2332_v25 = vpop.f32.mrb[26].mxu1 }
 0x890   : > { %2429 = vst.msk [vmem:[#allocation3] sm:$0xff] %vm1707_vm2, %v2427_v17  ;;  %v6759_v22 = vpop.f32.mrb[27].mxu1 }
 0x89a   : > { %v2375_v6 = vpop.f32.mrb[12].mxu0 }
 0x89b   : > { %v6764_v16 = vpop.f32.mrb[13].mxu0 }
 0x89c   : > { %v2378_v53 = vpop.f32.mrb[14].mxu0 }
 0x89d   : > { %v6765_v24 = vpop.f32.mrb[15].mxu0 }
 0x8a2   : > { %v6778_v31 = vpop.f32.mrb[16].mxu0 }
 0x8a3   : > { %v2499_v3 = vadd.f32 %v6778_v31, %v6315_v39  ;;  %v2490_v20 = vpop.f32.mrb[17].mxu0 }
 0x8a4   : > { %v2491_v34 = vadd.f32 %v6315_v39, %v2490_v20  ;;  %v6779_v26 = vpop.f32.mrb[18].mxu0 }
 0x8a5   : > { %v2502_v27 = vadd.f32 %v6779_v26, %v6315_v39  ;;  %v2493_v61 = vpop.f32.mrb[19].mxu0  ;;  %v2655_v56 = vmul.f32 0.35355338, %v2499_v3 }
 0x8a6   : > { %v2494_v12 = vadd.f32 %v6315_v39, %v2493_v61  ;;  %v2653_v54 = vmul.f32 0.35355338, %v2491_v34 }
 0x8a7   : > { %v9397_v41 = vmul.f32 0.35355338, %v2502_v27 }
 0x8a8   : > { %v2654_v11 = vmul.f32 0.35355338, %v2494_v12  ;;  %v6516_v39 = vpack.c.bf16 %v2653_v54, %v2653_v54  ;;  %v6518_v12 = vpack.c.bf16 %v2655_v56, %v2655_v56 }
 0x8a9   : > { %v2658_v46 = vpack.c.bf16 %v9397_v41, %v2655_v56 }
 0x8aa   : > { %v2657_v29 = vpack.c.bf16 %v2654_v11, %v2653_v54  ;;  %v6794_v43 = vpop.f32.mrb[20].mxu0  ;;  %v6517_v3 = vpack.c.bf16 %v2654_v11, %v2654_v11  ;;  %v6519_v11 = vpack.c.bf16 %v9397_v41, %v9397_v41 }
 0x8ab   : > { %v9401_v50 = vadd.f32 %v6794_v43, %v6335_v28  ;;  %v2638_v35 = vpop.f32.mrb[21].mxu0 }
 0x8ac   : > { %v6795_v44 = vpop.f32.mrb[22].mxu0  ;;  %6798 = vmatprep.mubr.msk.bf16.mxu1 %vm1707_vm2, %v2657_v29  ;;  %v2639_v20 = vadd.f32 %v6335_v28, %v2638_v35  ;;  %v10386_v35 = vmov 6  }
 0x8ad   : > { %v9404_v45 = vadd.f32 %v6795_v44, %v6335_v28  ;;  %v2641_v21 = vpop.f32.mrb[23].mxu0  ;;  %6799 = vmatmul.mubr.msk.bf16.vlgmr.msra.gmra.mrb[36].mxu1 %vm1707_vm2, %v2658_v46  ;;  %v10387_v44 = vmov 7  }
 0x8ae   : > { %6810 = vmatprep.mubr.msk.bf16.mxu1 %vm8187_vm3, %v10304_v8  ;;  %v2642_v26 = vadd.f32 %v6335_v28, %v2641_v21  ;;  %v6524_v61 = vpack.c.bf16 %v2639_v20, %v2639_v20  ;;  %v10388_v21 = vmov 2  }
 0x8b0   : > { %v6525_v54 = vpack.c.bf16 %v2642_v26, %v2642_v26  ;;  %v3204_v28 = vsel %vm2245_vm4, %v6524_v61, 0 }
 0x8b2   : > { %v3250_v46 = vsel %vm2245_vm4, %v6525_v54, 0 }
 0x906   : > { %v2421_v47 = vpop.f32.mrb[28].mxu1 }
 0x907   : > { %v2428_v19 = vpack.c.bf16 %v2421_v47, %v2375_v6  ;;  %v6770_v33 = vpop.f32.mrb[29].mxu1 }
 0x908   : > { %v2424_v36 = vpop.f32.mrb[30].mxu1 }
 0x909   : > { %2430 = vst.msk [vmem:[#allocation3 + $0x8] sm:$0xff] %vm1707_vm2, %v2428_v19  ;;  %v6771_v38 = vpop.f32.mrb[31].mxu1 }
 0x90e   : > { %v6786_v49 = vpop.f32.mrb[32].mxu1 }
 0x90f   : > { %v2564_v42 = vpop.f32.mrb[33].mxu1  ;;  %v2573_v25 = vadd.f32 %v6786_v49, %v6325_v30 }
 0x910   : > { %v2565_v40 = vadd.f32 %v6325_v30, %v2564_v42  ;;  %v6787_v48 = vpop.f32.mrb[34].mxu1 }
 0x911   : > { %v2567_v52 = vpop.f32.mrb[35].mxu1  ;;  %v2576_v53 = vadd.f32 %v6787_v48, %v6325_v30  ;;  %v6522_v24 = vpack.c.bf16 %v2573_v25, %v2573_v25 }
 0x912   : > { %v6520_v17 = vpack.c.bf16 %v2565_v40, %v2565_v40  ;;  %v2568_v14 = vadd.f32 %v6325_v30, %v2567_v52 }
 0x913   : > { %v6523_v31 = vpack.c.bf16 %v2576_v53, %v2576_v53  ;;  %v3060_v34 = vsel %vm1707_vm2, %v6522_v24, 0 }
 0x914   : > { %v2968_v22 = vsel %vm1707_vm2, %v6520_v17, 0  ;;  %v6521_v16 = vpack.c.bf16 %v2568_v14, %v2568_v14 }
 0x915   : > { %6803 = vmatpush3.bf16.xpose.msra.mxu0 %v2968_v22  ;;  %v3106_v27 = vsel %vm1707_vm2, %v6523_v31, 0 }
 0x916   : > { %v3014_v6 = vsel %vm1707_vm2, %v6521_v16, 0  ;;  %6814 = vmatprep.subr.bf16.mxu0 %v10304_v8 }
 0x917   : > { %6809 = vmatpush3.bf16.xpose.msra.mxu1 %v3014_v6 }
 0x918   : > { %6820 = vmatprep.subr.bf16.mxu1 %v10304_v8 }
 0x91c   : > { %6805 = vmatmul.mubr.msk.bf16.vlgmr.msra.gmra.mrb[24].mxu0 %vm1707_vm2, %v6516_v39 }
 0x91d   : > { %6815 = vmatpush3.bf16.xpose.msra.mxu0 %v3060_v34  ;;  %6816 = vmatprep.mubr.msk.bf16.mxu0 %vm8187_vm3, %v10304_v8 }
 0x91e   : > { %6811 = vmatmul.mubr.msk.bf16.vlgmr.msra.gmra.mrb[40].mxu1 %vm1707_vm2, %v6517_v3  ;;  %6826 = vmatprep.subr.bf16.mxu0 %v10304_v8 }
 0x91f   : > { %6821 = vmatpush3.bf16.xpose.msra.mxu1 %v3106_v27  ;;  %6822 = vmatprep.mubr.msk.bf16.mxu1 %vm8187_vm3, %v10304_v8 }
 0x920   : > { %6832 = vmatprep.subr.bf16.mxu1 %v10304_v8 }
 0x924   : > { %6817 = vmatmul.mubr.msk.bf16.vlgmr.msra.gmra.mrb[28].mxu0 %vm1707_vm2, %v6518_v12 }
 0x925   : > { %6827 = vmatpush3.bf16.msra.mxu0 %v3204_v28  ;;  %6828 = vmatprep.mubr.msk.bf16.mxu0 %vm8187_vm3, %v10304_v8 }
 0x926   : > { %6823 = vmatmul.mubr.msk.bf16.vlgmr.msra.gmra.mrb[44].mxu1 %vm1707_vm2, %v6519_v11  ;;  %6838 = vmatprep.subr.bf16.mxu0 %v10304_v8 }
 0x927   : > { %6833 = vmatpush3.bf16.msra.mxu1 %v3250_v46  ;;  %6834 = vmatprep.mubr.msk.bf16.mxu1 %vm8187_vm3, %v10304_v8 }
 0x928   : > { %6844 = vmatprep.subr.bf16.mxu1 %v10304_v8 }
 0x980   : > { %v6800_v56 = vpop.f32.mrb[36].mxu1 }
 0x981   : > { %2801 = vperm.xlu0 %7236, %v6800_v56   ;;  %2760 = vperm.xlu1 %7234, %v6800_v56   ;;  %v2733_v41 = vpop.f32.mrb[37].mxu1 }
 0x982   : > { %v9437_v29 = vpop.f32.mrb[38].mxu1 }
 0x983   : > { %v9439_v43 = vpop.f32.mrb[39].mxu1 }
 0x985   : > { %7239 = vset.pattern.permute.xlu0 %v10302_v5  ;;  %7235 = vset.pattern.permute.xlu1 %v10300_v9 }
 0x986   : > { %2861 = vperm.xlu0 %7239, %v6800_v56   ;;  %2781 = vperm.xlu1 %7235, %v6800_v56  }
 0x98a   : > { %7242 = vset.pattern.permute.xlu0 %v10296_v10  ;;  %7237 = vset.pattern.permute.xlu1 %v10298_v1 }
 0x98b   : > { %2821 = vperm.xlu1 %7237, %v6800_v56   ;;  %2750 = vperm.xlu0 %7242, %v2733_v41  }
 0x98f   : > { %7238 = vset.pattern.permute.xlu1 %v10294_v4  ;;  %7250 = vset.pattern.permute.xlu0 %v10292_v23 }
 0x990   : > { %2841 = vperm.xlu1 %7238, %v6800_v56   ;;  %2913 = vperm.xlu0 %7250, %v2733_v41  }
 0x994   : > { %7240 = vset.pattern.permute.xlu1 %v10386_v35  ;;  %2921 = vperm.xlu0 %7250, %v6800_v56  }
 0x995   : > { %2881 = vperm.xlu1 %7240, %v6800_v56  }
 0x998   : > { %7251 = vset.pattern.permute.xlu0 %v10296_v10 }
 0x999   : > { %7241 = vset.pattern.permute.xlu1 %v10387_v44  ;;  %2765 = vperm.xlu0 %7251, %v9437_v29  }
 0x99a   : > { %2901 = vperm.xlu1 %7241, %v6800_v56  }
 0x99d   : > { %7252 = vset.pattern.permute.xlu0 %v10300_v9 }
 0x99e   : > { %7243 = vset.pattern.permute.xlu1 %v10300_v9  ;;  %2785 = vperm.xlu0 %7252, %v9437_v29  }
 0x99f   : > { %2773 = vperm.xlu1 %7243, %v2733_v41  }
 0x9a2   : > { %7253 = vset.pattern.permute.xlu0 %v10388_v21 }
 0x9a3   : > { %7244 = vset.pattern.permute.xlu1 %v10388_v21  ;;  %2805 = vperm.xlu0 %7253, %v9437_v29  }
 0x9a4   : > { %2793 = vperm.xlu1 %7244, %v2733_v41  }
 0x9a7   : > { %7254 = vset.pattern.permute.xlu0 %v10298_v1 }
 0x9a8   : > { %7245 = vset.pattern.permute.xlu1 %v10298_v1  ;;  %2825 = vperm.xlu0 %7254, %v9437_v29  }
 0x9a9   : > { %2813 = vperm.xlu1 %7245, %v2733_v41  }
 0x9ac   : > { %7256 = vset.pattern.permute.xlu0 %v10302_v5 }
 0x9ad   : > { %7246 = vset.pattern.permute.xlu1 %v10294_v4  ;;  %2865 = vperm.xlu0 %7256, %v9437_v29  }
 0x9ae   : > { %2833 = vperm.xlu1 %7246, %v2733_v41  }
 0x9b1   : > { %7259 = vset.pattern.permute.xlu0 %v10388_v21 }
 0x9b2   : > { %7247 = vset.pattern.permute.xlu1 %v10302_v5  ;;  %2797 = vperm.xlu0 %7259, %v9439_v43  }
 0x9b3   : > { %2853 = vperm.xlu1 %7247, %v2733_v41  }
 0x9b6   : > { %7262 = vset.pattern.permute.xlu0 %v10302_v5 }
 0x9b7   : > { %7248 = vset.pattern.permute.xlu1 %v10386_v35  ;;  %2857 = vperm.xlu0 %7262, %v9439_v43  }
 0x9b8   : > { %2873 = vperm.xlu1 %7248, %v2733_v41  }
 0x9bb   : > { %7265 = vset.pattern.permute.xlu0 %v10292_v23 }
 0x9bc   : > { %7249 = vset.pattern.permute.xlu1 %v10387_v44  ;;  %2917 = vperm.xlu0 %7265, %v9439_v43  }
 0x9bd   : > { %2893 = vperm.xlu1 %7249, %v2733_v41  }
 0x9c0   : > { %7266 = vset.pattern.permute.xlu0 %v10386_v35 }
 0x9c1   : > { %7255 = vset.pattern.permute.xlu1 %v10294_v4  ;;  %2885 = vperm.xlu0 %7266, %v9437_v29  }
 0x9c2   : > { %2845 = vperm.xlu1 %7255, %v9437_v29  }
 0x9c5   : > { %7267 = vset.pattern.permute.xlu0 %v10292_v23 }
 0x9c6   : > { %7257 = vset.pattern.permute.xlu1 %v10296_v10  ;;  %2925 = vperm.xlu0 %7267, %v9437_v29  }
 0x9c7   : > { %2755 = vperm.xlu1 %7257, %v9439_v43  }
 0x9ca   : > { %7269 = vset.pattern.permute.xlu0 %v10388_v21 }
 0x9cb   : > { %7258 = vset.pattern.permute.xlu1 %v10300_v9 }
 0x9cc   : > { %2777 = vperm.xlu1 %7258, %v9439_v43  }
 0x9d0   : > { %7260 = vset.pattern.permute.xlu1 %v10298_v1 }
 0x9d1   : > { %2817 = vperm.xlu1 %7260, %v9439_v43  }
 0x9d5   : > { %7261 = vset.pattern.permute.xlu1 %v10294_v4 }
 0x9d6   : > { %2837 = vperm.xlu1 %7261, %v9439_v43  }
 0x9da   : > { %7263 = vset.pattern.permute.xlu1 %v10386_v35 }
 0x9db   : > { %2877 = vperm.xlu1 %7263, %v9439_v43  }
 0x9df   : > { %7264 = vset.pattern.permute.xlu1 %v10387_v44 }
 0x9e0   : > { %2897 = vperm.xlu1 %7264, %v9439_v43  }
 0x9ef   : > { %v3004_v47 = vpop.f32.mrb[24].mxu0 }
 0x9f0   : > { %v6806_v19 = vpop.f32.mrb[25].mxu0 }
 0x9f1   : > { %v3007_v33 = vpop.f32.mrb[26].mxu0  ;;  %v9491_v36 = vpop.f32.mrb[40].mxu1 }
 0x9f2   : > { %v6807_v38 = vpop.f32.mrb[27].mxu0  ;;  %v6812_v30 = vpop.f32.mrb[41].mxu1 }
 0x9f3   : > { %v3053_v49 = vpop.f32.mrb[42].mxu1 }
 0x9f4   : > { %v6813_v42 = vpop.f32.mrb[43].mxu1 }
 0x9f7   : > { %v9493_v40 = vpop.f32.mrb[28].mxu0 }
 0x9f8   : > { %v6818_v48 = vpop.f32.mrb[29].mxu0 }
 0x9f9   : > { %v3099_v52 = vpop.f32.mrb[30].mxu0  ;;  %v9495_v17 = vpop.f32.mrb[44].mxu1 }
 0x9fa   : > { %v6819_v14 = vpop.f32.mrb[31].mxu0  ;;  %v6824_v25 = vpop.f32.mrb[45].mxu1 }
 0x9fb   : > { %v3145_v22 = vpop.f32.mrb[46].mxu1 }
 0x9fc   : > { %v6825_v16 = vpop.f32.mrb[47].mxu1 }
 0xa00   : > { %v9497_v53 = vpop.permute.xlu1 %2760  ;;  %v9509_v20 = vpop.permute.xlu0 %2801 }
 0xa05   : > { %v9499_v6 = vpop.permute.xlu1 %2781  ;;  %v9511_v26 = vpop.permute.xlu0 %2861 }
 0xa0a   : > { %v9501_v24 = vpop.permute.xlu1 %2821  ;;  %v2751_v61 = vpop.permute.xlu0 %2750 }
 0xa0b   : > { %v2768_v30 = vmul.f32 %v9253_v60, %v2751_v61 }
 0xa0f   : > { %v9503_v39 = vpop.permute.xlu1 %2841  ;;  %v2914_v54 = vpop.permute.xlu0 %2913 }
 0xa13   : > { %v9513_v28 = vpop.permute.xlu0 %2921 }
 0xa14   : > { %v9505_v31 = vpop.permute.xlu1 %2881 }
 0xa18   : > { %v9515_v41 = vpop.permute.xlu0 %2765 }
 0xa19   : > { %v9507_v3 = vpop.permute.xlu1 %2901 }
 0xa1d   : > { %v9525_v25 = vpop.permute.xlu0 %2785 }
 0xa1e   : > { %v2774_v34 = vpop.permute.xlu1 %2773 }
 0xa1f   : > { %v2788_v19 = vmul.f32 %v9244_v57, %v2774_v34 }
 0xa21   : > { %v2932_v22 = vadd.f32 %v2788_v19, %v2768_v30 }
 0xa22   : > { %v9530_v4 = vpop.permute.xlu0 %2805 }
 0xa23   : > { %v2794_v27 = vpop.permute.xlu1 %2793 }
 0xa24   : > { %v2808_v33 = vmul.f32 %v9247_v58, %v2794_v27 }
 0xa28   : > { %v2814_v12 = vpop.permute.xlu1 %2813 }
 0xa29   : > { %v2828_v43 = vmul.f32 %v9240_v55, %v2814_v12 }
 0xa2b   : > { %v2936_v42 = vadd.f32 %v2828_v43, %v2808_v33 }
 0xa2d   : > { %v2834_v11 = vpop.permute.xlu1 %2833  ;;  %v2948_v34 = vadd.f32 %v2936_v42, %v2932_v22 }
 0xa2e   : > { %v2848_v48 = vmul.f32 %v9259_v13, %v2834_v11 }
 0xa32   : > { %v2854_v46 = vpop.permute.xlu1 %2853 }
 0xa33   : > { %v2868_v38 = vmul.f32 %v9250_v59, %v2854_v46  ;;  %v2928_v46 = vmul.f32 %v9274_v37, %v2914_v54 }
 0xa35   : > { %v2940_v16 = vadd.f32 %v2868_v38, %v2848_v48 }
 0xa37   : > { %v2874_v56 = vpop.permute.xlu1 %2873 }
 0xa38   : > { %v2888_v52 = vmul.f32 %v9262_v15, %v2874_v56 }
 0xa3c   : > { %v2894_v49 = vpop.permute.xlu1 %2893 }
 0xa3d   : > { %v2908_v14 = vmul.f32 %v9266_v18, %v2894_v49  ;;  %v2826_v49 = vpop.permute.xlu0 %2825 }
 0xa3f   : > { %v2944_v12 = vadd.f32 %v2908_v14, %v2888_v52 }
 0xa41   : > { %v2952_v23 = vadd.f32 %v2944_v12, %v2940_v16  ;;  %v9527_v27 = vpop.permute.xlu1 %2845  ;;  %v9537_v38 = vpop.permute.xlu0 %2865 }
 0xa43   : > { %v2956_v61 = vadd.f32 %v2952_v23, %v2948_v34 }
 0xa45   : > { %v2960_v43 = vadd.f32 %v2956_v61, %v2928_v46  ;;  %v2798_v54 = vpop.permute.xlu0 %2797 }
 0xa46   : > { %v2756_v11 = vpop.permute.xlu1 %2755 }
 0xa47   : > { %v3005_v33 = vadd.f32 %v3004_v47, %v2960_v43  ;;  %v2769_v12 = vmul.f32 %v9253_v60, %v2756_v11  ;;  %v2850_v11 = vmul.f32 %v9259_v13, %v9503_v39  ;;  %v2770_v39 = vmul.f32 %v9253_v60, %v9497_v53 }
 0xa49   : > { %v9533_v56 = vadd.f32 %v9281_v51, %v3005_v33  ;;  %v2858_v48 = vpop.permute.xlu0 %2857  ;;  %v2809_v51 = vmul.f32 %v9247_v58, %v2798_v54  ;;  %v2830_v54 = vmul.f32 %v9240_v55, %v9501_v24 }
 0xa4a   : > { %v2869_v22 = vmul.f32 %v9250_v59, %v2858_v48 }
 0xa4b   : > { %v2778_v10 = vpop.permute.xlu1 %2777  ;;  %v3152_v19 = vsel %vm1707_vm2, %v9533_v56, -inf }
 0xa4c   : > { %3153 = vmax.xlane.f32.xlu1 %v3152_v19  ;;  %v2789_v47 = vmul.f32 %v9244_v57, %v2778_v10  ;;  %v2910_v10 = vmul.f32 %v9266_v18, %v9507_v3  ;;  %v2870_v3 = vmul.f32 %v9250_v59, %v9511_v26 }
 0xa4d   : > { %v2918_v19 = vpop.permute.xlu0 %2917 }
 0xa4e   : > { %v2933_v43 = vadd.f32 %v2789_v47, %v2769_v12  ;;  %v2929_v48 = vmul.f32 %v9274_v37, %v2918_v19  ;;  %v2790_v47 = vmul.f32 %v9244_v57, %v9499_v6  ;;  %v2930_v6 = vmul.f32 %v9274_v37, %v9513_v28 }
 0xa4f   : > { %v2791_v28 = vmul.f32 %v9244_v57, %v9525_v25 }
 0xa50   : > { %v2818_v30 = vpop.permute.xlu1 %2817  ;;  %v2934_v12 = vadd.f32 %v2790_v47, %v2770_v39 }
 0xa51   : > { %v2829_v52 = vmul.f32 %v9240_v55, %v2818_v30 }
 0xa53   : > { %v2937_v34 = vadd.f32 %v2829_v52, %v2809_v51  ;;  %v2810_v51 = vmul.f32 %v9247_v58, %v9509_v20 }
 0xa55   : > { %v2838_v42 = vpop.permute.xlu1 %2837  ;;  %v2949_v30 = vadd.f32 %v2937_v34, %v2933_v43 }
 0xa56   : > { %v2849_v14 = vmul.f32 %v9259_v13, %v2838_v42 }
 0xa5a   : > { %v2878_v23 = vpop.permute.xlu1 %2877 }
 0xa5b   : > { %v2889_v46 = vmul.f32 %v9262_v15, %v2878_v23  ;;  %v2890_v23 = vmul.f32 %v9262_v15, %v9505_v31 }
 0xa5d   : > { %2905 = vperm.xlu1 %7264, %v9437_v29   ;;  %v2941_v29 = vadd.f32 %v2869_v22, %v2849_v14  ;;  %v2946_v14 = vadd.f32 %v2910_v10, %v2890_v23  ;;  %v2938_v22 = vadd.f32 %v2830_v54, %v2810_v51  ;;  %v2811_v10 = vmul.f32 %v9247_v58, %v9530_v4 }
 0xa5f   : > { %v2898_v16 = vpop.permute.xlu1 %2897  ;;  %v2950_v20 = vadd.f32 %v2938_v22, %v2934_v12 }
 0xa60   : > { %v2909_v61 = vmul.f32 %v9266_v18, %v2898_v16  ;;  %v2942_v16 = vadd.f32 %v2870_v3, %v2850_v11 }
 0xa61   : > { %7268 = vset.pattern.permute.xlu1 %v10300_v9 }
 0xa62   : > { %v2945_v33 = vadd.f32 %v2909_v61, %v2889_v46  ;;  %v2954_v34 = vadd.f32 %v2946_v14, %v2942_v16 }
 0xa64   : > { %v2953_v42 = vadd.f32 %v2945_v33, %v2941_v29  ;;  %v2958_v26 = vadd.f32 %v2954_v34, %v2950_v20 }
 0xa66   : > { %v2957_v52 = vadd.f32 %v2953_v42, %v2949_v30  ;;  %v2962_v43 = vadd.f32 %v2958_v26, %v2930_v6  ;;  %v2886_v30 = vpop.permute.xlu0 %2885 }
 0xa68   : > { %v2961_v24 = vadd.f32 %v2957_v52, %v2929_v48  ;;  %v3097_v29 = vadd.f32 %v9493_v40, %v2962_v43  ;;  %v2851_v40 = vmul.f32 %v9259_v13, %v9527_v27 }
 0xa6a   : > { %v3051_v31 = vadd.f32 %v9491_v36, %v2961_v24  ;;  %v3150_v53 = vadd.f32 %v9328_v0, %v3097_v29  ;;  %v2831_v36 = vmul.f32 %v9240_v55, %v2826_v49  ;;  %v2771_v0 = vmul.f32 %v9253_v60, %v9515_v41  ;;  %v2926_v52 = vpop.permute.xlu0 %2925 }
 0xa6b   : > { %v2871_v49 = vmul.f32 %v9250_v59, %v9537_v38  ;;  %v2931_v3 = vmul.f32 %v9274_v37, %v2926_v52  ;;  %v7352_v52 = vld [vmem:[%s9036_s21 + $0x20] sm:$0xff]  }
 0xa6c   : > { %v3149_v46 = vadd.f32 %v9320_v63, %v3051_v31  ;;  %v3158_v33 = vsel %vm1707_vm2, %v3150_v53, -inf  ;;  %v2939_v54 = vadd.f32 %v2831_v36, %v2811_v10  ;;  %v2935_v23 = vadd.f32 %v2791_v28, %v2771_v0 }
 0xa6d   : > { %v2943_v48 = vadd.f32 %v2871_v49, %v2851_v40  ;;  %v6527_v0 = vpack.c.bf16 %v9404_v45, %v9404_v45  ;;  %v7354_v49 = vld [vmem:[%s9032_s6 + $0x20] sm:$0xff]  }
 0xa6e   : > { %v3155_v61 = vsel %vm1707_vm2, %v3149_v46, -inf  ;;  %v2951_v51 = vadd.f32 %v2939_v54, %v2935_v23  ;;  %v7351_v45 = vld [vmem:[%s9028_s16 + $0x28] sm:$0xff]  }
 0xa6f   : > { %3156 = vmax.xlane.f32.xlu0 %v3155_v61 }
 0xa81   : > { %3159 = vmax.xlane.f32.xlu1 %v3158_v33 }
 0xad9   : > { %v3154_v19 = vpop.xlane.xlu1 %3153 }
 0xada   : > { %v3164_v63 = vsub.f32 %v9533_v56, %v3154_v19  ;;  %v2891_v56 = vmul.f32 %v9262_v15, %v2886_v30  ;;  %v6526_v19 = vpack.c.bf16 %v9401_v50, %v9401_v50 }
 0xadc   : > { %v3168_v42 = vmul.f32 1.442695, %v3164_v63  ;;  %v3296_v30 = vsel %vm2245_vm4, %v6526_v19, 0 }
 0xadd   : > { %v2906_v11 = vpop.permute.xlu1 %2905 }
 0xade   : > { %7398 = vpow2.f32 %v3168_v42  ;;  %v2911_v4 = vmul.f32 %v9266_v18, %v2906_v11 }
 0xae0   : > { %v2947_v25 = vadd.f32 %v2911_v4, %v2891_v56  ;;  %v3342_v56 = vsel %vm2245_vm4, %v6527_v0, 0 }
 0xae2   : > { %v2955_v27 = vadd.f32 %v2947_v25, %v2943_v48 }
 0xae4   : > { %v2959_v47 = vadd.f32 %v2955_v27, %v2951_v51  ;;  %v7353_v51 = vld [vmem:[%s9036_s21 + $0x28] sm:$0xff]  }
 0xae6   : > { %v2963_v41 = vadd.f32 %v2959_v47, %v2931_v3 }
 0xae8   : > { %v7399_v14 = vpop.eup %7398  ;;  %v3143_v24 = vadd.f32 %v9495_v17, %v2963_v41 }
 0xae9   : > { %v3176_v38 = vsel %vm1707_vm2, %v7399_v14, 0.0 }
 0xaea   : > { %3177 = vadd.xlane.f32.xlu0 %v3176_v38  ;;  %v3151_v39 = vadd.f32 %v9347_v32, %v3143_v24  ;;  %v9630_v24 = vld [vmem:[%s9043_s24] sm:$0x1f]  }
 0xaec   : > { %v3161_v22 = vsel %vm1707_vm2, %v3151_v39, -inf }
 0xaed   : > { %3162 = vmax.xlane.f32.xlu1 %v3161_v22 }
 0xafc   : > { %v3157_v16 = vpop.xlane.xlu0 %3156 }
 0xafd   : > { %v3165_v31 = vsub.f32 %v3149_v46, %v3157_v16 }
 0xaff   : > { %v3170_v12 = vmul.f32 1.442695, %v3165_v31 }
 0xb01   : > { %7400 = vpow2.f32 %v3170_v12 }
 0xb0b   : > { %v7401_v34 = vpop.eup %7400 }
 0xb0c   : > { %v3179_v20 = vsel %vm1707_vm2, %v7401_v34, 0.0 }
 0xb0d   : > { %3180 = vadd.xlane.f32.xlu0 %v3179_v20 }
 0xb0e   : > { %v3160_v61 = vpop.xlane.xlu1 %3159 }
 0xb0f   : > { %v3166_v26 = vsub.f32 %v3150_v53, %v3160_v61  ;;  %v7350_v53 = vld [vmem:[%s9028_s16 + $0x20] sm:$0xff]  }
 0xb11   : > { %v3172_v17 = vmul.f32 1.442695, %v3166_v26 }
 0xb13   : > { %7402 = vpow2.f32 %v3172_v17 }
 0xb1d   : > { %v7403_v6 = vpop.eup %7402 }
 0xb1e   : > { %v3182_v43 = vsel %vm1707_vm2, %v7403_v6, 0.0 }
 0xb1f   : > { %3183 = vadd.xlane.f32.xlu1 %v3182_v43 }
 0xb77   : > { %v3178_v32 = vpop.xlane.xlu0 %3177 }
 0xb78   : > { %7404 = vrcp.f32 %v3178_v32  ;;  %v6367_v32 = vld [vmem:[%s9030_s27 + $0x2] ss:$0 sm:$0xff] }
 0xb7a   : > { %v3163_v29 = vpop.xlane.xlu1 %3162 }
 0xb7b   : > { %v3167_v33 = vsub.f32 %v3151_v39, %v3163_v29 }
 0xb7d   : > { %v3174_v46 = vmul.f32 1.442695, %v3167_v33 }
 0xb7f   : > { %7406 = vpow2.f32 %v3174_v46 }
 0xb82   : > { %v7405_v36 = vpop.eup %7404 }
 0xb83   : > { %v3192_v63 = vmul.f32 %v7405_v36, %v7399_v14  ;;  %v7355_v14 = vld [vmem:[%s9032_s6 + $0x28] sm:$0xff]  }
 0xb85   : > { %v3196_v10 = vpack.c.bf16 %v3192_v63, %v3192_v63 }
 0xb87   : > { %6829 = vmatmul.mubr.msk.bf16.vlgmr.msra.gmra.mrb[32].mxu0 %vm1707_vm2, %v3196_v10 }
 0xb88   : > { %6839 = vmatpush3.bf16.msra.mxu0 %v3296_v30  ;;  %6840 = vmatprep.mubr.msk.bf16.mxu0 %vm8187_vm3, %v10304_v8 }
 0xb89   : > { %v7407_v28 = vpop.eup %7406  ;;  %6850 = vmatprep.subr.bf16.mxu0 %v7350_v53 }
 0xb8a   : > { %v3185_v40 = vsel %vm1707_vm2, %v7407_v28, 0.0 }
 0xb8b   : > { %3186 = vadd.xlane.f32.xlu1 %v3185_v40 }
 0xb9a   : > { %v3181_v42 = vpop.xlane.xlu0 %3180 }
 0xb9b   : > { %7408 = vrcp.f32 %v3181_v42 }
 0xba5   : > { %v7409_v50 = vpop.eup %7408 }
 0xba6   : > { %v3193_v54 = vmul.f32 %v7409_v50, %v7401_v34  ;;  %v6387_v50 = vld [vmem:[%s9038_s20 + $0x2] ss:$0 sm:$0xff] }
 0xba8   : > { %v3197_v11 = vpack.c.bf16 %v3193_v54, %v3193_v54 }
 0xbaa   : > { %6835 = vmatmul.mubr.msk.bf16.vlgmr.msra.gmra.mrb[48].mxu1 %vm1707_vm2, %v3197_v11 }
 0xbab   : > { %6845 = vmatpush3.bf16.msra.mxu1 %v3342_v56  ;;  %6846 = vmatprep.mubr.msk.bf16.mxu1 %vm8187_vm3, %v10304_v8 }
 0xbac   : > { %v3184_v4 = vpop.xlane.xlu1 %3183  ;;  %6858 = vmatprep.subr.bf16.mxu1 %v7354_v49 }
 0xbad   : > { %7410 = vrcp.f32 %v3184_v4 }
 0xbb7   : > { %v7411_v23 = vpop.eup %7410 }
 0xbb8   : > { %v3194_v48 = vmul.f32 %v7411_v23, %v7403_v6 }
 0xbba   : > { %v3198_v25 = vpack.c.bf16 %v3194_v48, %v3194_v48 }
 0xbbc   : > { %6841 = vmatmul.mubr.msk.bf16.vlgmr.msra.gmra.mrb[36].mxu0 %vm1707_vm2, %v3198_v25 }
 0xbbd   : > { %6851 = vmatpush3.bf16.msra.mxu0 %v7350_v53  ;;  %6854 = vmatprep.mubr.msk.bf16.mxu0 %vm1325_vm1, %v9077_v62 }
 0xbbe   : > { %6852 = vmatprep.subr.bf16.mxu0 %v7351_v45 }
 0xbc1   : > { %6853 = vmatpush3.bf16.msra.mxu0 %v7351_v45 }
 0xbc2   : > { %6866 = vmatprep.subr.bf16.mxu0 %v7352_v52 }
 0xbc4   : > { %6855 = vmatmul.mubr.msk.bf16.vlgmr.msra.gmra.mrb[40].mxu0 %vm1325_vm1, %v9081_v2 }
 0xbc5   : > { %6867 = vmatpush3.bf16.msra.mxu0 %v7352_v52  ;;  %6870 = vmatprep.mubr.msk.bf16.mxu0 %vm1325_vm1, %v9077_v62 }
 0xbc6   : > { %6868 = vmatprep.subr.bf16.mxu0 %v7353_v51 }
 0xbc9   : > { %6869 = vmatpush3.bf16.msra.mxu0 %v7353_v51 }
 0xbca   : > { %6880 = vmatprep.subr.bf16.mxu0 %v10304_v8 }
 0xbcc   : > { %6871 = vmatmul.mubr.msk.bf16.vlgmr.msra.gmra.mrb[44].mxu0 %vm1325_vm1, %v9081_v2 }
 0xbcd   : > { %6882 = vmatprep.mubr.msk.bf16.mxu0 %vm8187_vm3, %v10304_v8 }
 0xc18   : > { %v3187_v27 = vpop.xlane.xlu1 %3186 }
 0xc19   : > { %7412 = vrcp.f32 %v3187_v27 }
 0xc23   : > { %v7413_v3 = vpop.eup %7412 }
 0xc24   : > { %v3195_v47 = vmul.f32 %v7413_v3, %v7407_v28  ;;  %v6377_v3 = vld [vmem:[%s9034_s2 + $0x2] ss:$0 sm:$0xff] }
 0xc26   : > { %v3199_v41 = vpack.c.bf16 %v3195_v47, %v3195_v47 }
 0xc28   : > { %6847 = vmatmul.mubr.msk.bf16.vlgmr.msra.gmra.mrb[52].mxu1 %vm1707_vm2, %v3199_v41 }
 0xc29   : > { %6859 = vmatpush3.bf16.msra.mxu1 %v7354_v49  ;;  %6862 = vmatprep.mubr.msk.bf16.mxu1 %vm1325_vm1, %v9077_v62 }
 0xc2a   : > { %6860 = vmatprep.subr.bf16.mxu1 %v7355_v14 }
 0xc2d   : > { %6861 = vmatpush3.bf16.msra.mxu1 %v7355_v14 }
 0xc2e   : > { %7044 = vmatprep.subr.msk.bf16.mxu1 %vm1707_vm2, %v9630_v24 }
 0xc30   : > { %6863 = vmatmul.mubr.msk.bf16.vlgmr.msra.gmra.mrb[56].mxu1 %vm1325_vm1, %v9081_v2 }
 0xc36   : > { %6875 = vmatpush3.bf16.xpose.msra.mxu1 %v9103_v7 }
 0xc37   : > { %6886 = vmatprep.subr.bf16.mxu1 %v10304_v8 }
 0xc5a   : > { %v9638_v38 = vpop.f32.mrb[32].mxu0 }
 0xc5b   : > { %10389 = vst [vmem:[#allocation44_spill] sm:$0xff] %v9638_v38  ;;  %v6830_v39 = vpop.f32.mrb[33].mxu0 }
 0xc5c   : > { %v3243_v22 = vpop.f32.mrb[34].mxu0 }
 0xc5d   : > { %v6831_v16 = vpop.f32.mrb[35].mxu0 }
 0xc7d   : > { %v9640_v31 = vpop.f32.mrb[48].mxu1 }
 0xc7e   : > { %v6836_v34 = vpop.f32.mrb[49].mxu1 }
 0xc7f   : > { %v3289_v20 = vpop.f32.mrb[50].mxu1 }
 0xc80   : > { %v6837_v61 = vpop.f32.mrb[51].mxu1 }
 0xc8f   : > { %v9644_v26 = vpop.f32.mrb[36].mxu0 }
 0xc90   : > { %10390 = vst [vmem:[#allocation45_spill] sm:$0xff] %v9644_v26  ;;  %v6842_v17 = vpop.f32.mrb[37].mxu0 }
 0xc91   : > { %v3335_v6 = vpop.f32.mrb[38].mxu0 }
 0xc92   : > { %v6843_v43 = vpop.f32.mrb[39].mxu0 }
 0xc97   : > { %v6856_v29 = vpop.f32.mrb[40].mxu0 }
 0xc98   : > { %v3465_v33 = vadd.f32 %v6856_v29, %v6367_v32  ;;  %v3456_v46 = vpop.f32.mrb[41].mxu0 }
 0xc99   : > { %v3457_v36 = vadd.f32 %v6367_v32, %v3456_v46  ;;  %v6857_v19 = vpop.f32.mrb[42].mxu0 }
 0xc9a   : > { %v3468_v63 = vadd.f32 %v6857_v19, %v6367_v32  ;;  %v3459_v10 = vpop.f32.mrb[43].mxu0  ;;  %v3621_v30 = vmul.f32 0.35355338, %v3465_v33 }
 0xc9b   : > { %v3460_v53 = vadd.f32 %v6367_v32, %v3459_v10  ;;  %v3619_v40 = vmul.f32 0.35355338, %v3457_v36 }
 0xc9c   : > { %v9647_v28 = vmul.f32 0.35355338, %v3468_v63 }
 0xc9d   : > { %v3620_v42 = vmul.f32 0.35355338, %v3460_v53  ;;  %v6528_v29 = vpack.c.bf16 %v3619_v40, %v3619_v40 }
 0xc9e   : > { %v3624_v0 = vpack.c.bf16 %v9647_v28, %v3621_v30 }
 0xc9f   : > { %v3623_v54 = vpack.c.bf16 %v3620_v42, %v3619_v40  ;;  %v6872_v11 = vpop.f32.mrb[44].mxu0  ;;  %v6529_v46 = vpack.c.bf16 %v3620_v42, %v3620_v42  ;;  %v6530_v40 = vpack.c.bf16 %v3621_v30, %v3621_v30 }
 0xca0   : > { %v9651_v49 = vadd.f32 %v6872_v11, %v6387_v50  ;;  %v3604_v56 = vpop.f32.mrb[45].mxu0 }
 0xca1   : > { %v6873_v4 = vpop.f32.mrb[46].mxu0  ;;  %6876 = vmatprep.mubr.msk.bf16.mxu1 %vm1707_vm2, %v3623_v54  ;;  %v3605_v36 = vadd.f32 %v6387_v50, %v3604_v56 }
 0xca2   : > { %v9654_v23 = vadd.f32 %v6873_v4, %v6387_v50  ;;  %v3607_v48 = vpop.f32.mrb[47].mxu0  ;;  %6877 = vmatmul.mubr.msk.bf16.vlgmr.msra.gmra.mrb[60].mxu1 %vm1707_vm2, %v3624_v0  ;;  %v6531_v0 = vpack.c.bf16 %v9647_v28, %v9647_v28  ;;  %v10392_v4 = vmov 0  }
 0xca3   : > { %6888 = vmatprep.mubr.msk.bf16.mxu1 %vm8187_vm3, %v10304_v8  ;;  %v3608_v63 = vadd.f32 %v6387_v50, %v3607_v48  ;;  %v6536_v53 = vpack.c.bf16 %v3605_v36, %v3605_v36  ;;  %v10393_v48 = vmov 4  }
 0xca5   : > { %v6537_v42 = vpack.c.bf16 %v3608_v63, %v3608_v63  ;;  %v4170_v50 = vsel %vm2245_vm4, %v6536_v53, 0 }
 0xca7   : > { %v4216_v54 = vsel %vm2245_vm4, %v6537_v42, 0 }
 0xcfb   : > { %v9659_v25 = vpop.f32.mrb[52].mxu1 }
 0xcfc   : > { %10391 = vst [vmem:[#allocation46_spill] sm:$0xff] %v9659_v25  ;;  %v6848_v52 = vpop.f32.mrb[53].mxu1 }
 0xcfd   : > { %v3381_v51 = vpop.f32.mrb[54].mxu1  ;;  %v10394_v52 = vmov 8  }
 0xcfe   : > { %v6849_v27 = vpop.f32.mrb[55].mxu1 }
 0xd03   : > { %v6864_v47 = vpop.f32.mrb[56].mxu1 }
 0xd04   : > { %v3530_v41 = vpop.f32.mrb[57].mxu1  ;;  %v3539_v20 = vadd.f32 %v6864_v47, %v6377_v3 }
 0xd05   : > { %v3531_v14 = vadd.f32 %v6377_v3, %v3530_v41  ;;  %v6865_v39 = vpop.f32.mrb[58].mxu1 }
 0xd06   : > { %v3533_v22 = vpop.f32.mrb[59].mxu1  ;;  %v3542_v6 = vadd.f32 %v6865_v39, %v6377_v3  ;;  %v6534_v32 = vpack.c.bf16 %v3539_v20, %v3539_v20 }
 0xd07   : > { %v6532_v16 = vpack.c.bf16 %v3531_v14, %v3531_v14  ;;  %v3534_v34 = vadd.f32 %v6377_v3, %v3533_v22 }
 0xd08   : > { %v6535_v33 = vpack.c.bf16 %v3542_v6, %v3542_v6  ;;  %v4026_v19 = vsel %vm1707_vm2, %v6534_v32, 0 }
 0xd09   : > { %v3934_v61 = vsel %vm1707_vm2, %v6532_v16, 0  ;;  %v6533_v17 = vpack.c.bf16 %v3534_v34, %v3534_v34 }
 0xd0a   : > { %6881 = vmatpush3.bf16.xpose.msra.mxu0 %v3934_v61  ;;  %v4072_v10 = vsel %vm1707_vm2, %v6535_v33, 0 }
 0xd0b   : > { %v3980_v43 = vsel %vm1707_vm2, %v6533_v17, 0  ;;  %6892 = vmatprep.subr.bf16.mxu0 %v10304_v8 }
 0xd0c   : > { %6887 = vmatpush3.bf16.xpose.msra.mxu1 %v3980_v43 }
 0xd0d   : > { %6898 = vmatprep.subr.bf16.mxu1 %v10304_v8 }
 0xd11   : > { %6883 = vmatmul.mubr.msk.bf16.vlgmr.msra.gmra.mrb[48].mxu0 %vm1707_vm2, %v6528_v29 }
 0xd12   : > { %6893 = vmatpush3.bf16.xpose.msra.mxu0 %v4026_v19  ;;  %6894 = vmatprep.mubr.msk.bf16.mxu0 %vm8187_vm3, %v10304_v8 }
 0xd13   : > { %6889 = vmatmul.mubr.msk.bf16.vlgmr.msra.gmra.mrb[64].mxu1 %vm1707_vm2, %v6529_v46  ;;  %6904 = vmatprep.subr.bf16.mxu0 %v10304_v8 }
 0xd14   : > { %6899 = vmatpush3.bf16.xpose.msra.mxu1 %v4072_v10  ;;  %6900 = vmatprep.mubr.msk.bf16.mxu1 %vm8187_vm3, %v10304_v8 }
 0xd15   : > { %6910 = vmatprep.subr.bf16.mxu1 %v10304_v8 }
 0xd19   : > { %6895 = vmatmul.mubr.msk.bf16.vlgmr.msra.gmra.mrb[52].mxu0 %vm1707_vm2, %v6530_v40 }
 0xd1a   : > { %6905 = vmatpush3.bf16.msra.mxu0 %v4170_v50  ;;  %6906 = vmatprep.mubr.msk.bf16.mxu0 %vm8187_vm3, %v10304_v8 }
 0xd1b   : > { %6901 = vmatmul.mubr.msk.bf16.vlgmr.msra.gmra.mrb[68].mxu1 %vm1707_vm2, %v6531_v0  ;;  %6916 = vmatprep.subr.bf16.mxu0 %v10304_v8 }
 0xd1c   : > { %6911 = vmatpush3.bf16.msra.mxu1 %v4216_v54  ;;  %6912 = vmatprep.mubr.msk.bf16.mxu1 %vm8187_vm3, %v10304_v8 }
 0xd1d   : > { %6922 = vmatprep.subr.bf16.mxu1 %v10304_v8 }
 0xd75   : > { %v6878_v30 = vpop.f32.mrb[60].mxu1 }
 0xd76   : > { %3767 = vperm.xlu0 %7269, %v6878_v30   ;;  %3747 = vperm.xlu1 %7268, %v6878_v30   ;;  %v3699_v28 = vpop.f32.mrb[61].mxu1 }
 0xd77   : > { %v9690_v11 = vpop.f32.mrb[62].mxu1 }
 0xd78   : > { %v9692_v56 = vpop.f32.mrb[63].mxu1 }
 0xd7a   : > { %7272 = vset.pattern.permute.xlu0 %v10302_v5  ;;  %7270 = vset.pattern.permute.xlu1 %v10298_v1 }
 0xd7b   : > { %3827 = vperm.xlu0 %7272, %v6878_v30   ;;  %3787 = vperm.xlu1 %7270, %v6878_v30  }
 0xd7f   : > { %7275 = vset.pattern.permute.xlu0 %v10392_v4  ;;  %7271 = vset.pattern.permute.xlu1 %v10393_v48 }
 0xd80   : > { %3807 = vperm.xlu1 %7271, %v6878_v30   ;;  %3716 = vperm.xlu0 %7275, %v3699_v28  }
 0xd84   : > { %7273 = vset.pattern.permute.xlu1 %v10386_v35  ;;  %7276 = vset.pattern.permute.xlu0 %v10394_v52 }
 0xd85   : > { %3847 = vperm.xlu1 %7273, %v6878_v30   ;;  %3887 = vperm.xlu0 %7276, %v6878_v30  }
 0xd89   : > { %7274 = vset.pattern.permute.xlu1 %v10387_v44  ;;  %7277 = vset.pattern.permute.xlu0 %v10392_v4 }
 0xd8a   : > { %3867 = vperm.xlu1 %7274, %v6878_v30   ;;  %3726 = vperm.xlu0 %7277, %v6878_v30  }
 0xd8e   : > { %7278 = vset.pattern.permute.xlu1 %v10300_v9  ;;  %3731 = vperm.xlu0 %7277, %v9690_v11  }
 0xd8f   : > { %3739 = vperm.xlu1 %7278, %v3699_v28  }
 0xd92   : > { %7286 = vset.pattern.permute.xlu0 %v10300_v9 }
 0xd93   : > { %7279 = vset.pattern.permute.xlu1 %v10388_v21  ;;  %3751 = vperm.xlu0 %7286, %v9690_v11  }
 0xd94   : > { %3759 = vperm.xlu1 %7279, %v3699_v28  }
 0xd97   : > { %7287 = vset.pattern.permute.xlu0 %v10388_v21 }
 0xd98   : > { %7280 = vset.pattern.permute.xlu1 %v10298_v1  ;;  %3771 = vperm.xlu0 %7287, %v9690_v11  }
 0xd99   : > { %3779 = vperm.xlu1 %7280, %v3699_v28  }
 0xd9c   : > { %7288 = vset.pattern.permute.xlu0 %v10298_v1 }
 0xd9d   : > { %7281 = vset.pattern.permute.xlu1 %v10393_v48  ;;  %3791 = vperm.xlu0 %7288, %v9690_v11  }
 0xd9e   : > { %3799 = vperm.xlu1 %7281, %v3699_v28  }
 0xda1   : > { %7290 = vset.pattern.permute.xlu0 %v10302_v5 }
 0xda2   : > { %7282 = vset.pattern.permute.xlu1 %v10302_v5  ;;  %3831 = vperm.xlu0 %7290, %v9690_v11  }
 0xda3   : > { %3819 = vperm.xlu1 %7282, %v3699_v28  }
 0xda6   : > { %7291 = vset.pattern.permute.xlu0 %v10386_v35 }
 0xda7   : > { %7283 = vset.pattern.permute.xlu1 %v10386_v35  ;;  %3851 = vperm.xlu0 %7291, %v9690_v11  }
 0xda8   : > { %3839 = vperm.xlu1 %7283, %v3699_v28  }
 0xdab   : > { %7294 = vset.pattern.permute.xlu0 %v10388_v21 }
 0xdac   : > { %7284 = vset.pattern.permute.xlu1 %v10387_v44  ;;  %3763 = vperm.xlu0 %7294, %v9692_v56  }
 0xdad   : > { %3859 = vperm.xlu1 %7284, %v3699_v28  }
 0xdb0   : > { %7297 = vset.pattern.permute.xlu0 %v10302_v5 }
 0xdb1   : > { %7285 = vset.pattern.permute.xlu1 %v10394_v52  ;;  %3823 = vperm.xlu0 %7297, %v9692_v56  }
 0xdb2   : > { %3879 = vperm.xlu1 %7285, %v3699_v28  }
 0xdb5   : > { %7300 = vset.pattern.permute.xlu0 %v10394_v52 }
 0xdb6   : > { %7289 = vset.pattern.permute.xlu1 %v10393_v48  ;;  %3883 = vperm.xlu0 %7300, %v9692_v56  }
 0xdb7   : > { %3811 = vperm.xlu1 %7289, %v9690_v11  }
 0xdba   : > { %7301 = vset.pattern.permute.xlu0 %v10387_v44 }
 0xdbb   : > { %7292 = vset.pattern.permute.xlu1 %v10392_v4  ;;  %3871 = vperm.xlu0 %7301, %v9690_v11  }
 0xdbc   : > { %3721 = vperm.xlu1 %7292, %v9692_v56  }
 0xdbf   : > { %7305 = vset.pattern.permute.xlu0 %v10388_v21 }
 0xdc0   : > { %7293 = vset.pattern.permute.xlu1 %v10300_v9 }
 0xdc1   : > { %3743 = vperm.xlu1 %7293, %v9692_v56  }
 0xdc5   : > { %7295 = vset.pattern.permute.xlu1 %v10298_v1 }
 0xdc6   : > { %3783 = vperm.xlu1 %7295, %v9692_v56  }
 0xdca   : > { %7296 = vset.pattern.permute.xlu1 %v10393_v48 }
 0xdcb   : > { %3803 = vperm.xlu1 %7296, %v9692_v56  }
 0xdcf   : > { %7298 = vset.pattern.permute.xlu1 %v10386_v35 }
 0xdd0   : > { %3843 = vperm.xlu1 %7298, %v9692_v56  }
 0xdd4   : > { %7299 = vset.pattern.permute.xlu1 %v10387_v44 }
 0xdd5   : > { %3863 = vperm.xlu1 %7299, %v9692_v56  }
 0xdd9   : > { %7302 = vset.pattern.permute.xlu1 %v10394_v52 }
 0xde4   : > { %v9745_v51 = vpop.f32.mrb[48].mxu0 }
 0xde5   : > { %v6884_v27 = vpop.f32.mrb[49].mxu0 }
 0xde6   : > { %v3973_v3 = vpop.f32.mrb[50].mxu0  ;;  %v9747_v47 = vpop.f32.mrb[64].mxu1 }
 0xde7   : > { %v6885_v41 = vpop.f32.mrb[51].mxu0  ;;  %v6890_v14 = vpop.f32.mrb[65].mxu1 }
 0xde8   : > { %v4019_v39 = vpop.f32.mrb[66].mxu1 }
 0xde9   : > { %v6891_v22 = vpop.f32.mrb[67].mxu1 }
 0xdec   : > { %v9749_v16 = vpop.f32.mrb[52].mxu0 }
 0xded   : > { %v6896_v34 = vpop.f32.mrb[53].mxu0 }
 0xdee   : > { %v4065_v20 = vpop.f32.mrb[54].mxu0  ;;  %v9751_v61 = vpop.f32.mrb[68].mxu1 }
 0xdef   : > { %v6897_v17 = vpop.f32.mrb[55].mxu0  ;;  %v6902_v6 = vpop.f32.mrb[69].mxu1 }
 0xdf0   : > { %v4111_v43 = vpop.f32.mrb[70].mxu1 }
 0xdf1   : > { %v6903_v32 = vpop.f32.mrb[71].mxu1 }
 0xdf5   : > { %v9753_v29 = vpop.permute.xlu0 %3767  ;;  %v9755_v33 = vpop.permute.xlu1 %3747 }
 0xdfa   : > { %v9757_v46 = vpop.permute.xlu0 %3827  ;;  %v9759_v36 = vpop.permute.xlu1 %3787 }
 0xdff   : > { %v9761_v19 = vpop.permute.xlu1 %3807  ;;  %v3717_v63 = vpop.permute.xlu0 %3716 }
 0xe04   : > { %v9763_v10 = vpop.permute.xlu1 %3847  ;;  %v9765_v53 = vpop.permute.xlu0 %3887 }
 0xe09   : > { %v9767_v40 = vpop.permute.xlu1 %3867  ;;  %v9769_v42 = vpop.permute.xlu0 %3726 }
 0xe0d   : > { %v3732_v0 = vpop.permute.xlu0 %3731 }
 0xe0e   : > { %v3740_v50 = vpop.permute.xlu1 %3739  ;;  %v3737_v30 = vmul.f32 %v9253_v60, %v3732_v0 }
 0xe12   : > { %v3752_v54 = vpop.permute.xlu0 %3751 }
 0xe13   : > { %v3757_v28 = vmul.f32 %v9244_v57, %v3752_v54  ;;  %v3760_v56 = vpop.permute.xlu1 %3759  ;;  %v3754_v54 = vmul.f32 %v9244_v57, %v3740_v50 }
 0xe15   : > { %v3901_v27 = vadd.f32 %v3757_v28, %v3737_v30  ;;  %v3774_v30 = vmul.f32 %v9247_v58, %v3760_v56 }
 0xe17   : > { %v3772_v3 = vpop.permute.xlu0 %3771 }
 0xe18   : > { %v3780_v41 = vpop.permute.xlu1 %3779  ;;  %v3777_v39 = vmul.f32 %v9247_v58, %v3772_v3  ;;  %v3734_v3 = vmul.f32 %v9253_v60, %v3717_v63 }
 0xe19   : > { %v3794_v0 = vmul.f32 %v9240_v55, %v3780_v41 }
 0xe1c   : > { %v3792_v14 = vpop.permute.xlu0 %3791 }
 0xe1d   : > { %v3797_v22 = vmul.f32 %v9240_v55, %v3792_v14  ;;  %v3800_v34 = vpop.permute.xlu1 %3799  ;;  %v3902_v14 = vadd.f32 %v3794_v0, %v3774_v30 }
 0xe1f   : > { %v3905_v20 = vadd.f32 %v3797_v22, %v3777_v39  ;;  %v3814_v39 = vmul.f32 %v9259_v13, %v3800_v34 }
 0xe21   : > { %v3917_v17 = vadd.f32 %v3905_v20, %v3901_v27  ;;  %v3832_v6 = vpop.permute.xlu0 %3831  ;;  %v3898_v20 = vadd.f32 %v3754_v54, %v3734_v3  ;;  %v9787_v54 = vld [vmem:[#allocation7] ss:$0 sm:$0xff] }
 0xe22   : > { %v3820_v43 = vpop.permute.xlu1 %3819  ;;  %v3837_v0 = vmul.f32 %v9250_v59, %v3832_v6 }
 0xe23   : > { %v3834_v28 = vmul.f32 %v9250_v59, %v3820_v43  ;;  %v3914_v50 = vadd.f32 %v3902_v14, %v3898_v20 }
 0xe25   : > { %v3906_v9 = vadd.f32 %v3834_v28, %v3814_v39 }
 0xe26   : > { %v3852_v32 = vpop.permute.xlu0 %3851 }
 0xe27   : > { %v3840_v45 = vpop.permute.xlu1 %3839  ;;  %v3857_v28 = vmul.f32 %v9262_v15, %v3852_v32 }
 0xe28   : > { %v3854_v27 = vmul.f32 %v9262_v15, %v3840_v45 }
 0xe2b   : > { %v3764_v12 = vpop.permute.xlu0 %3763 }
 0xe2c   : > { %v3860_v1 = vpop.permute.xlu1 %3859  ;;  %v3775_v32 = vmul.f32 %v9247_v58, %v3764_v12 }
 0xe2d   : > { %v3874_v22 = vmul.f32 %v9266_v18, %v3860_v1 }
 0xe2f   : > { %v3910_v41 = vadd.f32 %v3874_v22, %v3854_v27 }
 0xe30   : > { %v3824_v5 = vpop.permute.xlu0 %3823 }
 0xe31   : > { %v3918_v8 = vadd.f32 %v3910_v41, %v3906_v9  ;;  %v3880_v56 = vpop.permute.xlu1 %3879 }
 0xe32   : > { %v3894_v43 = vmul.f32 %v9274_v37, %v3880_v56  ;;  %v3835_v56 = vmul.f32 %v9250_v59, %v3824_v5  ;;  %v3856_v5 = vmul.f32 %v9262_v15, %v9763_v10 }
 0xe33   : > { %v3922_v26 = vadd.f32 %v3918_v8, %v3914_v50  ;;  %v3876_v50 = vmul.f32 %v9266_v18, %v9767_v40  ;;  %v3816_v40 = vmul.f32 %v9259_v13, %v9761_v19 }
 0xe35   : > { %v3926_v25 = vadd.f32 %v3922_v26, %v3894_v43  ;;  %v3884_v63 = vpop.permute.xlu0 %3883 }
 0xe36   : > { %v3812_v38 = vpop.permute.xlu1 %3811  ;;  %v3895_v19 = vmul.f32 %v9274_v37, %v3884_v63 }
 0xe37   : > { %v3817_v34 = vmul.f32 %v9259_v13, %v3812_v38  ;;  %v3971_v45 = vadd.f32 %v9745_v51, %v3926_v25 }
 0xe39   : > { %v3909_v1 = vadd.f32 %v3837_v0, %v3817_v34  ;;  %v9790_v30 = vadd.f32 %v9787_v54, %v3971_v45  ;;  %v3756_v45 = vmul.f32 %v9244_v57, %v9755_v33 }
 0xe3a   : > { %v3872_v9 = vpop.permute.xlu0 %3871 }
 0xe3b   : > { %v3877_v8 = vmul.f32 %v9266_v18, %v3872_v9  ;;  %v3722_v26 = vpop.permute.xlu1 %3721  ;;  %v4118_v3 = vsel %vm1707_vm2, %v9790_v30, -inf }
 0xe3c   : > { %4119 = vmax.xlane.f32.xlu1 %v4118_v3  ;;  %v3735_v43 = vmul.f32 %v9253_v60, %v3722_v26  ;;  %v3836_v26 = vmul.f32 %v9250_v59, %v9757_v46  ;;  %v3912_v3 = vadd.f32 %v3876_v50, %v3856_v5  ;;  %v3896_v46 = vmul.f32 %v9274_v37, %v9765_v53 }
 0xe3d   : > { %v3913_v6 = vadd.f32 %v3877_v8, %v3857_v28  ;;  %v3776_v8 = vmul.f32 %v9247_v58, %v9753_v29 }
 0xe3f   : > { %v3921_v38 = vadd.f32 %v3913_v6, %v3909_v1  ;;  %v3796_v1 = vmul.f32 %v9240_v55, %v9759_v36 }
 0xe40   : > { %v3744_v14 = vpop.permute.xlu1 %3743 }
 0xe41   : > { %v3925_v25 = vadd.f32 %v3921_v38, %v3917_v17  ;;  %v3755_v20 = vmul.f32 %v9244_v57, %v3744_v14  ;;  %v3736_v17 = vmul.f32 %v9253_v60, %v9769_v42  ;;  %v3904_v36 = vadd.f32 %v3796_v1, %v3776_v8  ;;  %v9838_v1 = vld [vmem:[#allocation7 + $0x3] ss:$0 sm:$0xff] }
 0xe42   : > { %v3908_v14 = vadd.f32 %v3836_v26, %v3816_v40 }
 0xe43   : > { %v3899_v42 = vadd.f32 %v3755_v20, %v3735_v43  ;;  %v3900_v33 = vadd.f32 %v3756_v45, %v3736_v17  ;;  %v9824_v20 = vld [vmem:[#allocation7 + $0x1] ss:$0 sm:$0xff]  ;;  %v9831_v17 = vld [vmem:[#allocation7 + $0x2] ss:$0 sm:$0xff] }
 0xe45   : > { %v3784_v51 = vpop.permute.xlu1 %3783  ;;  %v3916_v10 = vadd.f32 %v3904_v36, %v3900_v33 }
 0xe46   : > { %v3795_v22 = vmul.f32 %v9240_v55, %v3784_v51 }
 0xe48   : > { %v3903_v0 = vadd.f32 %v3795_v22, %v3775_v32 }
 0xe4a   : > { %v3804_v39 = vpop.permute.xlu1 %3803  ;;  %v3915_v6 = vadd.f32 %v3903_v0, %v3899_v42 }
 0xe4b   : > { %v3815_v41 = vmul.f32 %v9259_v13, %v3804_v39  ;;  %v3920_v39 = vadd.f32 %v3912_v3, %v3908_v14 }
 0xe4d   : > { %3891 = vperm.xlu1 %7302, %v9690_v11   ;;  %v3907_v9 = vadd.f32 %v3835_v56, %v3815_v41  ;;  %v3924_v32 = vadd.f32 %v3920_v39, %v3916_v10  ;;  %v6538_v10 = vpack.c.bf16 %v9651_v49, %v9651_v49 }
 0xe4f   : > { %v3844_v27 = vpop.permute.xlu1 %3843  ;;  %v3928_v50 = vadd.f32 %v3924_v32, %v3896_v46  ;;  %v4262_v46 = vsel %vm2245_vm4, %v6538_v10, 0 }
 0xe50   : > { %v3855_v34 = vmul.f32 %v9262_v15, %v3844_v27 }
 0xe51   : > { %7303 = vset.pattern.permute.xlu1 %v10392_v4  ;;  %v4063_v63 = vadd.f32 %v9749_v16, %v3928_v50 }
 0xe53   : > { %v4116_v56 = vadd.f32 %v9831_v17, %v4063_v63  ;;  %v6539_v63 = vpack.c.bf16 %v9654_v23, %v9654_v23  ;;  %v7357_v23 = vld [vmem:[%s9028_s16 + $0x38] sm:$0xff]  }
 0xe54   : > { %v3864_v11 = vpop.permute.xlu1 %3863 }
 0xe55   : > { %v3875_v12 = vmul.f32 %v9266_v18, %v3864_v11 }
 0xe57   : > { %v3911_v28 = vadd.f32 %v3875_v12, %v3855_v34 }
 0xe59   : > { %v3919_v38 = vadd.f32 %v3911_v28, %v3907_v9 }
 0xe5b   : > { %v3923_v51 = vadd.f32 %v3919_v38, %v3915_v6 }
 0xe5d   : > { %v3927_v27 = vadd.f32 %v3923_v51, %v3895_v19 }
 0xe5f   : > { %v4017_v22 = vadd.f32 %v9747_v47, %v3927_v27  ;;  %v4124_v47 = vsel %vm1707_vm2, %v4116_v56, -inf }
 0xe61   : > { %v4115_v29 = vadd.f32 %v9824_v20, %v4017_v22 }
 0xe63   : > { %v4121_v41 = vsel %vm1707_vm2, %v4115_v29, -inf }
 0xe64   : > { %4122 = vmax.xlane.f32.xlu0 %v4121_v41  ;;  %v10395_v41 = vmov 0.0  }
 0xe71   : > { %4125 = vmax.xlane.f32.xlu1 %v4124_v47 }
 0xec9   : > { %v4120_v11 = vpop.xlane.xlu1 %4119 }
 0xeca   : > { %v4130_v43 = vsub.f32 %v9790_v30, %v4120_v11 }
 0xecc   : > { %v4134_v0 = vmul.f32 1.442695, %v4130_v43  ;;  %v7360_v43 = vld [vmem:[%s9032_s6 + $0x30] sm:$0xff]  }
 0xecd   : > { %v3892_v34 = vpop.permute.xlu1 %3891 }
 0xece   : > { %7414 = vpow2.f32 %v4134_v0  ;;  %v3897_v53 = vmul.f32 %v9274_v37, %v3892_v34  ;;  %v4308_v0 = vsel %vm2245_vm4, %v6539_v63, 0  ;;  %v6439_v63 = vld [vmem:[%s9038_s20 + $0x3] ss:$0 sm:$0xff] }
 0xed0   : > { %v3929_v12 = vadd.f32 %v3925_v25, %v3897_v53 }
 0xed2   : > { %v4109_v45 = vadd.f32 %v9751_v61, %v3929_v12 }
 0xed4   : > { %v4117_v16 = vadd.f32 %v9838_v1, %v4109_v45  ;;  %v7358_v45 = vld [vmem:[%s9036_s21 + $0x30] sm:$0xff]  }
 0xed6   : > { %v4127_v40 = vsel %vm1707_vm2, %v4117_v16, -inf }
 0xed7   : > { %4128 = vmax.xlane.f32.xlu0 %v4127_v40 }
 0xed8   : > { %v7415_v5 = vpop.eup %7414 }
 0xed9   : > { %v4142_v42 = vsel %vm1707_vm2, %v7415_v5, 0.0 }
 0xeda   : > { %4143 = vadd.xlane.f32.xlu1 %v4142_v42 }
 0xef1   : > { %v4123_v30 = vpop.xlane.xlu0 %4122 }
 0xef2   : > { %v4131_v9 = vsub.f32 %v4115_v29, %v4123_v30  ;;  %v7356_v29 = vld [vmem:[%s9028_s16 + $0x30] sm:$0xff]   ;;  %s8199_s16 = smov 24  }
 0xef4   : > { %v4136_v28 = vmul.f32 1.442695, %v4131_v9  ;;  %v7361_v9 = vld [vmem:[%s9032_s6 + $0x38] sm:$0xff]  }
 0xef6   : > { %7416 = vpow2.f32 %v4136_v28 }
 0xefe   : > { %v4126_v8 = vpop.xlane.xlu1 %4125 }
 0xeff   : > { %v4132_v26 = vsub.f32 %v4116_v56, %v4126_v8 }
 0xf00   : > { %v7417_v25 = vpop.eup %7416 }
 0xf01   : > { %v4138_v3 = vmul.f32 1.442695, %v4132_v26  ;;  %v4145_v61 = vsel %vm1707_vm2, %v7417_v25, 0.0 }
 0xf02   : > { %4146 = vadd.xlane.f32.xlu1 %v4145_v61 }
 0xf03   : > { %7418 = vpow2.f32 %v4138_v3 }
 0xf0d   : > { %v7419_v33 = vpop.eup %7418 }
 0xf0e   : > { %v4148_v6 = vsel %vm1707_vm2, %v7419_v33, 0.0 }
 0xf0f   : > { %4149 = vadd.xlane.f32.xlu0 %v4148_v6 }
 0xf64   : > { %v4129_v38 = vpop.xlane.xlu0 %4128 }
 0xf65   : > { %v4133_v36 = vsub.f32 %v4117_v16, %v4129_v38  ;;  %v7359_v16 = vld [vmem:[%s9036_s21 + $0x38] sm:$0xff]  }
 0xf67   : > { %v4140_v14 = vmul.f32 1.442695, %v4133_v36  ;;  %v4144_v19 = vpop.xlane.xlu1 %4143  ;;  %v6419_v36 = vld [vmem:[%s9030_s27 + $0x3] ss:$0 sm:$0xff] }
 0xf68   : > { %7420 = vrcp.f32 %v4144_v19 }
 0xf69   : > { %7422 = vpow2.f32 %v4140_v14 }
 0xf72   : > { %v7421_v51 = vpop.eup %7420 }
 0xf73   : > { %v7423_v39 = vpop.eup %7422  ;;  %v4158_v27 = vmul.f32 %v7421_v51, %v7415_v5 }
 0xf74   : > { %v4151_v22 = vsel %vm1707_vm2, %v7423_v39, 0.0 }
 0xf75   : > { %4152 = vadd.xlane.f32.xlu0 %v4151_v22  ;;  %v4162_v32 = vpack.c.bf16 %v4158_v27, %v4158_v27 }
 0xf77   : > { %6907 = vmatmul.mubr.msk.bf16.vlgmr.msra.gmra.mrb[56].mxu0 %vm1707_vm2, %v4162_v32 }
 0xf78   : > { %6917 = vmatpush3.bf16.msra.mxu0 %v4262_v46  ;;  %6918 = vmatprep.mubr.msk.bf16.mxu0 %vm8187_vm3, %v10395_v41 }
 0xf79   : > { %6928 = vmatprep.subr.bf16.mxu0 %v7356_v29 }
 0xf8f   : > { %v4147_v50 = vpop.xlane.xlu1 %4146 }
 0xf90   : > { %7424 = vrcp.f32 %v4147_v50 }
 0xf9a   : > { %v7425_v49 = vpop.eup %7424 }
 0xf9b   : > { %v4159_v56 = vmul.f32 %v7425_v49, %v7417_v25 }
 0xf9c   : > { %v4150_v47 = vpop.xlane.xlu0 %4149 }
 0xf9d   : > { %7426 = vrcp.f32 %v4150_v47  ;;  %v4163_v11 = vpack.c.bf16 %v4159_v56, %v4159_v56 }
 0xf9f   : > { %6913 = vmatmul.mubr.msk.bf16.vlgmr.msra.gmra.mrb[72].mxu1 %vm1707_vm2, %v4163_v11 }
 0xfa0   : > { %6923 = vmatpush3.bf16.msra.mxu1 %v4308_v0  ;;  %6924 = vmatprep.mubr.msk.bf16.mxu1 %vm8187_vm3, %v10395_v41 }
 0xfa1   : > { %6936 = vmatprep.subr.bf16.mxu1 %v7360_v43 }
 0xfa7   : > { %v7427_v34 = vpop.eup %7426 }
 0xfa8   : > { %v4160_v53 = vmul.f32 %v7427_v34, %v7419_v33 }
 0xfaa   : > { %v4164_v12 = vpack.c.bf16 %v4160_v53, %v4160_v53 }
 0xfac   : > { %6919 = vmatmul.mubr.msk.bf16.vlgmr.msra.gmra.mrb[60].mxu0 %vm1707_vm2, %v4164_v12 }
 0xfad   : > { %6929 = vmatpush3.bf16.msra.mxu0 %v7356_v29  ;;  %6932 = vmatprep.mubr.msk.bf16.mxu0 %vm1325_vm1, %v9077_v62 }
 0xfae   : > { %6930 = vmatprep.subr.bf16.mxu0 %v7357_v23 }
 0xfb1   : > { %6931 = vmatpush3.bf16.msra.mxu0 %v7357_v23 }
 0xfb2   : > { %6944 = vmatprep.subr.bf16.mxu0 %v7358_v45 }
 0xfb4   : > { %6933 = vmatmul.mubr.msk.bf16.vlgmr.msra.gmra.mrb[64].mxu0 %vm1325_vm1, %v9081_v2 }
 0xfb5   : > { %6945 = vmatpush3.bf16.msra.mxu0 %v7358_v45  ;;  %6948 = vmatprep.mubr.msk.bf16.mxu0 %vm1325_vm1, %v9077_v62 }
 0xfb6   : > { %6946 = vmatprep.subr.bf16.mxu0 %v7359_v16 }
 0xfb9   : > { %6947 = vmatpush3.bf16.msra.mxu0 %v7359_v16 }
 0xfba   : > { %6958 = vmatprep.subr.bf16.mxu0 %v10395_v41 }
 0xfbc   : > { %6949 = vmatmul.mubr.msk.bf16.vlgmr.msra.gmra.mrb[68].mxu0 %vm1325_vm1, %v9081_v2 }
 0xfbd   : > { %6960 = vmatprep.mubr.msk.bf16.mxu0 %vm8187_vm3, %v10395_v41 }
0x1002   : > { %v4153_v40 = vpop.xlane.xlu0 %4152 }
0x1003   : > { %7428 = vrcp.f32 %v4153_v40 }
0x100d   : > { %v7429_v5 = vpop.eup %7428 }
0x100e   : > { %v4161_v42 = vmul.f32 %v7429_v5, %v7423_v39 }
0x1010   : > { %v4165_v30 = vpack.c.bf16 %v4161_v42, %v4161_v42  ;;  %v6429_v42 = vld [vmem:[%s9034_s2 + $0x3] ss:$0 sm:$0xff] }
0x1012   : > { %6925 = vmatmul.mubr.msk.bf16.vlgmr.msra.gmra.mrb[76].mxu1 %vm1707_vm2, %v4165_v30 }
0x1013   : > { %6937 = vmatpush3.bf16.msra.mxu1 %v7360_v43  ;;  %6940 = vmatprep.mubr.msk.bf16.mxu1 %vm1325_vm1, %v9077_v62 }
0x1014   : > { %6938 = vmatprep.subr.bf16.mxu1 %v7361_v9 }
0x1017   : > { %6939 = vmatpush3.bf16.msra.mxu1 %v7361_v9 }
0x1018   : > { %7045 = vmatprep.subr.msk.bf16.mxu1 %vm1707_vm2, %v9630_v24 }
0x101a   : > { %6941 = vmatmul.mubr.msk.bf16.vlgmr.msra.gmra.mrb[80].mxu1 %vm1325_vm1, %v9081_v2 }
0x1020   : > { %6953 = vmatpush3.bf16.xpose.msra.mxu1 %v9103_v7 }
0x1021   : > { %6964 = vmatprep.subr.bf16.mxu1 %v10395_v41 }
0x104a   : > { %v9885_v28 = vpop.f32.mrb[56].mxu0 }
0x104b   : > { %v6908_v8 = vpop.f32.mrb[57].mxu0 }
0x104c   : > { %v4209_v26 = vpop.f32.mrb[58].mxu0 }
0x104d   : > { %v6909_v25 = vpop.f32.mrb[59].mxu0 }
0x1072   : > { %v9887_v3 = vpop.f32.mrb[72].mxu1 }
0x1073   : > { %v4350_v62 = vpack.c.bf16 %v9887_v3, %v9885_v28  ;;  %v6914_v61 = vpop.f32.mrb[73].mxu1 }
0x1074   : > { %v4255_v24 = vpop.f32.mrb[74].mxu1 }
0x1075   : > { %v6915_v33 = vpop.f32.mrb[75].mxu1 }
0x107f   : > { %v9891_v6 = vpop.f32.mrb[60].mxu0 }
0x1080   : > { %v6920_v2 = vpop.f32.mrb[61].mxu0 }
0x1081   : > { %v4301_v7 = vpop.f32.mrb[62].mxu0 }
0x1082   : > { %v6921_v38 = vpop.f32.mrb[63].mxu0 }
0x1087   : > { %v6934_v14 = vpop.f32.mrb[64].mxu0 }
0x1088   : > { %v4431_v19 = vadd.f32 %v6934_v14, %v6419_v36  ;;  %v4422_v51 = vpop.f32.mrb[65].mxu0 }
0x1089   : > { %v4423_v39 = vadd.f32 %v6419_v36, %v4422_v51  ;;  %v6935_v10 = vpop.f32.mrb[66].mxu0 }
0x108a   : > { %v4434_v27 = vadd.f32 %v6935_v10, %v6419_v36  ;;  %v4425_v22 = vpop.f32.mrb[67].mxu0  ;;  %v4587_v29 = vmul.f32 0.35355338, %v4431_v19 }
0x108b   : > { %v4426_v32 = vadd.f32 %v6419_v36, %v4425_v22  ;;  %v4585_v50 = vmul.f32 0.35355338, %v4423_v39 }
0x108c   : > { %v9894_v46 = vmul.f32 0.35355338, %v4434_v27 }
0x108d   : > { %v4586_v49 = vmul.f32 0.35355338, %v4426_v32  ;;  %v6540_v19 = vpack.c.bf16 %v4585_v50, %v4585_v50 }
0x108e   : > { %v4590_v56 = vpack.c.bf16 %v9894_v46, %v4587_v29 }
0x108f   : > { %v4589_v47 = vpack.c.bf16 %v4586_v49, %v4585_v50  ;;  %v6950_v11 = vpop.f32.mrb[68].mxu0  ;;  %v6541_v39 = vpack.c.bf16 %v4586_v49, %v4586_v49  ;;  %v6542_v49 = vpack.c.bf16 %v4587_v29, %v4587_v29 }
0x1090   : > { %v9898_v43 = vadd.f32 %v6950_v11, %v6439_v63  ;;  %v4570_v0 = vpop.f32.mrb[69].mxu0 }
0x1091   : > { %v6951_v34 = vpop.f32.mrb[70].mxu0  ;;  %6954 = vmatprep.mubr.msk.bf16.mxu1 %vm1707_vm2, %v4589_v47  ;;  %v4571_v10 = vadd.f32 %v6439_v63, %v4570_v0  ;;  %v6543_v47 = vpack.c.bf16 %v9894_v46, %v9894_v46 }
0x1092   : > { %v9901_v53 = vadd.f32 %v6951_v34, %v6439_v63  ;;  %v4573_v12 = vpop.f32.mrb[71].mxu0  ;;  %6955 = vmatmul.mubr.msk.bf16.vlgmr.msra.gmra.mrb[84].mxu1 %vm1707_vm2, %v4590_v56 }
0x1093   : > { %6966 = vmatprep.mubr.msk.bf16.mxu1 %vm8187_vm3, %v10395_v41  ;;  %v4574_v22 = vadd.f32 %v6439_v63, %v4573_v12  ;;  %v6548_v50 = vpack.c.bf16 %v4571_v10, %v4571_v10  ;;  %v10396_v12 = vmov 5  }
0x1095   : > { %v6549_v56 = vpack.c.bf16 %v4574_v22, %v4574_v22  ;;  %v5136_v63 = vsel %vm2245_vm4, %v6548_v50, 0 }
0x1097   : > { %v5182_v11 = vsel %vm2245_vm4, %v6549_v56, 0 }
0x10e5   : > { %v9906_v23 = vpop.f32.mrb[76].mxu1 }
0x10e6   : > { %v4351_v45 = vpack.c.bf16 %v9906_v23, %v9891_v6  ;;  %v6926_v16 = vpop.f32.mrb[77].mxu1 }
0x10e7   : > { %v4347_v40 = vpop.f32.mrb[78].mxu1  ;;  %v10397_v16 = vmov 1  }
0x10e8   : > { %v6927_v5 = vpop.f32.mrb[79].mxu1  ;;  %v10398_v40 = vmov 3  }
0x10ed   : > { %v6942_v30 = vpop.f32.mrb[80].mxu1 }
0x10ee   : > { %v4496_v9 = vpop.f32.mrb[81].mxu1  ;;  %v4505_v33 = vadd.f32 %v6942_v30, %v6429_v42 }
0x10ef   : > { %v4497_v8 = vadd.f32 %v6429_v42, %v4496_v9  ;;  %v6943_v26 = vpop.f32.mrb[82].mxu1 }
0x10f0   : > { %v4499_v25 = vpop.f32.mrb[83].mxu1  ;;  %v4508_v38 = vadd.f32 %v6943_v26, %v6429_v42  ;;  %v6546_v14 = vpack.c.bf16 %v4505_v33, %v4505_v33 }
0x10f1   : > { %v6544_v61 = vpack.c.bf16 %v4497_v8, %v4497_v8  ;;  %v4500_v24 = vadd.f32 %v6429_v42, %v4499_v25 }
0x10f2   : > { %v6547_v51 = vpack.c.bf16 %v4508_v38, %v4508_v38  ;;  %v4992_v27 = vsel %vm1707_vm2, %v6546_v14, 0 }
0x10f3   : > { %v4900_v2 = vsel %vm1707_vm2, %v6544_v61, 0  ;;  %v6545_v7 = vpack.c.bf16 %v4500_v24, %v4500_v24 }
0x10f4   : > { %6959 = vmatpush3.bf16.xpose.msra.mxu0 %v4900_v2  ;;  %v5038_v32 = vsel %vm1707_vm2, %v6547_v51, 0 }
0x10f5   : > { %v4946_v36 = vsel %vm1707_vm2, %v6545_v7, 0  ;;  %6970 = vmatprep.subr.bf16.mxu0 %v10395_v41 }
0x10f6   : > { %6965 = vmatpush3.bf16.xpose.msra.mxu1 %v4946_v36 }
0x10f7   : > { %6976 = vmatprep.subr.bf16.mxu1 %v10395_v41 }
0x10fb   : > { %6961 = vmatmul.mubr.msk.bf16.vlgmr.msra.gmra.mrb[72].mxu0 %vm1707_vm2, %v6540_v19 }
0x10fc   : > { %6971 = vmatpush3.bf16.xpose.msra.mxu0 %v4992_v27  ;;  %6972 = vmatprep.mubr.msk.bf16.mxu0 %vm8187_vm3, %v10395_v41 }
0x10fd   : > { %6967 = vmatmul.mubr.msk.bf16.vlgmr.msra.gmra.mrb[88].mxu1 %vm1707_vm2, %v6541_v39  ;;  %6982 = vmatprep.subr.bf16.mxu0 %v10395_v41 }
0x10fe   : > { %6977 = vmatpush3.bf16.xpose.msra.mxu1 %v5038_v32  ;;  %6978 = vmatprep.mubr.msk.bf16.mxu1 %vm8187_vm3, %v10395_v41 }
0x10ff   : > { %6988 = vmatprep.subr.bf16.mxu1 %v10395_v41 }
0x1103   : > { %6973 = vmatmul.mubr.msk.bf16.vlgmr.msra.gmra.mrb[76].mxu0 %vm1707_vm2, %v6542_v49 }
0x1104   : > { %6983 = vmatpush3.bf16.msra.mxu0 %v5136_v63  ;;  %6984 = vmatprep.mubr.msk.bf16.mxu0 %vm8187_vm3, %v10395_v41 }
0x1105   : > { %6979 = vmatmul.mubr.msk.bf16.vlgmr.msra.gmra.mrb[92].mxu1 %vm1707_vm2, %v6543_v47  ;;  %6994 = vmatprep.subr.bf16.mxu0 %v10395_v41 }
0x1106   : > { %6989 = vmatpush3.bf16.msra.mxu1 %v5182_v11  ;;  %6990 = vmatprep.mubr.msk.bf16.mxu1 %vm8187_vm3, %v10395_v41 }
0x1107   : > { %7000 = vmatprep.subr.bf16.mxu1 %v10395_v41 }
0x1165   : > { %v9937_v29 = vpop.f32.mrb[84].mxu1 }
0x1166   : > { %4733 = vperm.xlu0 %7305, %v9937_v29   ;;  %4692 = vperm.xlu1 %7303, %v9937_v29   ;;  %v4665_v46 = vpop.f32.mrb[85].mxu1 }
0x1167   : > { %v9941_v0 = vpop.f32.mrb[86].mxu1 }
0x1168   : > { %v9943_v34 = vpop.f32.mrb[87].mxu1 }
0x116a   : > { %7313 = vset.pattern.permute.xlu0 %v10396_v12  ;;  %7304 = vset.pattern.permute.xlu1 %v10397_v16 }
0x116b   : > { %4713 = vperm.xlu1 %7304, %v9937_v29   ;;  %4785 = vperm.xlu0 %7313, %v4665_v46  }
0x116f   : > { %7306 = vset.pattern.permute.xlu1 %v10398_v40  ;;  %7316 = vset.pattern.permute.xlu0 %v10394_v52 }
0x1170   : > { %4753 = vperm.xlu1 %7306, %v9937_v29   ;;  %4845 = vperm.xlu0 %7316, %v4665_v46  }
0x1174   : > { %7307 = vset.pattern.permute.xlu1 %v10393_v48  ;;  %7317 = vset.pattern.permute.xlu0 %v10392_v4 }
0x1175   : > { %4773 = vperm.xlu1 %7307, %v9937_v29   ;;  %4697 = vperm.xlu0 %7317, %v9941_v0  }
0x1179   : > { %7308 = vset.pattern.permute.xlu1 %v10392_v4  ;;  %7320 = vset.pattern.permute.xlu0 %v10398_v40 }
0x117a   : > { %4682 = vperm.xlu1 %7308, %v4665_v46   ;;  %4757 = vperm.xlu0 %7320, %v9941_v0  }
0x117e   : > { %7309 = vset.pattern.permute.xlu1 %v10397_v16  ;;  %7322 = vset.pattern.permute.xlu0 %v10392_v4 }
0x117f   : > { %4705 = vperm.xlu1 %7309, %v4665_v46   ;;  %4687 = vperm.xlu0 %7322, %v9943_v34  }
0x1183   : > { %7310 = vset.pattern.permute.xlu1 %v10388_v21  ;;  %7328 = vset.pattern.permute.xlu0 %v10386_v35 }
0x1184   : > { %4725 = vperm.xlu1 %7310, %v4665_v46   ;;  %4809 = vperm.xlu0 %7328, %v9943_v34  }
0x1188   : > { %7311 = vset.pattern.permute.xlu1 %v10398_v40  ;;  %7329 = vset.pattern.permute.xlu0 %v10396_v12 }
0x1189   : > { %4745 = vperm.xlu1 %7311, %v4665_v46   ;;  %4793 = vperm.xlu0 %7329, %v9937_v29  }
0x118d   : > { %7312 = vset.pattern.permute.xlu1 %v10393_v48  ;;  %7331 = vset.pattern.permute.xlu0 %v10386_v35 }
0x118e   : > { %4765 = vperm.xlu1 %7312, %v4665_v46   ;;  %4817 = vperm.xlu0 %7331, %v9941_v0  }
0x1192   : > { %7314 = vset.pattern.permute.xlu1 %v10386_v35  ;;  %7335 = vset.pattern.permute.xlu0 %v10394_v52 }
0x1193   : > { %4805 = vperm.xlu1 %7314, %v4665_v46   ;;  %4853 = vperm.xlu0 %7335, %v9937_v29  }
0x1197   : > { %7315 = vset.pattern.permute.xlu1 %v10387_v44 }
0x1198   : > { %4825 = vperm.xlu1 %7315, %v4665_v46  }
0x119c   : > { %7318 = vset.pattern.permute.xlu1 %v10397_v16 }
0x119d   : > { %4717 = vperm.xlu1 %7318, %v9941_v0  }
0x11a1   : > { %7319 = vset.pattern.permute.xlu1 %v10388_v21 }
0x11a2   : > { %4737 = vperm.xlu1 %7319, %v9941_v0  }
0x11a6   : > { %7321 = vset.pattern.permute.xlu1 %v10393_v48 }
0x11a7   : > { %4777 = vperm.xlu1 %7321, %v9941_v0  }
0x11ab   : > { %7323 = vset.pattern.permute.xlu1 %v10397_v16 }
0x11ac   : > { %4709 = vperm.xlu1 %7323, %v9943_v34  }
0x11b0   : > { %7324 = vset.pattern.permute.xlu1 %v10388_v21 }
0x11b1   : > { %4729 = vperm.xlu1 %7324, %v9943_v34  }
0x11b5   : > { %7325 = vset.pattern.permute.xlu1 %v10398_v40 }
0x11b6   : > { %4749 = vperm.xlu1 %7325, %v9943_v34  }
0x11ba   : > { %7326 = vset.pattern.permute.xlu1 %v10393_v48 }
0x11bb   : > { %4769 = vperm.xlu1 %7326, %v9943_v34  }
0x11bf   : > { %7327 = vset.pattern.permute.xlu1 %v10396_v12 }
0x11c0   : > { %4789 = vperm.xlu1 %7327, %v9943_v34  }
0x11c4   : > { %4797 = vperm.xlu1 %7327, %v9941_v0  }
0x11c8   : > { %7330 = vset.pattern.permute.xlu1 %v10386_v35 }
0x11c9   : > { %4813 = vperm.xlu1 %7330, %v9937_v29  }
0x11cd   : > { %7332 = vset.pattern.permute.xlu1 %v10387_v44 }
0x11ce   : > { %4833 = vperm.xlu1 %7332, %v9937_v29   ;;  %v9995_v21 = vpop.f32.mrb[72].mxu0 }
0x11cf   : > { %v6962_v4 = vpop.f32.mrb[73].mxu0 }
0x11d0   : > { %v4939_v48 = vpop.f32.mrb[74].mxu0  ;;  %v9997_v5 = vpop.f32.mrb[88].mxu1 }
0x11d1   : > { %v6963_v42 = vpop.f32.mrb[75].mxu0  ;;  %v6968_v30 = vpop.f32.mrb[89].mxu1 }
0x11d2   : > { %4829 = vperm.xlu1 %7332, %v9943_v34   ;;  %v4985_v9 = vpop.f32.mrb[90].mxu1 }
0x11d3   : > { %v6969_v8 = vpop.f32.mrb[91].mxu1 }
0x11d6   : > { %7333 = vset.pattern.permute.xlu1 %v10394_v52  ;;  %v10001_v35 = vpop.f32.mrb[76].mxu0 }
0x11d7   : > { %4849 = vperm.xlu1 %7333, %v9943_v34   ;;  %v6974_v26 = vpop.f32.mrb[77].mxu0 }
0x11d8   : > { %v5031_v25 = vpop.f32.mrb[78].mxu0  ;;  %v10004_v61 = vpop.f32.mrb[92].mxu1 }
0x11d9   : > { %v6975_v24 = vpop.f32.mrb[79].mxu0  ;;  %v6980_v33 = vpop.f32.mrb[93].mxu1 }
0x11da   : > { %v5077_v2 = vpop.f32.mrb[94].mxu1 }
0x11db   : > { %7334 = vset.pattern.permute.xlu1 %v10387_v44  ;;  %v6981_v7 = vpop.f32.mrb[95].mxu1 }
0x11dc   : > { %4837 = vperm.xlu1 %7334, %v9941_v0  }
0x11e0   : > { %7336 = vset.pattern.permute.xlu1 %v10394_v52 }
0x11e1   : > { %4857 = vperm.xlu1 %7336, %v9941_v0  }
0x11e5   : > { %v4693_v38 = vpop.permute.xlu1 %4692  ;;  %v4734_v51 = vpop.permute.xlu0 %4733 }
0x11e6   : > { %v4702_v14 = vmul.f32 %v9253_v60, %v4693_v38  ;;  %v4742_v27 = vmul.f32 %v9247_v58, %v4734_v51 }
0x11ea   : > { %v4714_v36 = vpop.permute.xlu1 %4713  ;;  %v4786_v29 = vpop.permute.xlu0 %4785 }
0x11eb   : > { %v4722_v19 = vmul.f32 %v9244_v57, %v4714_v36  ;;  %v4800_v16 = vmul.f32 %v9250_v59, %v4786_v29 }
0x11ed   : > { %v4866_v39 = vadd.f32 %v4722_v19, %v4702_v14 }
0x11ef   : > { %v4754_v10 = vpop.permute.xlu1 %4753  ;;  %v4846_v25 = vpop.permute.xlu0 %4845 }
0x11f0   : > { %v4762_v44 = vmul.f32 %v9240_v55, %v4754_v10  ;;  %v4860_v7 = vmul.f32 %v9274_v37, %v4846_v25 }
0x11f2   : > { %v4870_v22 = vadd.f32 %v4762_v44, %v4742_v27 }
0x11f4   : > { %v10014_v32 = vadd.f32 %v4870_v22, %v4866_v39  ;;  %v4774_v50 = vpop.permute.xlu1 %4773  ;;  %v4698_v44 = vpop.permute.xlu0 %4697 }
0x11f9   : > { %v4683_v52 = vpop.permute.xlu1 %4682 }
0x11fa   : > { %v4700_v4 = vmul.f32 %v9253_v60, %v4683_v52  ;;  %v4758_v52 = vpop.permute.xlu0 %4757 }
0x11fe   : > { %v4706_v49 = vpop.permute.xlu1 %4705 }
0x11ff   : > { %v4720_v0 = vmul.f32 %v9244_v57, %v4706_v49 }
0x1201   : > { %v4864_v9 = vadd.f32 %v4720_v0, %v4700_v4 }
0x1203   : > { %v4726_v56 = vpop.permute.xlu1 %4725 }
0x1204   : > { %v4740_v34 = vmul.f32 %v9247_v58, %v4726_v56  ;;  %v4688_v56 = vpop.permute.xlu0 %4687 }
0x1205   : > { %v4701_v25 = vmul.f32 %v9253_v60, %v4688_v56 }
0x1208   : > { %v4746_v47 = vpop.permute.xlu1 %4745 }
0x1209   : > { %v4760_v46 = vmul.f32 %v9240_v55, %v4746_v47 }
0x120b   : > { %v4868_v48 = vadd.f32 %v4760_v46, %v4740_v34  ;;  %v4782_v34 = vmul.f32 %v9259_v13, %v4774_v50 }
0x120d   : > { %v4766_v63 = vpop.permute.xlu1 %4765  ;;  %v4880_v24 = vadd.f32 %v4868_v48, %v4864_v9 }
0x120e   : > { %v4780_v12 = vmul.f32 %v9259_v13, %v4766_v63  ;;  %v4810_v63 = vpop.permute.xlu0 %4809 }
0x120f   : > { %v4821_v50 = vmul.f32 %v9262_v15, %v4810_v63 }
0x1210   : > { %v4872_v8 = vadd.f32 %v4800_v16, %v4780_v12 }
0x1212   : > { %v4806_v11 = vpop.permute.xlu1 %4805  ;;  %v4794_v46 = vpop.permute.xlu0 %4793 }
0x1213   : > { %v4820_v42 = vmul.f32 %v9262_v15, %v4806_v11 }
0x1216   : > { %v4818_v0 = vpop.permute.xlu0 %4817 }
0x1217   : > { %v4826_v40 = vpop.permute.xlu1 %4825 }
0x1218   : > { %v4840_v30 = vmul.f32 %v9266_v18, %v4826_v40 }
0x121a   : > { %v4876_v26 = vadd.f32 %v4840_v30, %v4820_v42  ;;  %v4854_v42 = vpop.permute.xlu0 %4853 }
0x121c   : > { %v4884_v33 = vadd.f32 %v4876_v26, %v4872_v8  ;;  %v4718_v2 = vpop.permute.xlu1 %4717 }
0x121e   : > { %v4888_v38 = vadd.f32 %v4884_v33, %v4880_v24 }
0x1220   : > { %v4892_v36 = vadd.f32 %v4888_v38, %v4860_v7 }
0x1221   : > { %v4738_v14 = vpop.permute.xlu1 %4737 }
0x1222   : > { %v4937_v19 = vadd.f32 %v9995_v21, %v4892_v36 }
0x1224   : > { %v10027_v51 = vadd.f32 %v9787_v54, %v4937_v19  ;;  %v4802_v54 = vmul.f32 %v9250_v59, %v4794_v46  ;;  %v4862_v19 = vmul.f32 %v9274_v37, %v4854_v42 }
0x1226   : > { %v4778_v39 = vpop.permute.xlu1 %4777  ;;  %v5084_v10 = vsel %vm1707_vm2, %v10027_v51, -inf  ;;  %v4874_v48 = vadd.f32 %v4802_v54, %v4782_v34  ;;  %v4743_v54 = vmul.f32 %v9247_v58, %v4738_v14 }
0x1227   : > { %5085 = vmax.xlane.f32.xlu1 %v5084_v10 }
0x122b   : > { %v4710_v27 = vpop.permute.xlu1 %4709 }
0x122c   : > { %v4721_v30 = vmul.f32 %v9244_v57, %v4710_v27 }
0x122e   : > { %v4865_v10 = vadd.f32 %v4721_v30, %v4701_v25 }
0x1230   : > { %v4730_v22 = vpop.permute.xlu1 %4729 }
0x1231   : > { %v4741_v9 = vmul.f32 %v9247_v58, %v4730_v22 }
0x1235   : > { %v4750_v49 = vpop.permute.xlu1 %4749 }
0x1236   : > { %v4761_v16 = vmul.f32 %v9240_v55, %v4750_v49 }
0x1238   : > { %v4869_v33 = vadd.f32 %v4761_v16, %v4741_v9  ;;  %v4723_v16 = vmul.f32 %v9244_v57, %v4718_v2  ;;  %v4783_v9 = vmul.f32 %v9259_v13, %v4778_v39 }
0x123a   : > { %v4770_v47 = vpop.permute.xlu1 %4769 }
0x123b   : > { %v4781_v7 = vmul.f32 %v9259_v13, %v4770_v47 }
0x123f   : > { %v4790_v11 = vpop.permute.xlu1 %4789 }
0x1240   : > { %v4801_v8 = vmul.f32 %v9250_v59, %v4790_v11  ;;  %v4881_v11 = vadd.f32 %v4869_v33, %v4865_v10 }
0x1242   : > { %v4873_v27 = vadd.f32 %v4801_v8, %v4781_v7 }
0x1243   : > { %v4798_v29 = vpop.permute.xlu1 %4797 }
0x1248   : > { %v4814_v21 = vpop.permute.xlu1 %4813 }
0x1249   : > { %v4822_v40 = vmul.f32 %v9262_v15, %v4814_v21 }
0x124d   : > { %v4834_v12 = vpop.permute.xlu1 %4833 }
0x124e   : > { %v4842_v4 = vmul.f32 %v9266_v18, %v4834_v12  ;;  %v4763_v12 = vmul.f32 %v9240_v55, %v4758_v52 }
0x1250   : > { %v4878_v26 = vadd.f32 %v4842_v4, %v4822_v40  ;;  %v4803_v40 = vmul.f32 %v9250_v59, %v4798_v29  ;;  %v4871_v30 = vadd.f32 %v4763_v12, %v4743_v54 }
0x1251   : > { %v4830_v24 = vpop.permute.xlu1 %4829 }
0x1252   : > { %v4886_v38 = vadd.f32 %v4878_v26, %v4874_v48  ;;  %v4841_v36 = vmul.f32 %v9266_v18, %v4830_v24  ;;  %v4823_v48 = vmul.f32 %v9262_v15, %v4818_v0  ;;  %v4875_v8 = vadd.f32 %v4803_v40, %v4783_v9 }
0x1254   : > { %v4890_v22 = vadd.f32 %v4886_v38, %v10014_v32  ;;  %v4877_v49 = vadd.f32 %v4841_v36, %v4821_v50  ;;  %v4703_v32 = vmul.f32 %v9253_v60, %v4698_v44 }
0x1256   : > { %v4885_v46 = vadd.f32 %v4877_v49, %v4873_v27  ;;  %v4850_v21 = vpop.permute.xlu1 %4849  ;;  %v4894_v56 = vadd.f32 %v4890_v22, %v4862_v19 }
0x1257   : > { %v4861_v63 = vmul.f32 %v9274_v37, %v4850_v21 }
0x1258   : > { %v4889_v34 = vadd.f32 %v4885_v46, %v4881_v11  ;;  %v5029_v47 = vadd.f32 %v10001_v35, %v4894_v56  ;;  %v4867_v35 = vadd.f32 %v4723_v16, %v4703_v32  ;;  %v10399_v46 = vld [vmem:[#allocation44_spill] sm:$0xff]  ;;  %v10401_v56 = vld [vmem:[#allocation46_spill] sm:$0xff] }
0x1259   : > { %v10400_v21 = vpack.c.bf16 %v9640_v31, %v10399_v46  ;;  %v6550_v31 = vpack.c.bf16 %v9898_v43, %v9898_v43  ;;  %v6551_v43 = vpack.c.bf16 %v9901_v53, %v9901_v53  ;;  %v7460_v46 = vld [vmem:[#allocation2 + $0x18] sm:$0xff] }
0x125a   : > { %v4893_v4 = vadd.f32 %v4889_v34, %v4861_v63  ;;  %v4883_v2 = vadd.f32 %v4871_v30, %v4867_v35  ;;  %v5082_v15 = vadd.f32 %v9831_v17, %v5029_v47  ;;  %v10402_v63 = vld [vmem:[#allocation45_spill] sm:$0xff] }
0x125b   : > { %v4838_v42 = vpop.permute.xlu1 %4837  ;;  %v10403_v54 = vpack.c.bf16 %v10401_v56, %v10402_v63  ;;  %v5228_v40 = vsel %vm2245_vm4, %v6550_v31, 0  ;;  %v5274_v30 = vsel %vm2245_vm4, %v6551_v43, 0  ;;  %v7461_v56 = vld [vmem:[#allocation2 + $0x8] sm:$0xff] }
0x125c   : > { %v4983_v58 = vadd.f32 %v9997_v5, %v4893_v4  ;;  %v4843_v14 = vmul.f32 %v9266_v18, %v4838_v42  ;;  %v5090_v5 = vsel %vm1707_vm2, %v5082_v15, -inf }
0x125e   : > { %v4879_v55 = vadd.f32 %v4843_v14, %v4823_v48  ;;  %v5081_v57 = vadd.f32 %v9824_v20, %v4983_v58 }
0x1260   : > { %v4887_v59 = vadd.f32 %v4879_v55, %v4875_v8  ;;  %v4858_v52 = vpop.permute.xlu1 %4857  ;;  %v5087_v60 = vsel %vm1707_vm2, %v5081_v57, -inf }
0x1261   : > { %v4863_v44 = vmul.f32 %v9274_v37, %v4858_v52  ;;  %5088 = vmax.xlane.f32.xlu0 %v5087_v60  ;;  %v7362_v52 = vld [vmem:[%s9040_s1] sm:$0xff]  }
0x1262   : > { %v4891_v13 = vadd.f32 %v4887_v59, %v4883_v2 }
0x1264   : > { %v4895_v39 = vadd.f32 %v4891_v13, %v4863_v44 }
0x1265   : > { %5091 = vmax.xlane.f32.xlu0 %v5090_v5 }
0x1266   : > { %v5075_v18 = vadd.f32 %v10004_v61, %v4895_v39 }
0x1268   : > { %v5083_v29 = vadd.f32 %v9838_v1, %v5075_v18 }
0x126a   : > { %v5093_v20 = vsel %vm1707_vm2, %v5083_v29, -inf }
0x126b   : > { %5094 = vmax.xlane.f32.xlu1 %v5093_v20 }
0x12b4   : > { %v5086_v0 = vpop.xlane.xlu1 %5085 }
0x12b5   : > { %v5096_v26 = vsub.f32 %v10027_v51, %v5086_v0 }
0x12b7   : > { %v5100_v25 = vmul.f32 1.442695, %v5096_v26 }
0x12b9   : > { %7430 = vpow2.f32 %v5100_v25 }
0x12c3   : > { %v7431_v17 = vpop.eup %7430 }
0x12c4   : > { %v5108_v37 = vsel %vm1707_vm2, %v7431_v17, 0.0 }
0x12c5   : > { %5109 = vadd.xlane.f32.xlu0 %v5108_v37 }
0x12ee   : > { %v5089_v50 = vpop.xlane.xlu0 %5088 }
0x12ef   : > { %v5097_v24 = vsub.f32 %v5081_v57, %v5089_v50 }
0x12f1   : > { %v5102_v33 = vmul.f32 1.442695, %v5097_v24 }
0x12f2   : > { %v5092_v7 = vpop.xlane.xlu0 %5091 }
0x12f3   : > { %7432 = vpow2.f32 %v5102_v33  ;;  %v5098_v61 = vsub.f32 %v5082_v15, %v5092_v7  ;;  %v7363_v15 = vld [vmem:[%s9040_s1 + $0x8] sm:$0xff]  }
0x12f5   : > { %v5104_v38 = vmul.f32 1.442695, %v5098_v61  ;;  %v6466_v61 = vld [vmem:[%s1104_s7] ss:$0 sm:$0xff] }
0x12f7   : > { %7434 = vpow2.f32 %v5104_v38 }
0x12f8   : > { %v5095_v1 = vpop.xlane.xlu1 %5094 }
0x12f9   : > { %v5099_v36 = vsub.f32 %v5083_v29, %v5095_v1 }
0x12fb   : > { %v5106_v19 = vmul.f32 1.442695, %v5099_v36 }
0x12fd   : > { %v7433_v10 = vpop.eup %7432  ;;  %7436 = vpow2.f32 %v5106_v19 }
0x12fe   : > { %v5111_v51 = vsel %vm1707_vm2, %v7433_v10, 0.0 }
0x12ff   : > { %5112 = vadd.xlane.f32.xlu1 %v5111_v51 }
0x1301   : > { %v7435_v27 = vpop.eup %7434 }
0x1302   : > { %v5114_v22 = vsel %vm1707_vm2, %v7435_v27, 0.0 }
0x1303   : > { %5115 = vadd.xlane.f32.xlu0 %v5114_v22  ;;  %v7459_v22 = vld [vmem:[#allocation2] sm:$0xff] }
0x1307   : > { %v7437_v49 = vpop.eup %7436 }
0x1308   : > { %v5117_v11 = vsel %vm1707_vm2, %v7437_v49, 0.0 }
0x1309   : > { %5118 = vadd.xlane.f32.xlu1 %v5117_v11 }
0x1319   : > { %3388 = vrot.lane.b32.xlu0 %v10400_v21, %s8197_s17 }
0x131a   : > { %3390 = vrot.lane.b32.xlu1 %v10403_v54, %s8197_s17 }
0x131d   : > { %4356 = vrot.lane.b32.xlu0 %v4351_v45, %s8198_s29 }
0x131e   : > { %4354 = vrot.lane.b32.xlu1 %v4350_v62, %s8198_s29 }
0x1352   : > { %v5110_v34 = vpop.xlane.xlu0 %5109 }
0x1353   : > { %7438 = vrcp.f32 %v5110_v34  ;;  %v7462_v34 = vld [vmem:[#allocation2 + $0x10] sm:$0xff] }
0x135d   : > { %v7439_v47 = vpop.eup %7438 }
0x135e   : > { %v5124_v12 = vmul.f32 %v7439_v47, %v7431_v17 }
0x1360   : > { %v5128_v16 = vpack.c.bf16 %v5124_v12, %v5124_v12 }
0x1362   : > { %6985 = vmatmul.mubr.msk.bf16.vlgmr.msra.gmra.mrb[80].mxu0 %vm1707_vm2, %v5128_v16 }
0x1363   : > { %6995 = vmatpush3.bf16.msra.mxu0 %v5228_v40  ;;  %6996 = vmatprep.mubr.msk.bf16.mxu0 %vm8187_vm3, %v10395_v41 }
0x1364   : > { %7006 = vmatprep.subr.bf16.mxu0 %v7362_v52 }
0x138c   : > { %v5113_v6 = vpop.xlane.xlu1 %5112 }
0x138d   : > { %7440 = vrcp.f32 %v5113_v6 }
0x1390   : > { %v5116_v28 = vpop.xlane.xlu0 %5115 }
0x1391   : > { %7442 = vrcp.f32 %v5116_v28 }
0x1394   : > { %v3389_v3 = vpop.permute.xlu0 %3388 }
0x1395   : > { %3395 = vst.msk [vmem:[#allocation3] sm:$0xff] %vm3394_vm0, %v3389_v3 }
0x1396   : > { %v5119_v62 = vpop.xlane.xlu1 %5118 }
0x1397   : > { %v7441_v23 = vpop.eup %7440  ;;  %7444 = vrcp.f32 %v5119_v62 }
0x1398   : > { %v5125_v45 = vmul.f32 %v7441_v23, %v7433_v10  ;;  %v4357_v42 = vpop.permute.xlu0 %4356 }
0x139a   : > { %v3391_v4 = vpop.permute.xlu1 %3390  ;;  %v5129_v32 = vpack.c.bf16 %v5125_v45, %v5125_v45 }
0x139b   : > { %v7443_v48 = vpop.eup %7442  ;;  %3396 = vst.msk [vmem:[#allocation3 + $0x8] sm:$0xff] %vm3394_vm0, %v3391_v4 }
0x139c   : > { %v5126_v9 = vmul.f32 %v7443_v48, %v7435_v27  ;;  %6991 = vmatmul.mubr.msk.bf16.vlgmr.msra.gmra.mrb[96].mxu1 %vm1707_vm2, %v5129_v32  ;;  %4362 = vst.msk [vmem:[#allocation3 + $0x8] sm:$0xff] %vm4360_vm5, %v4357_v42 }
0x139d   : > { %7001 = vmatpush3.bf16.msra.mxu1 %v5274_v30  ;;  %7002 = vmatprep.mubr.msk.bf16.mxu1 %vm8187_vm3, %v10395_v41 }
0x139e   : > { %v4355_v53 = vpop.permute.xlu1 %4354  ;;  %v5130_v58 = vpack.c.bf16 %v5126_v9, %v5126_v9 }
0x139f   : > { %4361 = vst.msk [vmem:[#allocation3] sm:$0xff] %vm4360_vm5, %v4355_v53 }
0x13a0   : > { %6997 = vmatmul.mubr.msk.bf16.vlgmr.msra.gmra.mrb[84].mxu0 %vm1707_vm2, %v5130_v58 }
0x13a1   : > { %v7445_v14 = vpop.eup %7444  ;;  %7007 = vmatpush3.bf16.msra.mxu0 %v7362_v52  ;;  %v7367_v52 = vld [vmem:[%s9050_s12 + $0x8] sm:$0xff]  }
0x13a2   : > { %v5127_v35 = vmul.f32 %v7445_v14, %v7437_v49  ;;  %7008 = vmatprep.subr.bf16.mxu0 %v7363_v15 }
0x13a4   : > { %v5131_v8 = vpack.c.bf16 %v5127_v35, %v5127_v35 }
0x13a5   : > { %7009 = vmatpush3.bf16.msra.mxu0 %v7363_v15  ;;  %v7369_v15 = vld [vmem:[%s9050_s12 + $0x18] sm:$0xff]  }
0x13a6   : > { %7003 = vmatmul.mubr.msk.bf16.vlgmr.msra.gmra.mrb[100].mxu1 %vm1707_vm2, %v5131_v8  ;;  %vm5326_vm2 = vcmask 261312  }
0x1435   : > { %v5172_v55 = vpop.f32.mrb[80].mxu0 }
0x1436   : > { %v6986_v57 = vpop.f32.mrb[81].mxu0 }
0x1437   : > { %v5175_v2 = vpop.f32.mrb[82].mxu0  ;;  %v7364_v57 = vld [vmem:[%s9047_s14] sm:$0xff]  }
0x1438   : > { %v6987_v59 = vpop.f32.mrb[83].mxu0  ;;  %7014 = vmatprep.subr.bf16.mxu1 %v7364_v57  ;;  %v7365_v2 = vld [vmem:[%s9047_s14 + $0x8] sm:$0xff]  }
0x1439   : > { %7015 = vmatpush3.bf16.msra.mxu1 %v7364_v57  ;;  %v7366_v59 = vld [vmem:[%s9050_s12] sm:$0xff]  }
0x143a   : > { %7016 = vmatprep.subr.bf16.mxu1 %v7365_v2  ;;  %7022 = vmatprep.subr.bf16.mxu0 %v7366_v59 }
0x143d   : > { %7017 = vmatpush3.bf16.msra.mxu1 %v7365_v2 }
0x146f   : > { %v5218_v60 = vpop.f32.mrb[96].mxu1 }
0x1470   : > { %v5316_v41 = vpack.c.bf16 %v5218_v60, %v5172_v55  ;;  %v6992_v44 = vpop.f32.mrb[97].mxu1  ;;  %v7368_v60 = vld [vmem:[%s9050_s12 + $0x10] sm:$0xff]  }
0x1471   : > { %v5221_v13 = vpop.f32.mrb[98].mxu1  ;;  %v7371_v44 = vld [vmem:[%s9050_s12 + $0x28] sm:$0xff]  }
0x1472   : > { %v6993_v39 = vpop.f32.mrb[99].mxu1  ;;  %5320 = vrot.lane.b32.xlu1 %v5316_v41, %s8199_s16  ;;  %v7370_v41 = vld [vmem:[%s9050_s12 + $0x20] sm:$0xff]  }
0x1473   : > { %v5264_v5 = vpop.f32.mrb[84].mxu0 }
0x1474   : > { %v6998_v18 = vpop.f32.mrb[85].mxu0 }
0x1475   : > { %v5267_v29 = vpop.f32.mrb[86].mxu0 }
0x1476   : > { %v6999_v20 = vpop.f32.mrb[87].mxu0 }
0x1479   : > { %v5310_v0 = vpop.f32.mrb[100].mxu1 }
0x147a   : > { %v5317_v26 = vpack.c.bf16 %v5310_v0, %v5264_v5  ;;  %v7004_v25 = vpop.f32.mrb[101].mxu1 }
0x147b   : > { %v5313_v17 = vpop.f32.mrb[102].mxu1 }
0x147c   : > { %v7005_v37 = vpop.f32.mrb[103].mxu1  ;;  %5322 = vrot.lane.b32.xlu0 %v5317_v26, %s8199_s16 }
0x14e4   : > { %v5321_v50 = vpop.permute.xlu1 %5320 }
0x14e5   : > { %5327 = vst.msk [vmem:[#allocation3] sm:$0xff] %vm5326_vm2, %v5321_v50 }
0x14ec   : > { %v5329_v24 = vld [vmem:[#allocation3] sm:$0xff] }
0x14ed   : > { %7010 = vmatprep.mubr.msk.bf16.mxu0 %vm1325_vm1, %v5329_v24 }
0x14ee   : > { %v5323_v33 = vpop.permute.xlu0 %5322 }
0x14ef   : > { %5328 = vst.msk [vmem:[#allocation3 + $0x8] sm:$0xff] %vm5326_vm2, %v5323_v33  ;;  %v6471_v33 = vld [vmem:[%s1121_s30] ss:$0 sm:$0xff] }
0x14f6   : > { %v5330_v7 = vld [vmem:[#allocation3 + $0x8] sm:$0xff] }
0x14f7   : > { %7011 = vmatmul.mubr.msk.bf16.vlgmr.msra.gmra.mrb[88].mxu0 %vm1325_vm1, %v5330_v7 }
0x14f8   : > { %7023 = vmatpush3.bf16.msra.mxu0 %v7366_v59 }
0x14f9   : > { %7024 = vmatprep.subr.bf16.mxu0 %v7367_v52 }
0x14fc   : > { %7025 = vmatpush3.bf16.msra.mxu0 %v7367_v52 }
0x14fd   : > { %7026 = vmatprep.subr.bf16.mxu0 %v7368_v60 }
0x1500   : > { %7027 = vmatpush3.bf16.msra.mxu0 %v7368_v60 }
0x1501   : > { %7028 = vmatprep.subr.bf16.mxu0 %v7369_v15 }
0x1504   : > { %7029 = vmatpush3.bf16.msra.mxu0 %v7369_v15 }
0x1505   : > { %7030 = vmatprep.subr.bf16.mxu0 %v7370_v41 }
0x1508   : > { %7031 = vmatpush3.bf16.msra.mxu0 %v7370_v41 }
0x1509   : > { %7032 = vmatprep.subr.bf16.mxu0 %v7371_v44 }
0x150c   : > { %7033 = vmatpush3.bf16.msra.mxu0 %v7371_v44 }
0x15ca   : > { %v7012_v38 = vpop.f32.mrb[88].mxu0 }
0x15cb   : > { %v5394_v1 = vpop.f32.mrb[89].mxu0  ;;  %v5403_v27 = vadd.f32 %v7012_v38, %v6466_v61 }
0x15cc   : > { %v5395_v36 = vadd.f32 %v6466_v61, %v5394_v1  ;;  %v7013_v19 = vpop.f32.mrb[90].mxu0 }
0x15cd   : > { %v5406_v10 = vadd.f32 %v7013_v19, %v6466_v61  ;;  %v5397_v51 = vpop.f32.mrb[91].mxu0  ;;  %v10111_v47 = vadd.f32 %v7462_v34, %v5403_v27 }
0x15ce   : > { %v10103_v49 = vadd.f32 %v7459_v22, %v5395_v36  ;;  %v5398_v11 = vadd.f32 %v6466_v61, %v5397_v51  ;;  %v6472_v36 = vld [vmem:[%s1129_s15] ss:$0 sm:$0xff] }
0x15cf   : > { %v10105_v21 = vadd.f32 %v7460_v46, %v5406_v10  ;;  %v5421_v16 = vsel %vm1325_vm1, %v10111_v47, 0.0 }
0x15d0   : > { %v10107_v63 = vadd.f32 %v7461_v56, %v5398_v11  ;;  %v5415_v54 = vsel %vm1325_vm1, %v10103_v49, 0.0 }
0x15d1   : > { %5416 = vadd.xlane.f32.xlu1 %v5415_v54  ;;  %v5424_v12 = vsel %vm1325_vm1, %v10105_v21, 0.0 }
0x15d2   : > { %v5418_v31 = vsel %vm1325_vm1, %v10107_v63, 0.0 }
0x15d3   : > { %5419 = vadd.xlane.f32.xlu0 %v5418_v31 }
0x15d5   : > { %5425 = vadd.xlane.f32.xlu1 %v5424_v12 }
0x15d7   : > { %5422 = vadd.xlane.f32.xlu0 %v5421_v16 }
0x165e   : > { %v5417_v40 = vpop.xlane.xlu1 %5416 }
0x165f   : > { %v5427_v6 = vmul.f32 0.03125, %v5417_v40  ;;  %v7372_v40 = vld [vmem:[%s9050_s12 + $0x30] sm:$0xff]  }
0x1660   : > { %v5420_v28 = vpop.xlane.xlu0 %5419  ;;  %7034 = vmatprep.subr.bf16.mxu0 %v7372_v40 }
0x1661   : > { %v10120_v3 = vsub.f32 %v10103_v49, %v5427_v6  ;;  %v5428_v62 = vmul.f32 0.03125, %v5420_v28  ;;  %7035 = vmatpush3.bf16.msra.mxu0 %v7372_v40  ;;  %v7373_v6 = vld [vmem:[%s9050_s12 + $0x38] sm:$0xff]  }
0x1662   : > { %v5426_v23 = vpop.xlane.xlu1 %5425  ;;  %7036 = vmatprep.subr.bf16.mxu0 %v7373_v6  ;;  %v6473_v28 = vld [vmem:[%s1146_s18] ss:$0 sm:$0xff] }
0x1663   : > { %v5432_v43 = vsub.f32 %v10107_v63, %v5428_v62  ;;  %v5430_v45 = vmul.f32 0.03125, %v5426_v23  ;;  %v5435_v4 = vmul.f32 %v10120_v3, %v10120_v3 }
0x1664   : > { %v5423_v32 = vpop.xlane.xlu0 %5422 }
0x1665   : > { %v10126_v48 = vsub.f32 %v10105_v21, %v5430_v45  ;;  %v5429_v42 = vmul.f32 0.03125, %v5423_v32  ;;  %v5439_v30 = vsel %vm1325_vm1, %v5435_v4, 0.0  ;;  %v5436_v9 = vmul.f32 %v5432_v43, %v5432_v43  ;;  %7037 = vmatpush3.bf16.msra.mxu0 %v7373_v6 }
0x1666   : > { %5440 = vadd.xlane.f32.xlu0 %v5439_v30 }
0x1667   : > { %v5433_v53 = vsub.f32 %v10111_v47, %v5429_v42  ;;  %v5442_v58 = vsel %vm1325_vm1, %v5436_v9, 0.0  ;;  %v5438_v14 = vmul.f32 %v10126_v48, %v10126_v48 }
0x1668   : > { %5443 = vadd.xlane.f32.xlu1 %v5442_v58 }
0x1669   : > { %v5437_v35 = vmul.f32 %v5433_v53, %v5433_v53  ;;  %v5448_v55 = vsel %vm1325_vm1, %v5438_v14, 0.0 }
0x166b   : > { %v5445_v8 = vsel %vm1325_vm1, %v5437_v35, 0.0  ;;  %v6478_v35 = vld [vmem:[%s1163_s25] ss:$0 sm:$0xff] }
0x166c   : > { %5446 = vadd.xlane.f32.xlu0 %v5445_v8  ;;  %5449 = vadd.xlane.f32.xlu1 %v5448_v55 }
0x16f3   : > { %v5441_v13 = vpop.xlane.xlu0 %5440 }
0x16f4   : > { %v5451_v39 = vmul.f32 0.03125, %v5441_v13 }
0x16f5   : > { %v5444_v5 = vpop.xlane.xlu1 %5443 }
0x16f6   : > { %v5455_v18 = vadd.f32 1e-05, %v5451_v39  ;;  %v5452_v29 = vmul.f32 0.03125, %v5444_v5 }
0x16f8   : > { %7446 = vrsqrt.f32 %v5455_v18  ;;  %v5456_v20 = vadd.f32 1e-05, %v5452_v29 }
0x16f9   : > { %v5447_v0 = vpop.xlane.xlu0 %5446  ;;  %v5450_v26 = vpop.xlane.xlu1 %5449 }
0x16fa   : > { %7448 = vrsqrt.f32 %v5456_v20  ;;  %v5453_v25 = vmul.f32 0.03125, %v5447_v0  ;;  %v5454_v17 = vmul.f32 0.03125, %v5450_v26 }
0x16fc   : > { %v5457_v37 = vadd.f32 1e-05, %v5453_v25  ;;  %v5458_v50 = vadd.f32 1e-05, %v5454_v17 }
0x16fe   : > { %7450 = vrsqrt.f32 %v5457_v37 }
0x16ff   : > { %7452 = vrsqrt.f32 %v5458_v50 }
0x1702   : > { %v7447_v24 = vpop.eup %7446 }
0x1703   : > { %v5463_v7 = vmul.f32 %v7447_v24, %v10120_v3 }
0x1704   : > { %v7449_v61 = vpop.eup %7448 }
0x1705   : > { %v5464_v38 = vmul.f32 %v7449_v61, %v5432_v43  ;;  %v5473_v1 = vmul.f32 %v6471_v33, %v5463_v7 }
0x1707   : > { %v5474_v19 = vmul.f32 %v6471_v33, %v5464_v38  ;;  %v5483_v22 = vadd.f32 %v6472_v36, %v5473_v1 }
0x1708   : > { %v7451_v10 = vpop.eup %7450 }
0x1709   : > { %v7453_v51 = vpop.eup %7452  ;;  %v5465_v27 = vmul.f32 %v7451_v10, %v5433_v53  ;;  %v5484_v11 = vadd.f32 %v6472_v36, %v5474_v19 }
0x170a   : > { %v5466_v46 = vmul.f32 %v7453_v51, %v10126_v48 }
0x170b   : > { %v5475_v56 = vmul.f32 %v6471_v33, %v5465_v27  ;;  %v5487_v54 = vpack.c.bf16 %v5484_v11, %v5483_v22 }
0x170c   : > { %v5476_v34 = vmul.f32 %v6471_v33, %v5466_v46 }
0x170d   : > { %7018 = vmatprep.mubr.msk.bf16.mxu1 %vm1325_vm1, %v5487_v54  ;;  %v5485_v31 = vadd.f32 %v6472_v36, %v5475_v56 }
0x170e   : > { %v5486_v12 = vadd.f32 %v6472_v36, %v5476_v34 }
0x1710   : > { %v5488_v16 = vpack.c.bf16 %v5486_v12, %v5485_v31 }
0x1712   : > { %7019 = vmatmul.mubr.msk.bf16.vlgmr.msra.gmra.mrb[104].mxu1 %vm1325_vm1, %v5488_v16 }
0x17e5   : > { %v7020_v3 = vpop.f32.mrb[104].mxu1 }
0x17e6   : > { %v5561_v62 = vadd.f32 %v7020_v3, %v6473_v28  ;;  %v5552_v23 = vpop.f32.mrb[105].mxu1  ;;  %v6488_v3 = vld [vmem:[#allocation26] ss:$0 sm:$0xff] (!%p6487_p4) }
0x17e7   : > { %v5553_v43 = vadd.f32 %v6473_v28, %v5552_v23  ;;  %v7021_v45 = vpop.f32.mrb[106].mxu1  ;;  %v6489_v23 = vld [vmem:[#allocation27] ss:$0 sm:$0xff] (!%p6487_p4) }
0x17e8   : > { %v5564_v4 = vadd.f32 %v7021_v45, %v6473_v28  ;;  %v5555_v32 = vpop.f32.mrb[107].mxu1  ;;  %v5569_v42 = vmax.f32 %v5561_v62, 0.0 }
0x17e9   : > { %v5556_v48 = vadd.f32 %v6473_v28, %v5555_v32  ;;  %v5567_v9 = vmax.f32 %v5553_v43, 0.0 }
0x17ea   : > { %v5570_v30 = vmax.f32 %v5564_v4, 0.0 }
0x17eb   : > { %v5568_v53 = vmax.f32 %v5556_v48, 0.0 }
0x17ec   : > { %v5572_v58 = vpack.c.bf16 %v5570_v30, %v5569_v42 }
0x17ed   : > { %v5571_v14 = vpack.c.bf16 %v5568_v53, %v5567_v9 }
0x17ef   : > { %7038 = vmatprep.mubr.bf16.mxu0 %v5571_v14 }
0x17f0   : > { %7039 = vmatmul.mubr.bf16.vlgmr.msra.gmra.mrb[92].mxu0 %v5572_v58 }
0x18c3   : > { %v7040_v8 = vpop.f32.mrb[92].mxu0 }
0x18c4   : > { %v5687_v55 = vadd.f32 %v7040_v8, %v6478_v35  ;;  %v5678_v57 = vpop.f32.mrb[93].mxu0 }
0x18c5   : > { %v5679_v2 = vadd.f32 %v6478_v35, %v5678_v57  ;;  %v7041_v59 = vpop.f32.mrb[94].mxu0  ;;  %5704 = sbr.rel (%p6487_p4) target bundleno = 6667 (0x1a0b), region = 196 }
0x18c6   : > { %v5695_v52 = vadd.f32 %v5687_v55, %v10111_v47  ;;  %v5690_v60 = vadd.f32 %v7041_v59, %v6478_v35  ;;  %v5681_v15 = vpop.f32.mrb[95].mxu0 }
0x18c7   : > { %v5693_v41 = vadd.f32 %v5679_v2, %v10103_v49  ;;  %v5682_v44 = vadd.f32 %v6478_v35, %v5681_v15 }
0x18c8   : > { %5699 = vst.msk [vmem:[#allocation2 + $0x10] sm:$0xff] %vm1325_vm1, %v5695_v52  ;;  %v5696_v13 = vadd.f32 %v5690_v60, %v10105_v21  ;;  %v5713_v49 = vsel (!%p6487_p4), %vm1325_vm1, %v5695_v52, 0.0 }
0x18c9   : > { %5697 = vst.msk [vmem:[#allocation2] sm:$0xff] %vm1325_vm1, %v5693_v41  ;;  %v5694_v39 = vadd.f32 %v5682_v44, %v10107_v63  ;;  %v5707_v47 = vsel (!%p6487_p4), %vm1325_vm1, %v5693_v41, 0.0  ;;  %5714 = vadd.xlane.f32.xlu1 (!%p6487_p4), %v5713_v49 }
0x18ca   : > { %5700 = vst.msk [vmem:[#allocation2 + $0x18] sm:$0xff] %vm1325_vm1, %v5696_v13  ;;  %5708 = vadd.xlane.f32.xlu0 (!%p6487_p4), %v5707_v47  ;;  %v5716_v21 = vsel (!%p6487_p4), %vm1325_vm1, %v5696_v13, 0.0 }
0x18cb   : > { %5698 = vst.msk [vmem:[#allocation2 + $0x8] sm:$0xff] %vm1325_vm1, %v5694_v39  ;;  %v5710_v5 = vsel (!%p6487_p4), %vm1325_vm1, %v5694_v39, 0.0 }
0x18cd   : > { %5717 = vadd.xlane.f32.xlu1 %v5716_v21 }
0x18ce   : > { %5711 = vadd.xlane.f32.xlu0 %v5710_v5 }
0x1956   : > { %v5715_v18 = vpop.xlane.xlu1 %5714 }
0x1957   : > { %v5709_v63 = vpop.xlane.xlu0 %5708  ;;  %v5721_v20 = vmul.f32 0.03125, %v5715_v18 }
0x1958   : > { %v5719_v29 = vmul.f32 0.03125, %v5709_v63 }
0x1959   : > { %v5725_v26 = vsub.f32 %v5695_v52, %v5721_v20 }
0x195a   : > { %v5723_v0 = vsub.f32 %v5693_v41, %v5719_v29  ;;  %v5718_v17 = vpop.xlane.xlu1 %5717 }
0x195b   : > { %v5712_v25 = vpop.xlane.xlu0 %5711  ;;  %v5722_v50 = vmul.f32 0.03125, %v5718_v17  ;;  %v5729_v33 = vmul.f32 %v5725_v26, %v5725_v26 }
0x195c   : > { %v5720_v37 = vmul.f32 0.03125, %v5712_v25  ;;  %v5727_v24 = vmul.f32 %v5723_v0, %v5723_v0 }
0x195d   : > { %v5726_v61 = vsub.f32 %v5696_v13, %v5722_v50  ;;  %v5737_v1 = vsel %vm1325_vm1, %v5729_v33, 0.0 }
0x195e   : > { %v5724_v7 = vsub.f32 %v5694_v39, %v5720_v37  ;;  %v5731_v38 = vsel %vm1325_vm1, %v5727_v24, 0.0 }
0x195f   : > { %5732 = vadd.xlane.f32.xlu0 %v5731_v38  ;;  %v5730_v19 = vmul.f32 %v5726_v61, %v5726_v61 }
0x1960   : > { %v5728_v36 = vmul.f32 %v5724_v7, %v5724_v7 }
0x1961   : > { %v5740_v51 = vsel %vm1325_vm1, %v5730_v19, 0.0 }
0x1962   : > { %v5734_v10 = vsel %vm1325_vm1, %v5728_v36, 0.0 }
0x1963   : > { %5738 = vadd.xlane.f32.xlu0 %v5737_v1  ;;  %5735 = vadd.xlane.f32.xlu1 %v5734_v10 }
0x1967   : > { %5741 = vadd.xlane.f32.xlu1 %v5740_v51 }
0x19ec   : > { %v5733_v27 = vpop.xlane.xlu0 %5732 }
0x19ed   : > { %v5743_v22 = vmul.f32 0.03125, %v5733_v27 }
0x19ef   : > { %v5747_v11 = vadd.f32 1e-05, %v5743_v22 }
0x19f0   : > { %v5736_v46 = vpop.xlane.xlu1 %5735  ;;  %v5739_v56 = vpop.xlane.xlu0 %5738 }
0x19f1   : > { %7463 = vrsqrt.f32 %v5747_v11  ;;  %v5744_v54 = vmul.f32 0.03125, %v5736_v46  ;;  %v5745_v34 = vmul.f32 0.03125, %v5739_v56 }
0x19f3   : > { %v5748_v31 = vadd.f32 1e-05, %v5744_v54  ;;  %v5749_v12 = vadd.f32 1e-05, %v5745_v34 }
0x19f4   : > { %v5742_v16 = vpop.xlane.xlu1 %5741 }
0x19f5   : > { %7465 = vrsqrt.f32 %v5748_v31  ;;  %v5746_v40 = vmul.f32 0.03125, %v5742_v16 }
0x19f6   : > { %7467 = vrsqrt.f32 %v5749_v12 }
0x19f7   : > { %v5750_v6 = vadd.f32 1e-05, %v5746_v40 }
0x19f9   : > { %7469 = vrsqrt.f32 %v5750_v6 }
0x19fb   : > { %v7464_v28 = vpop.eup %7463 }
0x19fc   : > { %v5755_v62 = vmul.f32 %v7464_v28, %v5723_v0 }
0x19fe   : > { %v5765_v43 = vmul.f32 %v6488_v3, %v5755_v62 }
0x19ff   : > { %v7466_v45 = vpop.eup %7465 }
0x1a00   : > { %v7468_v4 = vpop.eup %7467  ;;  %v5775_v32 = vadd.f32 %v6489_v23, %v5765_v43  ;;  %v5756_v48 = vmul.f32 %v7466_v45, %v5724_v7 }
0x1a01   : > { %v5757_v42 = vmul.f32 %v7468_v4, %v5725_v26 }
0x1a02   : > { %5779 = vst.msk [vmem:[#allocation29] sm:$0xff] %vm1325_vm1, %v5775_v32  ;;  %v5766_v30 = vmul.f32 %v6488_v3, %v5756_v48 }
0x1a03   : > { %v7470_v9 = vpop.eup %7469  ;;  %v5767_v53 = vmul.f32 %v6488_v3, %v5757_v42 }
0x1a04   : > { %v5776_v58 = vadd.f32 %v6489_v23, %v5766_v30  ;;  %v5758_v14 = vmul.f32 %v7470_v9, %v5726_v61 }
0x1a05   : > { %v5777_v35 = vadd.f32 %v6489_v23, %v5767_v53 }
0x1a06   : > { %5780 = vst.msk [vmem:[#allocation29 + $0x8] sm:$0xff] %vm1325_vm1, %v5776_v58  ;;  %v5768_v8 = vmul.f32 %v6488_v3, %v5758_v14 }
0x1a07   : > { %5781 = vst.msk [vmem:[#allocation29 + $0x10] sm:$0xff] %vm1325_vm1, %v5777_v35 }
0x1a08   : > { %v5778_v55 = vadd.f32 %v6489_v23, %v5768_v8 }
0x1a0a   : > { %5782 = vst.msk [vmem:[#allocation29 + $0x18] sm:$0xff] %vm1325_vm1, %v5778_v55 }
0x1a0b PF: > { %s10405_s25 = sld [smem:[#allocation39_spill]]  ;;  %s8200_s12 = smov [#allocation29]  }
0x1a0c   : > { %s5792_s27 = sshll.u32 %s8200_s12, 4  ;;  %s5793_s27 = int_to_ptr.vmem [resolvable:$true] %s5792_s27 }
0x1a0d   : > { %s8059_s6 = scalar_lea.vmem %s5793_s27, 512  ;;  %p8066_p12 = scmp.lt.s32.totalorder %s5793_s27, %s5793_s27 }
0x1a0e   : > { %p8060_p10 = scmp.ne.s32.totalorder %s5793_s27, %s8059_s6  ;;  %p8067_p2 = scmp.lt.s32.totalorder %s8059_s6, %s8059_s6 }
0x1a10   : > { %p8068_p3 = por %p8067_p2, %p8066_p12 }
0x1a11   : > { %p7121_p6 = scmp.eq.s32.totalorder %s10405_s25, 1 }
0x1a13   : > { %p8061_p9 = pnand %p8060_p10, %p7121_p6 }
0x1a15   : > { %p8062_p11 = pneg %p8061_p9 }
0x1a17   : > { %p8069_p0 = pnand %p8068_p3, %p8062_p11 }
0x1a19   : > { %8072 = shalt.err (!%p8069_p0)
}
0x1a1a   : > { %s10406_s20 = sld [smem:[#allocation65_spill]] }
0x1a20   : > { %s8073_s1 = scalar_lea.hbm %s10406_s20, 512 }
0x1a21   : > { %p8074_p8 = scmp.ne.s32.totalorder %s10406_s20, %s8073_s1  ;;  %p8079_p7 = scmp.lt.u32.totalorder %s8073_s1, %s10406_s20 }
0x1a23   : > { %p8075_p1 = pnand %p8074_p8, %p7121_p6 }
0x1a25   : > { %p8076_p13 = pneg %p8075_p1 }
0x1a27   : > { %p8081_p5 = pnand %p8079_p7, %p8076_p13 }
0x1a29   : > { %8084 = shalt.err (!%p8081_p5)
}
0x1a2a   : > { %s8201_s14 = smov 128  }
0x1a2b   : > { %7097 = dma.vmem_to_hbm [thread:$0]  (%p7121_p6), %s5793_s27, 512, %s10406_s20, [#allocation6], %s8201_s14, %s8201_s14, %s8197_s17  }
0x1a2c   : > { %8130 = dma.done.wait (%p7121_p6), [#allocation6], 512  }
0x1a2d   : > { %8132 = vsyncadd (%p7121_p6), [#allocation6], 4294966784 }
0x1a2e PF: > { %s35_s28 = sadd.s32 1, %s8155_s28   ;;  %s10407_s2 = sld [smem:[#allocation36_spill]] }
0x1a2f   : > { %p32_p4 = scmp.ge.s32.totalorder %s35_s28, 4   ;;  %s10408_s25 = sld [smem:[#allocation37_spill]] }
0x1a30   : > { %s10409_s26 = sld [smem:[#allocation42_spill]]  ;;  %s10410_s4 = sld [smem:[#allocation40_spill]] }
0x1a31   : > { %s10411_s27 = smov %s8151_s3  ;;  %34 = sbr.rel (!%p32_p4) target bundleno = 26 (0x1a), region = 361 }
0x1a36   : > { %s10412_s3 = smov %s10410_s4 }
0x1a38   :  { %5808 = vsyncpa [#allocation5], 1 }
0x1a39   :  { %5810 = vsyncpa [#allocation5 + $0x1], 1 }
0x1a3a   :  { %5811 = vsyncpa [#allocation8], 1 }
0x1a3b   :  { %5812 = vsyncpa [#allocation28], 1 }
0x1a3c   :  { %5813 = vsyncpa [#allocation6], 1 }
0x1a3d   :  { %5815 = vsyncpa [#allocation6 + $0x1], 1 }

</bundles_post_ra>
